<compile_context>
chip_gen: v5e
topology: v5e:2x2
jax: 0.10.0
libtpu: 0.0.40
codegen_flags: <defaults>
</compile_context>

<pallas_src>
import functools

import jax
import jax.numpy as jnp
from jax.experimental import pallas as pl
from jax.experimental.pallas import tpu as pltpu

LATENT_DIM = 32
HID1 = 128
HID2 = 256
DATA_DIM = 2
OUT_PAD = 128          # lane-dense padded width of the last-layer weight
MAX_BLOCK_ROWS = 4096  # ~2.5 KB VMEM per row -> ~10 MB at 4096 rows


def _round_up(x, m):
    return ((x + m - 1) // m) * m


@functools.lru_cache(maxsize=1)
def _num_tensorcores():
    """TensorCores per chip (the 'parallel' grid axis is sharded over these).
    v7x (and v4/v5p megacore) = 2; v5e/v6e = 1."""
    try:
        kind = jax.devices()[0].device_kind.lower()
    except Exception:
        return 1
    if "v7" in kind or "v4" in kind or "v5p" in kind:
        return 2
    return 1


def _choose_block_b(B):
    """Divisor-aware batch tile: as few equal tiles as possible (>= one per
    TensorCore), each a multiple of 8 rows, capped for VMEM."""
    n_splits = max(_num_tensorcores(),
                   pl.cdiv(_round_up(B, 8), MAX_BLOCK_ROWS))
    return _round_up(pl.cdiv(B, n_splits), 8)


def generator_kernel(z_ref, w1_ref, b1_ref, w2_ref, b2_ref, w3_ref, b3_ref,
                     o_ref):
    """Fused 3-layer MLP on one batch tile: (Bt,32) -> (Bt,2)."""
    # Layer 1: Linear(32 -> 128) + ReLU   (bf16 MXU matmul, f32 accumulate)
    z = z_ref[...].astype(jnp.bfloat16)
    h1 = jnp.dot(z, w1_ref[...], preferred_element_type=jnp.float32)
    h1 = jnp.maximum(h1 + b1_ref[...], 0.0).astype(jnp.bfloat16)
    # Layer 2: Linear(128 -> 256) + ReLU
    h2 = jnp.dot(h1, w2_ref[...], preferred_element_type=jnp.float32)
    h2 = jnp.maximum(h2 + b2_ref[...], 0.0).astype(jnp.bfloat16)
    # Layer 3: Linear(256 -> 2) + Tanh.  w3 is lane-padded to 128 columns (at
    # init time) so the MXU RHS is lane-dense; only the 2 real columns are
    # bias-added, tanh'd and stored.
    out = jnp.dot(h2, w3_ref[...], preferred_element_type=jnp.float32)
    out = out[:, :DATA_DIM] + b3_ref[...]
    o_ref[...] = jnp.tanh(out).astype(o_ref.dtype)


@functools.partial(jax.jit, static_argnames=("block_b",))
def generator_forward(z, w1, b1, w2, b2, w3p, b3, *, block_b=None):
    """z: (B, 32) float32.  Params as produced by prepare_params()."""
    B = z.shape[0]
    if block_b is None:
        block_b = _choose_block_b(B)

    # Minimal batch padding (only up to the next multiple of block_b).
    B_pad = _round_up(B, block_b)
    if B_pad != B:
        z = jnp.pad(z, ((0, B_pad - B), (0, 0)))

    grid = (B_pad // block_b,)
    rep = lambda i: (0, 0)  # grid-invariant (resident) weight/bias blocks

    flops = 2 * B_pad * (LATENT_DIM * HID1 + HID1 * HID2 + HID2 * OUT_PAD)
    bytes_accessed = (
        B_pad * LATENT_DIM * 4 + B_pad * DATA_DIM * 4 +
        (LATENT_DIM * HID1 + HID1 * HID2 + HID2 * OUT_PAD) * 2 +
        (HID1 + HID2 + DATA_DIM) * 4)
    cost = pl.CostEstimate(flops=flops,
                           transcendentals=B_pad * DATA_DIM,
                           bytes_accessed=bytes_accessed)

    out = pl.pallas_call(
        generator_kernel,
        out_shape=jax.ShapeDtypeStruct((B_pad, DATA_DIM), jnp.float32),
        grid_spec=pltpu.PrefetchScalarGridSpec(
            num_scalar_prefetch=0,
            grid=grid,
            in_specs=[
                pl.BlockSpec((block_b, LATENT_DIM), lambda i: (i, 0)),
                pl.BlockSpec((LATENT_DIM, HID1), rep),
                pl.BlockSpec((1, HID1), rep),
                pl.BlockSpec((HID1, HID2), rep),
                pl.BlockSpec((1, HID2), rep),
                pl.BlockSpec((HID2, OUT_PAD), rep),
                pl.BlockSpec((1, DATA_DIM), rep),
            ],
            out_specs=pl.BlockSpec((block_b, DATA_DIM), lambda i: (i, 0)),
        ),
        compiler_params=pltpu.CompilerParams(
            dimension_semantics=("parallel",),
            vmem_limit_bytes=32 * 1024 * 1024),
        cost_estimate=cost,
    )(z, w1, b1, w2, b2, w3p, b3)

    return out[:B] if B_pad != B else out


def init_params(key):
    """Deterministic f32 init mimicking PyTorch's default Linear init
    (uniform in +/- 1/sqrt(fan_in)).  Weights stored as (in, out)."""
    ks = jax.random.split(key, 6)

    def linear(kw, kb, fan_in, fan_out):
        bound = 1.0 / jnp.sqrt(fan_in)
        w = jax.random.uniform(kw, (fan_in, fan_out), jnp.float32,
                               -bound, bound)
        b = jax.random.uniform(kb, (1, fan_out), jnp.float32, -bound, bound)
        return w, b

    w1, b1 = linear(ks[0], ks[1], LATENT_DIM, HID1)
    w2, b2 = linear(ks[2], ks[3], HID1, HID2)
    w3, b3 = linear(ks[4], ks[5], HID2, DATA_DIM)
    return w1, b1, w2, b2, w3, b3


def prepare_params(w1, b1, w2, b2, w3, b3):
    """One-time conversion into kernel layout: bf16 weights, w3 lane-padded
    (256,2)->(256,128).  Done once at init time, NOT per forward call."""
    w3p = jnp.pad(w3, ((0, 0), (0, OUT_PAD - DATA_DIM)))
    return (w1.astype(jnp.bfloat16), b1,
            w2.astype(jnp.bfloat16), b2,
            w3p.astype(jnp.bfloat16), b3)


def reference_forward(z, w1, b1, w2, b2, w3, b3):
    h1 = jnp.maximum(z @ w1 + b1, 0.0)
    h2 = jnp.maximum(h1 @ w2 + b2, 0.0)
    return jnp.tanh(h2 @ w3 + b3)


if __name__ == "__main__":
    key = jax.random.PRNGKey(0)
    kp, kz = jax.random.split(key)

    params_f32 = init_params(kp)
    params_kernel = prepare_params(*params_f32)  # bf16 / padded, once

    # Production batch from the config (1280; splits evenly on every chip)
    # plus a non-multiple-of-8 batch to exercise the tail-padding path.
    for B in (1280, 200):
        z = jax.random.normal(jax.random.fold_in(kz, B), (B, LATENT_DIM),
                              jnp.float32)
        out = jax.block_until_ready(generator_forward(z, *params_kernel))
        ref = reference_forward(z, *params_f32)
        assert out.shape == (B, DATA_DIM)
        # bf16 matmuls (with f32 accumulation) vs the pure-f32 reference:
        # tolerance loosened from 1e-5 per the performance review.
        max_diff = float(jnp.max(jnp.abs(out - ref)))
        assert jnp.allclose(out, ref, atol=5e-2, rtol=5e-2), (
            f"mismatch vs reference at B={B}: max abs diff {max_diff}")

    print("KERNEL_OK")
</pallas_src>

<mosaic_0001>
module attributes {stable_mosaic.version = 11 : i64} {
  func.func @generator_kernel(%arg0: i32, %arg1: memref<1280x32xf32, #tpu.memory_space<vmem>>, %arg2: memref<32x128xbf16, #tpu.memory_space<vmem>>, %arg3: memref<1x128xf32, #tpu.memory_space<vmem>>, %arg4: memref<128x256xbf16, #tpu.memory_space<vmem>>, %arg5: memref<1x256xf32, #tpu.memory_space<vmem>>, %arg6: memref<256x128xbf16, #tpu.memory_space<vmem>>, %arg7: memref<1x2xf32, #tpu.memory_space<vmem>>, %arg8: memref<1280x2xf32, #tpu.memory_space<vmem>>) attributes {dimension_semantics = [#tpu.dimension_semantics<parallel>], iteration_bounds = array<i64: 1>, scalar_prefetch = 0 : i64, scratch_operands = 0 : i64, tpu.core_type = #tpu.core_type<tc>, window_params = [{transform_indices = @transform_0, window_bounds = array<i64: 1280, 32>}, {pipeline_mode = #tpu.pipeline_mode<synchronous>, transform_indices = @transform_1, window_bounds = array<i64: 32, 128>}, {pipeline_mode = #tpu.pipeline_mode<synchronous>, transform_indices = @transform_2, window_bounds = array<i64: 1, 128>}, {pipeline_mode = #tpu.pipeline_mode<synchronous>, transform_indices = @transform_3, window_bounds = array<i64: 128, 256>}, {pipeline_mode = #tpu.pipeline_mode<synchronous>, transform_indices = @transform_4, window_bounds = array<i64: 1, 256>}, {pipeline_mode = #tpu.pipeline_mode<synchronous>, transform_indices = @transform_5, window_bounds = array<i64: 256, 128>}, {pipeline_mode = #tpu.pipeline_mode<synchronous>, transform_indices = @transform_6, window_bounds = array<i64: 1, 2>}, {transform_indices = @transform_7, window_bounds = array<i64: 1280, 2>}]} {
    %c0 = arith.constant 0 : index
    %c0_0 = arith.constant 0 : index
    %0 = vector.load %arg1[%c0, %c0_0] : memref<1280x32xf32, #tpu.memory_space<vmem>>, vector<1280x32xf32>
    %1 = arith.truncf %0 : vector<1280x32xf32> to vector<1280x32xbf16>
    %c0_1 = arith.constant 0 : index
    %c0_2 = arith.constant 0 : index
    %2 = vector.load %arg2[%c0_1, %c0_2] : memref<32x128xbf16, #tpu.memory_space<vmem>>, vector<32x128xbf16>
    %cst = arith.constant dense<0.000000e+00> : vector<1280x128xf32>
    %3 = tpu.matmul %1, %2, %cst {dimension_numbers = #tpu.dot_dimension_numbers<[1], [0], [0], [1], [0, 0, 1, 1], [], []>} : vector<1280x32xbf16>, vector<32x128xbf16>, vector<1280x128xf32> -> vector<1280x128xf32>
    %c0_3 = arith.constant 0 : index
    %c0_4 = arith.constant 0 : index
    %4 = vector.load %arg3[%c0_3, %c0_4] : memref<1x128xf32, #tpu.memory_space<vmem>>, vector<1x128xf32>
    %5 = vector.broadcast %4 : vector<1x128xf32> to vector<1280x128xf32>
    %6 = arith.addf %3, %5 : vector<1280x128xf32>
    %cst_5 = arith.constant 0.000000e+00 : f32
    %7 = vector.broadcast %cst_5 : f32 to vector<1280x128xf32>
    %8 = arith.maximumf %6, %7 : vector<1280x128xf32>
    %9 = arith.truncf %8 : vector<1280x128xf32> to vector<1280x128xbf16>
    %c0_6 = arith.constant 0 : index
    %c0_7 = arith.constant 0 : index
    %10 = vector.load %arg4[%c0_6, %c0_7] : memref<128x256xbf16, #tpu.memory_space<vmem>>, vector<128x256xbf16>
    %cst_8 = arith.constant dense<0.000000e+00> : vector<1280x256xf32>
    %11 = tpu.matmul %9, %10, %cst_8 {dimension_numbers = #tpu.dot_dimension_numbers<[1], [0], [0], [1], [0, 0, 1, 1], [], []>} : vector<1280x128xbf16>, vector<128x256xbf16>, vector<1280x256xf32> -> vector<1280x256xf32>
    %c0_9 = arith.constant 0 : index
    %c0_10 = arith.constant 0 : index
    %12 = vector.load %arg5[%c0_9, %c0_10] : memref<1x256xf32, #tpu.memory_space<vmem>>, vector<1x256xf32>
    %13 = vector.broadcast %12 : vector<1x256xf32> to vector<1280x256xf32>
    %14 = arith.addf %11, %13 : vector<1280x256xf32>
    %cst_11 = arith.constant 0.000000e+00 : f32
    %15 = vector.broadcast %cst_11 : f32 to vector<1280x256xf32>
    %16 = arith.maximumf %14, %15 : vector<1280x256xf32>
    %17 = arith.truncf %16 : vector<1280x256xf32> to vector<1280x256xbf16>
    %c0_12 = arith.constant 0 : index
    %c0_13 = arith.constant 0 : index
    %18 = vector.load %arg6[%c0_12, %c0_13] : memref<256x128xbf16, #tpu.memory_space<vmem>>, vector<256x128xbf16>
    %cst_14 = arith.constant dense<0.000000e+00> : vector<1280x128xf32>
    %19 = tpu.matmul %17, %18, %cst_14 {dimension_numbers = #tpu.dot_dimension_numbers<[1], [0], [0], [1], [0, 0, 1, 1], [], []>} : vector<1280x256xbf16>, vector<256x128xbf16>, vector<1280x128xf32> -> vector<1280x128xf32>
    %20 = vector.extract_strided_slice %19 {offsets = [0, 0], sizes = [1280, 2], strides = [1, 1]} : vector<1280x128xf32> to vector<1280x2xf32>
    %c0_15 = arith.constant 0 : index
    %c0_16 = arith.constant 0 : index
    %21 = vector.load %arg7[%c0_15, %c0_16] : memref<1x2xf32, #tpu.memory_space<vmem>>, vector<1x2xf32>
    %22 = vector.broadcast %21 : vector<1x2xf32> to vector<1280x2xf32>
    %23 = arith.addf %20, %22 : vector<1280x2xf32>
    %24 = math.tanh %23 : vector<1280x2xf32>
    %c0_17 = arith.constant 0 : index
    %c0_18 = arith.constant 0 : index
    %25 = vector.load %arg8[%c0_17, %c0_18] : memref<1280x2xf32, #tpu.memory_space<vmem>>, vector<1280x2xf32>
    tpu.vector_store %arg8[%c0_17, %c0_18], %24 {strides = array<i32>} : memref<1280x2xf32, #tpu.memory_space<vmem>>, vector<1280x2xf32>,
    return
  }
  func.func @transform_0(%arg0: i32) -> (i32, i32) {
    %c0_i32 = arith.constant 0 : i32
    %c0_i32_0 = arith.constant 0 : i32
    return %arg0, %c0_i32 : i32, i32
  }
  func.func @transform_1(%arg0: i32) -> (i32, i32) {
    %c0_i32 = arith.constant 0 : i32
    %c0_i32_0 = arith.constant 0 : i32
    %c0_i32_1 = arith.constant 0 : i32
    return %c0_i32, %c0_i32_0 : i32, i32
  }
  func.func @transform_2(%arg0: i32) -> (i32, i32) {
    %c0_i32 = arith.constant 0 : i32
    %c0_i32_0 = arith.constant 0 : i32
    %c0_i32_1 = arith.constant 0 : i32
    return %c0_i32, %c0_i32_0 : i32, i32
  }
  func.func @transform_3(%arg0: i32) -> (i32, i32) {
    %c0_i32 = arith.constant 0 : i32
    %c0_i32_0 = arith.constant 0 : i32
    %c0_i32_1 = arith.constant 0 : i32
    return %c0_i32, %c0_i32_0 : i32, i32
  }
  func.func @transform_4(%arg0: i32) -> (i32, i32) {
    %c0_i32 = arith.constant 0 : i32
    %c0_i32_0 = arith.constant 0 : i32
    %c0_i32_1 = arith.constant 0 : i32
    return %c0_i32, %c0_i32_0 : i32, i32
  }
  func.func @transform_5(%arg0: i32) -> (i32, i32) {
    %c0_i32 = arith.constant 0 : i32
    %c0_i32_0 = arith.constant 0 : i32
    %c0_i32_1 = arith.constant 0 : i32
    return %c0_i32, %c0_i32_0 : i32, i32
  }
  func.func @transform_6(%arg0: i32) -> (i32, i32) {
    %c0_i32 = arith.constant 0 : i32
    %c0_i32_0 = arith.constant 0 : i32
    %c0_i32_1 = arith.constant 0 : i32
    return %c0_i32, %c0_i32_0 : i32, i32
  }
  func.func @transform_7(%arg0: i32) -> (i32, i32) {
    %c0_i32 = arith.constant 0 : i32
    %c0_i32_0 = arith.constant 0 : i32
    return %arg0, %c0_i32 : i32, i32
  }
}

</mosaic_0001>

<bundles_post_ra>
// kernel: generator_forward.1
= control target key start
LH: loop header
LB: loop body
LE: loop exit
PB: predicated region body
PF: predicated region fallthrough
CT: control target
= control target key end

     0   :  { %vm287_vm0 = vcmask 261120   ;;  %vm3847_vm1 = vcmask 15360   ;;  %s7097_s1 = inlined_call_operand.vmem [shape: bf16[32,128], index: 1, kind: input, shape index: {}]   ;;  %s7098_s0 = inlined_call_operand.vmem [shape: f32[1280,32], index: 0, kind: input, shape index: {}]   ;;  %s7099_s3 = inlined_call_operand.vmem [shape: bf16[128,256], index: 3, kind: input, shape index: {}]   ;;  %s7100_s2 = inlined_call_operand.vmem [shape: f32[1,128], index: 2, kind: input, shape index: {}]   ;;  %s7101_s5 = inlined_call_operand.vmem [shape: bf16[256,128], index: 5, kind: input, shape index: {}]   ;;  %s7102_s4 = inlined_call_operand.vmem [shape: f32[1,256], index: 4, kind: input, shape index: {}]   ;;  %s7103_s6 = inlined_call_operand.vmem [shape: f32[1,2], index: 6, kind: input, shape index: {}]   ;;  %s7104_s7 = inlined_call_operand.vmem [shape: f32[1280,2], index: 7, kind: output, shape index: {}]  }
   0x1   :  { %v4229_v0 = vld [vmem:[%s7097_s1 + $0x8] sm:$0xff]  ;;  %v4228_v1 = vld [vmem:[%s7097_s1] sm:$0xff]  ;;  %v69_v2 = vld [vmem:[%s7098_s0 + $0x150] sm:$0xff] }
   0x2   :  { %v70_v3 = vld [vmem:[%s7098_s0 + $0x158] sm:$0xff]  ;;  %v111_v4 = vld [vmem:[%s7098_s0 + $0x2a0] sm:$0xff]  ;;  %4262 = vmatpush.bf16.msra.mxu1 %v4229_v0  ;;  %4263 = vmatpush.bf16.msra.mxu2 %v4229_v0  ;;  %v112_v5 = vld [vmem:[%s7098_s0 + $0x2a8] sm:$0xff] }
   0x3   :  { %v4158_v6 = vld [vmem:[%s7099_s3 + $0x70] sm:$0xf]  ;;  %v4245_v7 = vld [vmem:[%s7099_s3 + $0x74] sm:$0xf0]  ;;  %534 = vmatpush.bf16.msra.mxu0 %v4229_v0  ;;  %4264 = vmatpush.bf16.msra.mxu3 %v4229_v0  ;;  %v4244_v9 = vld [vmem:[%s7099_s3 + $0x74] sm:$0xf]  ;;  %v208_v11 = vpack.c.bf16 %v70_v3, %v69_v2  ;;  %v229_v12 = vpack.c.bf16 %v112_v5, %v111_v4 }
   0x4   :  { %v4159_v8 = vor.u32 %v4245_v7, %v4158_v6  ;;  %v4160_v10 = vld [vmem:[%s7099_s3 + $0x78] sm:$0xf0]  ;;  %v4150_v14 = vld [vmem:[%s7099_s3 + $0x60] sm:$0xf]  ;;  %v4243_v15 = vld [vmem:[%s7099_s3 + $0x64] sm:$0xf0] }
   0x5   :  { %v4163_v13 = vor.u32 %v4244_v9, %v4160_v10  ;;  %v4151_v16 = vor.u32 %v4243_v15, %v4150_v14  ;;  %v71_v17 = vld [vmem:[%s7098_s0 + $0x160] sm:$0xff]  ;;  %v72_v18 = vld [vmem:[%s7098_s0 + $0x168] sm:$0xff]  ;;  %v113_v19 = vld [vmem:[%s7098_s0 + $0x2b0] sm:$0xff] }
   0x6   :  { %4265 = vmatpush.bf16.msra.mxu1 %v4228_v1  ;;  %4266 = vmatpush.bf16.msra.mxu2 %v4228_v1  ;;  %v114_v20 = vld [vmem:[%s7098_s0 + $0x2b8] sm:$0xff]  ;;  %v209_v21 = vpack.c.bf16 %v72_v18, %v71_v17  ;;  %v73_v23 = vld [vmem:[%s7098_s0 + $0x170] sm:$0xff]  ;;  %v115_v25 = vld [vmem:[%s7098_s0 + $0x2c0] sm:$0xff] }
   0x7   :  { %535 = vmatpush.bf16.msra.mxu0 %v4228_v1  ;;  %4267 = vmatpush.bf16.msra.mxu3 %v4228_v1  ;;  %v230_v22 = vpack.c.bf16 %v114_v20, %v113_v19  ;;  %v74_v24 = vld [vmem:[%s7098_s0 + $0x178] sm:$0xff]  ;;  %v116_v26 = vld [vmem:[%s7098_s0 + $0x2c8] sm:$0xff]  ;;  %v4242_v29 = vld [vmem:[%s7099_s3 + $0x64] sm:$0xf] }
   0x8   :  { %v210_v27 = vpack.c.bf16 %v74_v24, %v73_v23  ;;  %v231_v28 = vpack.c.bf16 %v116_v26, %v115_v25  ;;  %v4152_v30 = vld [vmem:[%s7099_s3 + $0x68] sm:$0xf0]  ;;  %v75_v32 = vld [vmem:[%s7098_s0 + $0x180] sm:$0xff]  ;;  %v117_v34 = vld [vmem:[%s7098_s0 + $0x2d0] sm:$0xff] }
   0x9   :  { %4041 = vmatmul.msk.bf16.vlgmr.msra.gmra.mxu1 %vm287_vm0, %v208_v11  ;;  %4062 = vmatmul.msk.bf16.vlgmr.msra.gmra.mxu2 %vm287_vm0, %v229_v12  ;;  %v4155_v31 = vor.u32 %v4242_v29, %v4152_v30  ;;  %v76_v33 = vld [vmem:[%s7098_s0 + $0x188] sm:$0xff]  ;;  %v118_v35 = vld [vmem:[%s7098_s0 + $0x2d8] sm:$0xff]  ;;  %v4142_v38 = vld [vmem:[%s7099_s3 + $0x50] sm:$0xf] }
   0xa   :  { %1279 = vmatpush.bf16.msrb.mxu1 %v4159_v8  ;;  %1688 = vmatpush.bf16.msrb.mxu2 %v4163_v13  ;;  %v211_v36 = vpack.c.bf16 %v76_v33, %v75_v32  ;;  %v232_v37 = vpack.c.bf16 %v118_v35, %v117_v34  ;;  %v4241_v39 = vld [vmem:[%s7099_s3 + $0x54] sm:$0xf0]  ;;  %v77_v41 = vld [vmem:[%s7098_s0 + $0x190] sm:$0xff]  ;;  %v119_v43 = vld [vmem:[%s7098_s0 + $0x2e0] sm:$0xff] }
   0xb   :  { %v4143_v40 = vor.u32 %v4241_v39, %v4142_v38  ;;  %v78_v42 = vld [vmem:[%s7098_s0 + $0x198] sm:$0xff]  ;;  %v120_v44 = vld [vmem:[%s7098_s0 + $0x2e8] sm:$0xff]  ;;  %v4240_v47 = vld [vmem:[%s7099_s3 + $0x54] sm:$0xf] }
   0xc   :  { %v212_v45 = vpack.c.bf16 %v78_v42, %v77_v41  ;;  %v233_v46 = vpack.c.bf16 %v120_v44, %v119_v43  ;;  %v4144_v48 = vld [vmem:[%s7099_s3 + $0x58] sm:$0xf0]  ;;  %v79_v50 = vld [vmem:[%s7098_s0 + $0x1a0] sm:$0xff]  ;;  %v80_v51 = vld [vmem:[%s7098_s0 + $0x1a8] sm:$0xff] }
   0xd   :  { %v4147_v49 = vor.u32 %v4240_v47, %v4144_v48  ;;  %v121_v52 = vld [vmem:[%s7098_s0 + $0x2f0] sm:$0xff]  ;;  %v122_v53 = vld [vmem:[%s7098_s0 + $0x2f8] sm:$0xff]  ;;  %v213_v54 = vpack.c.bf16 %v80_v51, %v79_v50  ;;  %v123_v58 = vld [vmem:[%s7098_s0 + $0x300] sm:$0xff] }
   0xe   :  { %1280 = vmatpush.bf16.msrb.mxu1 %v4151_v16  ;;  %1689 = vmatpush.bf16.msrb.mxu2 %v4155_v31  ;;  %v234_v55 = vpack.c.bf16 %v122_v53, %v121_v52  ;;  %v81_v56 = vld [vmem:[%s7098_s0 + $0x1b0] sm:$0xff]  ;;  %v82_v57 = vld [vmem:[%s7098_s0 + $0x1b8] sm:$0xff]  ;;  %v124_v59 = vld [vmem:[%s7098_s0 + $0x308] sm:$0xff] }
   0xf   :  { %v214_v60 = vpack.c.bf16 %v82_v57, %v81_v56  ;;  %v235_v61 = vpack.c.bf16 %v124_v59, %v123_v58  ;;  %v27_v62 = vld [vmem:[%s7098_s0] sm:$0xff]  ;;  %v28_v63 = vld [vmem:[%s7098_s0 + $0x8] sm:$0xff]  ;;  %v125_v6 = vld [vmem:[%s7098_s0 + $0x310] sm:$0xff] }
  0x10   :  { %v4134_v0 = vld [vmem:[%s7099_s3 + $0x40] sm:$0xf]  ;;  %v4239_v1 = vld [vmem:[%s7099_s3 + $0x44] sm:$0xf0]  ;;  %v187_v2 = vpack.c.bf16 %v28_v63, %v27_v62  ;;  %v126_v7 = vld [vmem:[%s7098_s0 + $0x318] sm:$0xff] }
  0x11   :  { %v4135_v3 = vor.u32 %v4239_v1, %v4134_v0  ;;  %v83_v4 = vld [vmem:[%s7098_s0 + $0x1c0] sm:$0xff]  ;;  %v84_v5 = vld [vmem:[%s7098_s0 + $0x1c8] sm:$0xff]  ;;  %v236_v9 = vpack.c.bf16 %v126_v7, %v125_v6  ;;  %v29_v10 = vld [vmem:[%s7098_s0 + $0x10] sm:$0xff] }
  0x12   :  { %1281 = vmatpush.bf16.msrb.mxu1 %v4143_v40  ;;  %1690 = vmatpush.bf16.msrb.mxu2 %v4147_v49  ;;  %v215_v8 = vpack.c.bf16 %v84_v5, %v83_v4  ;;  %v30_v11 = vld [vmem:[%s7098_s0 + $0x18] sm:$0xff]  ;;  %v4238_v13 = vld [vmem:[%s7099_s3 + $0x44] sm:$0xf]  ;;  %v4136_v14 = vld [vmem:[%s7099_s3 + $0x48] sm:$0xf0] }
  0x13   :  { %4020 = vmatmul.msk.bf16.vlgmr.msra.gmra.mxu0 %vm287_vm0, %v187_v2  ;;  %v188_v12 = vpack.c.bf16 %v30_v11, %v29_v10  ;;  %v4139_v15 = vor.u32 %v4238_v13, %v4136_v14  ;;  %v85_v16 = vld [vmem:[%s7098_s0 + $0x1d0] sm:$0xff]  ;;  %v86_v17 = vld [vmem:[%s7098_s0 + $0x1d8] sm:$0xff]  ;;  %v127_v18 = vld [vmem:[%s7098_s0 + $0x320] sm:$0xff] }
  0x14   :  { %v128_v19 = vld [vmem:[%s7098_s0 + $0x328] sm:$0xff]  ;;  %v216_v20 = vpack.c.bf16 %v86_v17, %v85_v16  ;;  %v31_v23 = vld [vmem:[%s7098_s0 + $0x20] sm:$0xff]  ;;  %v4126_v35 = vld [vmem:[%s7099_s3 + $0x30] sm:$0xf] }
  0x15   :  { %v32_v24 = vld [vmem:[%s7098_s0 + $0x28] sm:$0xff]  ;;  %v4848_v25 = vld [vmem:[%s7100_s2] ss:$0 sm:$0xff]  ;;  %v129_v38 = vld [vmem:[%s7098_s0 + $0x330] sm:$0xff] }
  0x16   :  { %1282 = vmatpush.bf16.msrb.mxu1 %v4135_v3  ;;  %1691 = vmatpush.bf16.msrb.mxu2 %v4139_v15  ;;  %v189_v26 = vpack.c.bf16 %v32_v24, %v31_v23  ;;  %v87_v31 = vld [vmem:[%s7098_s0 + $0x1e0] sm:$0xff]  ;;  %v130_v39 = vld [vmem:[%s7098_s0 + $0x338] sm:$0xff]  ;;  %v33_v49 = vld [vmem:[%s7098_s0 + $0x30] sm:$0xff] }
  0x17   :  { %v34_v50 = vld [vmem:[%s7098_s0 + $0x38] sm:$0xff]  ;;  %v4236_v1 = vld [vmem:[%s7099_s3 + $0x34] sm:$0xf]  ;;  %v131_v4 = vld [vmem:[%s7098_s0 + $0x340] sm:$0xff] }
  0x18   :  { %v190_v51 = vpack.c.bf16 %v34_v50, %v33_v49  ;;  %v4261_v52 = vld [vmem:[%s7101_s5 + $0x78] sm:$0xff]  ;;  %v132_v5 = vld [vmem:[%s7098_s0 + $0x348] sm:$0xff]  ;;  %v35_v16 = vld [vmem:[%s7098_s0 + $0x40] sm:$0xff] }
  0x19   :  { %4042 = vmatmul.msk.bf16.gmra.mxu1 %vm287_vm0, %v209_v21  ;;  %4063 = vmatmul.msk.bf16.gmra.mxu2 %vm287_vm0, %v230_v22  ;;  %v237_v21 = vpack.c.bf16 %v128_v19, %v127_v18  ;;  %v4128_v2 = vld [vmem:[%s7099_s3 + $0x38] sm:$0xf0]  ;;  %v36_v17 = vld [vmem:[%s7098_s0 + $0x48] sm:$0xff] }
  0x1a   :  { %3114 = vmatpush.bf16.msrb.mxu0 %v4261_v52  ;;  %v90_v3 = vld [vmem:[%s7098_s0 + $0x1f8] sm:$0xff]  ;;  %v4131_v6 = vor.u32 %v4236_v1, %v4128_v2  ;;  %v191_v18 = vpack.c.bf16 %v36_v17, %v35_v16  ;;  %v156_v52 = vld [vmem:[%s7098_s0 + $0x408] sm:$0xff]  ;;  %v4234_v16 = vld [vmem:[%s7099_s3 + $0x24] sm:$0xf] }
  0x1b   :  { %v4253_v15 = vld [vmem:[%s7101_s5 + $0x38] sm:$0xff]  ;;  %v136_v1 = vld [vmem:[%s7098_s0 + $0x368] sm:$0xff] }
  0x1c   :  { %1692 = vmatpush.bf16.msrb.mxu2 %v4131_v6  ;;  %2705 = vmatpush.bf16.msrb.mxu3 %v4253_v15  ;;  %v4120_v17 = vld [vmem:[%s7099_s3 + $0x28] sm:$0xf0] }
  0x23   :  { %4021 = vmatmul.msk.bf16.gmra.mxu0 %vm287_vm0, %v188_v12  ;;  %v239_v12 = vpack.c.bf16 %v132_v5, %v131_v4 }
  0x29   :  { %4043 = vmatmul.msk.bf16.gmra.mxu1 %vm287_vm0, %v210_v27  ;;  %4064 = vmatmul.msk.bf16.gmra.mxu2 %vm287_vm0, %v231_v28 }
  0x33   :  { %4022 = vmatmul.msk.bf16.gmra.mxu0 %vm287_vm0, %v189_v26 }
  0x39   :  { %4044 = vmatmul.msk.bf16.gmra.mxu1 %vm287_vm0, %v211_v36  ;;  %4065 = vmatmul.msk.bf16.gmra.mxu2 %vm287_vm0, %v232_v37  ;;  %v4237_v36 = vld [vmem:[%s7099_s3 + $0x34] sm:$0xf0]  ;;  %v88_v37 = vld [vmem:[%s7098_s0 + $0x1e8] sm:$0xff] }
  0x3a   :  { %v4127_v40 = vor.u32 %v4237_v36, %v4126_v35 }
  0x3c   :  { %1283 = vmatpush.bf16.msrb.mxu1 %v4127_v40 }
  0x43   :  { %4023 = vmatmul.msk.bf16.gmra.mxu0 %vm287_vm0, %v190_v51  ;;  %v155_v51 = vld [vmem:[%s7098_s0 + $0x400] sm:$0xff] }
  0x49   :  { %4045 = vmatmul.msk.bf16.gmra.mxu1 %vm287_vm0, %v212_v45  ;;  %4066 = vmatmul.msk.bf16.gmra.mxu2 %vm287_vm0, %v233_v46  ;;  %v217_v45 = vpack.c.bf16 %v88_v37, %v87_v31  ;;  %v238_v46 = vpack.c.bf16 %v130_v39, %v129_v38  ;;  %v91_v31 = vld [vmem:[%s7098_s0 + $0x200] sm:$0xff] }
  0x53   :  { %4024 = vmatmul.msk.bf16.gmra.mxu0 %vm287_vm0, %v191_v18 }
  0x59   :  { %4046 = vmatmul.msk.bf16.gmra.mxu1 %vm287_vm0, %v213_v54  ;;  %4067 = vmatmul.msk.bf16.gmra.mxu2 %vm287_vm0, %v234_v55  ;;  %v151_v54 = vld [vmem:[%s7098_s0 + $0x3e0] sm:$0xff]  ;;  %v152_v55 = vld [vmem:[%s7098_s0 + $0x3e8] sm:$0xff] }
  0x5a   :  { %v249_v56 = vpack.c.bf16 %v152_v55, %v151_v54  ;;  %v251_v54 = vpack.c.bf16 %v156_v52, %v155_v51  ;;  %v159_v51 = vld [vmem:[%s7098_s0 + $0x420] sm:$0xff]  ;;  %v160_v52 = vld [vmem:[%s7098_s0 + $0x428] sm:$0xff] }
  0x5c   :  { %4082 = vmatmul.msk.bf16.vlgmr.msra.gmra.mxu3 %vm287_vm0, %v249_v56 }
  0x69   :  { %4047 = vmatmul.msk.bf16.gmra.mxu1 %vm287_vm0, %v214_v60  ;;  %4068 = vmatmul.msk.bf16.gmra.mxu2 %vm287_vm0, %v235_v61  ;;  %v89_v61 = vld [vmem:[%s7098_s0 + $0x1f0] sm:$0xff] }
  0x6a   :  { %v218_v11 = vpack.c.bf16 %v90_v3, %v89_v61 }
  0x79   :  { %4048 = vmatmul.msk.bf16.gmra.mxu1 %vm287_vm0, %v215_v8  ;;  %4069 = vmatmul.msk.bf16.gmra.mxu2 %vm287_vm0, %v236_v9 }
  0x86   :  { %v642_v22 = vpop.f32.mrf.mxu1 }
  0x87   :  { %v643_v28 = vadd.f32 %v4848_v25, %v642_v22 }
  0x89   :  { %4049 = vmatmul.msk.bf16.gmra.mxu1 %vm287_vm0, %v216_v20  ;;  %4070 = vmatmul.msk.bf16.gmra.mxu2 %vm287_vm0, %v237_v21  ;;  %v979_v32 = vmax.f32 %v643_v28, 0.0  ;;  %v153_v20 = vld [vmem:[%s7098_s0 + $0x3f0] sm:$0xff]  ;;  %v154_v21 = vld [vmem:[%s7098_s0 + $0x3f8] sm:$0xff] }
  0x8a   :  { %v250_v22 = vpack.c.bf16 %v154_v21, %v153_v20  ;;  %v4123_v20 = vor.u32 %v4234_v16, %v4120_v17  ;;  %v157_v21 = vld [vmem:[%s7098_s0 + $0x410] sm:$0xff]  ;;  %v43_v16 = vld [vmem:[%s7098_s0 + $0x80] sm:$0xff]  ;;  %v44_v17 = vld [vmem:[%s7098_s0 + $0x88] sm:$0xff] }
  0x8c   :  { %v747_v27 = vpop.f32.mrf.mxu2  ;;  %4083 = vmatmul.msk.bf16.gmra.mxu3 %vm287_vm0, %v250_v22  ;;  %v158_v22 = vld [vmem:[%s7098_s0 + $0x418] sm:$0xff]  ;;  %1693 = vmatpush.bf16.msrb.mxu2 %v4123_v20  ;;  %v195_v20 = vpack.c.bf16 %v44_v17, %v43_v16  ;;  %v144_v16 = vld [vmem:[%s7098_s0 + $0x3a8] sm:$0xff] }
  0x8d   :  { %v748_v33 = vadd.f32 %v4848_v25, %v747_v27 }
  0x8e   :  { %v644_v29 = vpop.f32.mrf.mxu1 }
  0x8f   :  { %v645_v30 = vadd.f32 %v4848_v25, %v644_v29  ;;  %v1021_v43 = vmax.f32 %v748_v33, 0.0  ;;  %v133_v33 = vld [vmem:[%s7098_s0 + $0x350] sm:$0xff] }
  0x91   :  { %v980_v34 = vmax.f32 %v645_v30, 0.0 }
  0x93   :  { %v4874_v41 = vpack.c.bf16 %v980_v34, %v979_v32  ;;  %v92_v32 = vld [vmem:[%s7098_s0 + $0x208] sm:$0xff]  ;;  %v134_v34 = vld [vmem:[%s7098_s0 + $0x358] sm:$0xff] }
  0x94   :  { %v749_v42 = vpop.f32.mrf.mxu2  ;;  %v219_v39 = vpack.c.bf16 %v92_v32, %v91_v31  ;;  %v240_v40 = vpack.c.bf16 %v134_v34, %v133_v33  ;;  %v95_v32 = vld [vmem:[%s7098_s0 + $0x220] sm:$0xff]  ;;  %v96_v33 = vld [vmem:[%s7098_s0 + $0x228] sm:$0xff]  ;;  %v137_v34 = vld [vmem:[%s7098_s0 + $0x370] sm:$0xff] }
  0x95   :  { %v750_v44 = vadd.f32 %v4848_v25, %v749_v42 }
  0x96   :  { %v647_v47 = vpop.f32.mrf.mxu1 }
  0x97   :  { %v1022_v48 = vmax.f32 %v750_v44, 0.0  ;;  %v648_v58 = vadd.f32 %v4848_v25, %v647_v47  ;;  %v37_v44 = vld [vmem:[%s7098_s0 + $0x50] sm:$0xff]  ;;  %v4118_v47 = vld [vmem:[%s7099_s3 + $0x20] sm:$0xf] }
  0x99   :  { %4050 = vmatmul.msk.bf16.gmra.mxu1 %vm287_vm0, %v217_v45  ;;  %4071 = vmatmul.msk.bf16.gmra.mxu2 %vm287_vm0, %v238_v46  ;;  %v4888_v53 = vpack.c.bf16 %v1022_v48, %v1021_v43  ;;  %v981_v62 = vmax.f32 %v648_v58, 0.0  ;;  %v38_v45 = vld [vmem:[%s7098_s0 + $0x58] sm:$0xff]  ;;  %v4235_v48 = vld [vmem:[%s7099_s3 + $0x24] sm:$0xf0] }
  0x9a   :  { %v192_v46 = vpack.c.bf16 %v38_v45, %v37_v44  ;;  %v4119_v50 = vor.u32 %v4235_v48, %v4118_v47  ;;  %v42_v47 = vld [vmem:[%s7098_s0 + $0x78] sm:$0xff] }
  0x9c   :  { %v752_v57 = vpop.f32.mrf.mxu2  ;;  %4025 = vmatmul.msk.bf16.gmra.mxu0 %vm287_vm0, %v192_v46  ;;  %1284 = vmatpush.bf16.msrb.mxu1 %v4119_v50  ;;  %v41_v46 = vld [vmem:[%s7098_s0 + $0x70] sm:$0xff] }
  0x9d   :  { %v753_v63 = vadd.f32 %v4848_v25, %v752_v57  ;;  %4084 = vmatmul.msk.bf16.gmra.mxu3 %vm287_vm0, %v251_v54  ;;  %v194_v48 = vpack.c.bf16 %v42_v47, %v41_v46  ;;  %v253_v54 = vpack.c.bf16 %v160_v52, %v159_v51 }
  0x9e   :  { %v649_v59 = vpop.f32.mrf.mxu1 }
  0x9f   :  { %v650_v60 = vadd.f32 %v4848_v25, %v649_v59  ;;  %v1023_v9 = vmax.f32 %v753_v63, 0.0  ;;  %v94_v63 = vld [vmem:[%s7098_s0 + $0x218] sm:$0xff] }
  0xa1   :  { %v982_v0 = vmax.f32 %v650_v60, 0.0 }
  0xa3   :  { %v4919_v7 = vpack.c.bf16 %v982_v0, %v981_v62  ;;  %v93_v62 = vld [vmem:[%s7098_s0 + $0x210] sm:$0xff]  ;;  %v135_v0 = vld [vmem:[%s7098_s0 + $0x360] sm:$0xff] }
  0xa4   :  { %v754_v8 = vpop.f32.mrf.mxu2  ;;  %v220_v6 = vpack.c.bf16 %v94_v63, %v93_v62  ;;  %v97_v62 = vld [vmem:[%s7098_s0 + $0x230] sm:$0xff]  ;;  %v98_v63 = vld [vmem:[%s7098_s0 + $0x238] sm:$0xff] }
  0xa5   :  { %v755_v10 = vadd.f32 %v4848_v25, %v754_v8  ;;  %v241_v8 = vpack.c.bf16 %v136_v1, %v135_v0  ;;  %v139_v0 = vld [vmem:[%s7098_s0 + $0x380] sm:$0xff]  ;;  %v140_v1 = vld [vmem:[%s7098_s0 + $0x388] sm:$0xff] }
  0xa6   :  { %v652_v13 = vpop.f32.mrf.mxu1 }
  0xa7   :  { %v1024_v14 = vmax.f32 %v755_v10, 0.0  ;;  %v653_v24 = vadd.f32 %v4848_v25, %v652_v13  ;;  %v40_v13 = vld [vmem:[%s7098_s0 + $0x68] sm:$0xff] }
  0xa9   :  { %4051 = vmatmul.msk.bf16.gmra.mxu1 %vm287_vm0, %v218_v11  ;;  %4072 = vmatmul.msk.bf16.gmra.mxu2 %vm287_vm0, %v239_v12  ;;  %v4933_v19 = vpack.c.bf16 %v1024_v14, %v1023_v9  ;;  %v983_v28 = vmax.f32 %v653_v24, 0.0  ;;  %v4260_v11 = vld [vmem:[%s7101_s5 + $0x70] sm:$0xff]  ;;  %v39_v12 = vld [vmem:[%s7098_s0 + $0x60] sm:$0xff] }
  0xaa   :  { %v4252_v14 = vld [vmem:[%s7101_s5 + $0x30] sm:$0xff]  ;;  %v193_v15 = vpack.c.bf16 %v40_v13, %v39_v12  ;;  %3115 = vmatpush.bf16.msrb.mxu0 %v4260_v11  ;;  %v4233_v13 = vld [vmem:[%s7099_s3 + $0x14] sm:$0xf0] }
  0xab   :  { %2706 = vmatpush.bf16.msrb.mxu3 %v4252_v14  ;;  %v4110_v12 = vld [vmem:[%s7099_s3 + $0x10] sm:$0xf] }
  0xac   :  { %v757_v23 = vpop.f32.mrf.mxu2  ;;  %4026 = vmatmul.msk.bf16.gmra.mxu0 %vm287_vm0, %v193_v15  ;;  %v4111_v14 = vor.u32 %v4233_v13, %v4110_v12  ;;  %v5093_v15 = vpop.f32.mrf.mxu0  ;;  %v101_v12 = vld [vmem:[%s7098_s0 + $0x250] sm:$0xff]  ;;  %v102_v13 = vld [vmem:[%s7098_s0 + $0x258] sm:$0xff] }
  0xad   :  { %v758_v29 = vadd.f32 %v4848_v25, %v757_v23  ;;  %v252_v23 = vpack.c.bf16 %v158_v22, %v157_v21  ;;  %v161_v22 = vld [vmem:[%s7098_s0 + $0x430] sm:$0xff] }
  0xae   :  { %v654_v26 = vpop.f32.mrf.mxu1  ;;  %1285 = vmatpush.bf16.msrb.mxu1 %v4111_v14  ;;  %v143_v14 = vld [vmem:[%s7098_s0 + $0x3a0] sm:$0xff] }
  0xaf   :  { %v655_v27 = vadd.f32 %v4848_v25, %v654_v26  ;;  %v1025_v37 = vmax.f32 %v758_v29, 0.0  ;;  %4085 = vmatmul.msk.bf16.gmra.mxu3 %vm287_vm0, %v252_v23  ;;  %v162_v23 = vld [vmem:[%s7098_s0 + $0x438] sm:$0xff] }
  0xb1   :  { %v984_v30 = vmax.f32 %v655_v27, 0.0 }
  0xb3   :  { %v4958_v35 = vpack.c.bf16 %v984_v30, %v983_v28 }
  0xb4   :  { %v759_v36 = vpop.f32.mrf.mxu2 }
  0xb5   :  { %v760_v38 = vadd.f32 %v4848_v25, %v759_v36  ;;  %v138_v36 = vld [vmem:[%s7098_s0 + $0x378] sm:$0xff] }
  0xb6   :  { %v657_v42 = vpop.f32.mrf.mxu1 }
  0xb7   :  { %v1026_v43 = vmax.f32 %v760_v38, 0.0  ;;  %v658_v56 = vadd.f32 %v4848_v25, %v657_v42  ;;  %v221_v42 = vpack.c.bf16 %v96_v33, %v95_v32  ;;  %v99_v32 = vld [vmem:[%s7098_s0 + $0x240] sm:$0xff]  ;;  %v5121_v33 = vpop.f32.mrf.mxu0 }
  0xb9   :  { %4052 = vmatmul.msk.bf16.gmra.mxu1 %vm287_vm0, %v219_v39  ;;  %4073 = vmatmul.msk.bf16.gmra.mxu2 %vm287_vm0, %v240_v40  ;;  %v4975_v49 = vpack.c.bf16 %v1026_v43, %v1025_v37  ;;  %v985_v59 = vmax.f32 %v658_v56, 0.0  ;;  %v242_v43 = vpack.c.bf16 %v138_v36, %v137_v34 }
  0xbc   :  { %v762_v55 = vpop.f32.mrf.mxu2  ;;  %4027 = vmatmul.msk.bf16.gmra.mxu0 %vm287_vm0, %v194_v48 }
  0xbd   :  { %v763_v60 = vadd.f32 %v4848_v25, %v762_v55 }
  0xbe   :  { %v659_v57 = vpop.f32.mrf.mxu1 }
  0xbf   :  { %v660_v58 = vadd.f32 %v4848_v25, %v659_v57  ;;  %v1027_v4 = vmax.f32 %v763_v60, 0.0  ;;  %4086 = vmatmul.msk.bf16.gmra.mxu3 %vm287_vm0, %v253_v54 }
  0xc1   :  { %v986_v61 = vmax.f32 %v660_v58, 0.0 }
  0xc3   :  { %v5000_v2 = vpack.c.bf16 %v986_v61, %v985_v59 }
  0xc4   :  { %v764_v3 = vpop.f32.mrf.mxu2 }
  0xc5   :  { %v765_v5 = vadd.f32 %v4848_v25, %v764_v3 }
  0xc6   :  { %v662_v9 = vpop.f32.mrf.mxu1 }
  0xc7   :  { %v1028_v10 = vmax.f32 %v765_v5, 0.0  ;;  %v663_v26 = vadd.f32 %v4848_v25, %v662_v9  ;;  %v243_v9 = vpack.c.bf16 %v140_v1, %v139_v0 }
  0xc9   :  { %4053 = vmatmul.msk.bf16.gmra.mxu1 %vm287_vm0, %v220_v6  ;;  %4074 = vmatmul.msk.bf16.gmra.mxu2 %vm287_vm0, %v241_v8  ;;  %v5023_v18 = vpack.c.bf16 %v1028_v10, %v1027_v4  ;;  %v987_v29 = vmax.f32 %v663_v26, 0.0  ;;  %v222_v8 = vpack.c.bf16 %v98_v63, %v97_v62  ;;  %v163_v62 = vld [vmem:[%s7098_s0 + $0x440] sm:$0xff]  ;;  %v164_v63 = vld [vmem:[%s7098_s0 + $0x448] sm:$0xff] }
  0xca   :  { %v255_v0 = vpack.c.bf16 %v164_v63, %v163_v62  ;;  %v146_v62 = vld [vmem:[%s7098_s0 + $0x3b8] sm:$0xff] }
  0xcc   :  { %v767_v24 = vpop.f32.mrf.mxu2  ;;  %4028 = vmatmul.msk.bf16.gmra.mxu0 %vm287_vm0, %v195_v20 }
  0xcd   :  { %v768_v30 = vadd.f32 %v4848_v25, %v767_v24  ;;  %v254_v24 = vpack.c.bf16 %v162_v23, %v161_v22 }
  0xce   :  { %v664_v27 = vpop.f32.mrf.mxu1 }
  0xcf   :  { %v665_v28 = vadd.f32 %v4848_v25, %v664_v27  ;;  %v1029_v39 = vmax.f32 %v768_v30, 0.0  ;;  %4087 = vmatmul.msk.bf16.gmra.mxu3 %vm287_vm0, %v254_v24  ;;  %v4251_v30 = vld [vmem:[%s7101_s5 + $0x28] sm:$0xff]  ;;  %v224_v24 = vpack.c.bf16 %v102_v13, %v101_v12  ;;  %v49_v13 = vld [vmem:[%s7098_s0 + $0xb0] sm:$0xff] }
  0xd0   :  { %2707 = vmatpush.bf16.msrb.mxu3 %v4251_v30  ;;  %v47_v30 = vld [vmem:[%s7098_s0 + $0xa0] sm:$0xff] }
  0xd1   :  { %v988_v31 = vmax.f32 %v665_v28, 0.0 }
  0xd3   :  { %v5048_v37 = vpack.c.bf16 %v988_v31, %v987_v29 }
  0xd4   :  { %v769_v38 = vpop.f32.mrf.mxu2 }
  0xd5   :  { %v770_v40 = vadd.f32 %v4848_v25, %v769_v38  ;;  %v5127_v38 = vld [vmem:[%s7101_s5 + $0x68] sm:$0xff] }
  0xd6   :  { %v667_v44 = vpop.f32.mrf.mxu1  ;;  %3116 = vmatpush.bf16.msrb.mxu0 %v5127_v38 }
  0xd7   :  { %v1030_v45 = vmax.f32 %v770_v40, 0.0  ;;  %v668_v56 = vadd.f32 %v4848_v25, %v667_v44  ;;  %v4112_v40 = vld [vmem:[%s7099_s3 + $0x18] sm:$0xf0] }
  0xd8   :  { %v142_v44 = vld [vmem:[%s7098_s0 + $0x398] sm:$0xff] }
  0xd9   :  { %4054 = vmatmul.msk.bf16.gmra.mxu1 %vm287_vm0, %v221_v42  ;;  %4075 = vmatmul.msk.bf16.gmra.mxu2 %vm287_vm0, %v242_v43  ;;  %v5059_v50 = vpack.c.bf16 %v1030_v45, %v1029_v39  ;;  %v989_v59 = vmax.f32 %v668_v56, 0.0  ;;  %v4232_v39 = vld [vmem:[%s7099_s3 + $0x14] sm:$0xf]  ;;  %v100_v42 = vld [vmem:[%s7098_s0 + $0x248] sm:$0xff] }
  0xda   :  { %v141_v43 = vld [vmem:[%s7098_s0 + $0x390] sm:$0xff]  ;;  %v4115_v45 = vor.u32 %v4232_v39, %v4112_v40  ;;  %v223_v52 = vpack.c.bf16 %v100_v42, %v99_v32  ;;  %v166_v39 = vld [vmem:[%s7098_s0 + $0x458] sm:$0xff] }
  0xdb   :  { %v244_v54 = vpack.c.bf16 %v142_v44, %v141_v43 }
  0xdc   :  { %v772_v55 = vpop.f32.mrf.mxu2  ;;  %1694 = vmatpush.bf16.msrb.mxu2 %v4115_v45 }
  0xdd   :  { %v773_v60 = vadd.f32 %v4848_v25, %v772_v55 }
  0xde   :  { %v669_v57 = vpop.f32.mrf.mxu1 }
  0xdf   :  { %v670_v58 = vadd.f32 %v4848_v25, %v669_v57  ;;  %v1031_v5 = vmax.f32 %v773_v60, 0.0  ;;  %v5148_v57 = vpop.f32.mrf.mxu0  ;;  %4088 = vmatmul.msk.bf16.gmra.mxu3 %vm287_vm0, %v255_v0 }
  0xe1   :  { %v990_v61 = vmax.f32 %v670_v58, 0.0  ;;  %v45_v58 = vld [vmem:[%s7098_s0 + $0x90] sm:$0xff] }
  0xe3   :  { %v5084_v3 = vpack.c.bf16 %v990_v61, %v989_v59  ;;  %v46_v59 = vld [vmem:[%s7098_s0 + $0x98] sm:$0xff] }
  0xe4   :  { %v774_v4 = vpop.f32.mrf.mxu2  ;;  %v196_v60 = vpack.c.bf16 %v46_v59, %v45_v58  ;;  %v4250_v58 = vld [vmem:[%s7101_s5 + $0x20] sm:$0xff]  ;;  %v104_v59 = vld [vmem:[%s7098_s0 + $0x268] sm:$0xff] }
  0xe5   :  { %v775_v6 = vadd.f32 %v4848_v25, %v774_v4  ;;  %2708 = vmatpush.bf16.msrb.mxu3 %v4250_v58 }
  0xe6   :  { %v672_v10 = vpop.f32.mrf.mxu1  ;;  %4029 = vmatmul.msk.bf16.gmra.mxu0 %vm287_vm0, %v196_v60  ;;  %v145_v60 = vld [vmem:[%s7098_s0 + $0x3b0] sm:$0xff] }
  0xe7   :  { %v1032_v11 = vmax.f32 %v775_v6, 0.0  ;;  %v673_v26 = vadd.f32 %v4848_v25, %v672_v10 }
  0xe9   :  { %4055 = vmatmul.msk.bf16.gmra.mxu1 %vm287_vm0, %v222_v8  ;;  %4076 = vmatmul.msk.bf16.gmra.mxu2 %vm287_vm0, %v243_v9  ;;  %v5103_v21 = vpack.c.bf16 %v1032_v11, %v1031_v5  ;;  %v991_v31 = vmax.f32 %v673_v26, 0.0  ;;  %v5170_v8 = vpop.f32.mrf.mxu0  ;;  %v245_v26 = vpack.c.bf16 %v144_v16, %v143_v14  ;;  %v50_v14 = vld [vmem:[%s7098_s0 + $0xb8] sm:$0xff]  ;;  %v5250_v16 = vld [vmem:[%s7101_s5 + $0x60] sm:$0xff] }
  0xea   :  { %3117 = vmatpush.bf16.msrb.mxu0 %v5250_v16 }
  0xec   :  { %v777_v27 = vpop.f32.mrf.mxu2 }
  0xed   :  { %v778_v34 = vadd.f32 %v4848_v25, %v777_v27 }
  0xee   :  { %v674_v28 = vpop.f32.mrf.mxu1 }
  0xef   :  { %v675_v29 = vadd.f32 %v4848_v25, %v674_v28  ;;  %v1033_v48 = vmax.f32 %v778_v34, 0.0 }
  0xf1   :  { %v992_v36 = vmax.f32 %v675_v29, 0.0  ;;  %v5188_v29 = vpop.f32.mrf.mxu0 }
  0xf3   :  { %v5145_v46 = vpack.c.bf16 %v992_v36, %v991_v31  ;;  %v48_v31 = vld [vmem:[%s7098_s0 + $0xa8] sm:$0xff]  ;;  %v165_v36 = vld [vmem:[%s7098_s0 + $0x450] sm:$0xff] }
  0xf4   :  { %v779_v47 = vpop.f32.mrf.mxu2  ;;  %v197_v32 = vpack.c.bf16 %v48_v31, %v47_v30  ;;  %v256_v40 = vpack.c.bf16 %v166_v39, %v165_v36 }
  0xf5   :  { %v780_v51 = vadd.f32 %v4848_v25, %v779_v47 }
  0xf6   :  { %v677_v55 = vpop.f32.mrf.mxu1  ;;  %4030 = vmatmul.msk.bf16.gmra.mxu0 %vm287_vm0, %v197_v32  ;;  %4089 = vmatmul.msk.bf16.gmra.mxu3 %vm287_vm0, %v256_v40 }
  0xf7   :  { %v1034_v56 = vmax.f32 %v780_v51, 0.0  ;;  %v678_v4 = vadd.f32 %v4848_v25, %v677_v55  ;;  %v4102_v55 = vld [vmem:[%s7099_s3] sm:$0xf] }
  0xf9   :  { %4056 = vmatmul.msk.bf16.gmra.mxu1 %vm287_vm0, %v223_v52  ;;  %4077 = vmatmul.msk.bf16.gmra.mxu2 %vm287_vm0, %v244_v54  ;;  %v5158_v61 = vpack.c.bf16 %v1034_v56, %v1033_v48  ;;  %v993_v9 = vmax.f32 %v678_v4, 0.0  ;;  %v103_v48 = vld [vmem:[%s7098_s0 + $0x260] sm:$0xff]  ;;  %v5213_v51 = vpop.f32.mrf.mxu0  ;;  %v4231_v56 = vld [vmem:[%s7099_s3 + $0x4] sm:$0xf0] }
  0xfa   :  { %v4103_v63 = vor.u32 %v4231_v56, %v4102_v55 }
  0xfc   :  { %v782_v1 = vpop.f32.mrf.mxu2  ;;  %1286 = vmatpush.bf16.msrb.mxu1 %v4103_v63 }
  0xfd   :  { %v783_v10 = vadd.f32 %v4848_v25, %v782_v1 }
  0xfe   :  { %v679_v5 = vpop.f32.mrf.mxu1 }
  0xff   :  { %v680_v6 = vadd.f32 %v4848_v25, %v679_v5  ;;  %v1035_v22 = vmax.f32 %v783_v10, 0.0 }
 0x101   :  { %v994_v11 = vmax.f32 %v680_v6, 0.0  ;;  %v225_v6 = vpack.c.bf16 %v104_v59, %v103_v48  ;;  %v5237_v12 = vpop.f32.mrf.mxu0  ;;  %v106_v48 = vld [vmem:[%s7098_s0 + $0x278] sm:$0xff] }
 0x103   :  { %v5185_v17 = vpack.c.bf16 %v994_v11, %v993_v9  ;;  %v246_v9 = vpack.c.bf16 %v146_v62, %v145_v60 }
 0x104   :  { %v784_v20 = vpop.f32.mrf.mxu2 }
 0x105   :  { %v785_v23 = vadd.f32 %v4848_v25, %v784_v20  ;;  %v198_v20 = vpack.c.bf16 %v50_v14, %v49_v13 }
 0x106   :  { %v682_v27 = vpop.f32.mrf.mxu1 }
 0x107   :  { %v1036_v28 = vmax.f32 %v785_v23, 0.0  ;;  %v683_v42 = vadd.f32 %v4848_v25, %v682_v27  ;;  %v4104_v23 = vld [vmem:[%s7099_s3 + $0x8] sm:$0xf0]  ;;  %v167_v27 = vld [vmem:[%s7098_s0 + $0x460] sm:$0xff]  ;;  %4031 = vmatmul.msk.bf16.gmra.mxu0 %vm287_vm0, %v198_v20  ;;  %v169_v20 = vld [vmem:[%s7098_s0 + $0x470] sm:$0xff] }
 0x109   :  { %4057 = vmatmul.msk.bf16.gmra.mxu1 %vm287_vm0, %v224_v24  ;;  %4078 = vmatmul.msk.bf16.gmra.mxu2 %vm287_vm0, %v245_v26  ;;  %v5198_v34 = vpack.c.bf16 %v1036_v28, %v1035_v22  ;;  %v995_v47 = vmax.f32 %v683_v42, 0.0  ;;  %v4230_v22 = vld [vmem:[%s7099_s3 + $0x4] sm:$0xf]  ;;  %v168_v28 = vld [vmem:[%s7098_s0 + $0x468] sm:$0xff]  ;;  %v5271_v40 = vpop.f32.mrf.mxu0  ;;  %v847_v42 = vpop.f32.mrf.mxu3 }
 0x10a   :  { %v4107_v26 = vor.u32 %v4230_v22, %v4104_v23  ;;  %v257_v30 = vpack.c.bf16 %v168_v28, %v167_v27  ;;  %v848_v62 = vadd.f32 %v4848_v25, %v847_v42  ;;  %v170_v22 = vld [vmem:[%s7098_s0 + $0x478] sm:$0xff] }
 0x10b   :  { %v258_v27 = vpack.c.bf16 %v170_v22, %v169_v20 }
 0x10c   :  { %v787_v43 = vpop.f32.mrf.mxu2  ;;  %1695 = vmatpush.bf16.msrb.mxu2 %v4107_v26  ;;  %4090 = vmatmul.msk.bf16.gmra.mxu3 %vm287_vm0, %v257_v30 }
 0x10d   :  { %v788_v52 = vadd.f32 %v4848_v25, %v787_v43 }
 0x10e   :  { %v684_v44 = vpop.f32.mrf.mxu1 }
 0x10f   :  { %v685_v45 = vadd.f32 %v4848_v25, %v684_v44  ;;  %v1037_v4 = vmax.f32 %v788_v52, 0.0  ;;  %v147_v52 = vld [vmem:[%s7098_s0 + $0x3c0] sm:$0xff] }
 0x111   :  { %v996_v54 = vmax.f32 %v685_v45, 0.0  ;;  %v105_v45 = vld [vmem:[%s7098_s0 + $0x270] sm:$0xff] }
 0x112   :  { %v226_v59 = vpack.c.bf16 %v106_v48, %v105_v45  ;;  %v107_v45 = vld [vmem:[%s7098_s0 + $0x280] sm:$0xff]  ;;  %v108_v48 = vld [vmem:[%s7098_s0 + $0x288] sm:$0xff] }
 0x113   :  { %v5234_v0 = vpack.c.bf16 %v996_v54, %v995_v47  ;;  %v148_v54 = vld [vmem:[%s7098_s0 + $0x3c8] sm:$0xff] }
 0x114   :  { %v789_v1 = vpop.f32.mrf.mxu2  ;;  %v247_v60 = vpack.c.bf16 %v148_v54, %v147_v52  ;;  %v149_v52 = vld [vmem:[%s7098_s0 + $0x3d0] sm:$0xff]  ;;  %v150_v54 = vld [vmem:[%s7098_s0 + $0x3d8] sm:$0xff] }
 0x115   :  { %v790_v5 = vadd.f32 %v4848_v25, %v789_v1 }
 0x116   :  { %v687_v10 = vpop.f32.mrf.mxu1 }
 0x117   :  { %v1038_v11 = vmax.f32 %v790_v5, 0.0  ;;  %v688_v32 = vadd.f32 %v4848_v25, %v687_v10  ;;  %v5290_v5 = vpop.f32.mrf.mxu0  ;;  %v52_v10 = vld [vmem:[%s7098_s0 + $0xc8] sm:$0xff] }
 0x119   :  { %4058 = vmatmul.msk.bf16.gmra.mxu1 %vm287_vm0, %v225_v6  ;;  %4079 = vmatmul.msk.bf16.gmra.mxu2 %vm287_vm0, %v246_v9  ;;  %v5258_v24 = vpack.c.bf16 %v1038_v11, %v1037_v4  ;;  %v997_v43 = vmax.f32 %v688_v32, 0.0  ;;  %v849_v6 = vpop.f32.mrf.mxu3  ;;  %v51_v9 = vld [vmem:[%s7098_s0 + $0xc0] sm:$0xff]  ;;  %v1061_v11 = vmax.f32 %v848_v62, 0.0  ;;  %v248_v62 = vpack.c.bf16 %v150_v54, %v149_v52 }
 0x11a   :  { %v850_v13 = vadd.f32 %v4848_v25, %v849_v6  ;;  %v199_v14 = vpack.c.bf16 %v52_v10, %v51_v9  ;;  %v4249_v9 = vld [vmem:[%s7101_s5 + $0x18] sm:$0xff] }
 0x11b   :  { %2709 = vmatpush.bf16.msrb.mxu3 %v4249_v9 }
 0x11c   :  { %v792_v31 = vpop.f32.mrf.mxu2  ;;  %v1062_v26 = vmax.f32 %v850_v13, 0.0  ;;  %4032 = vmatmul.msk.bf16.gmra.mxu0 %vm287_vm0, %v199_v14  ;;  %4091 = vmatmul.msk.bf16.gmra.mxu3 %vm287_vm0, %v258_v27  ;;  %v53_v13 = vld [vmem:[%s7098_s0 + $0xd0] sm:$0xff]  ;;  %v54_v14 = vld [vmem:[%s7098_s0 + $0xd8] sm:$0xff]  ;;  %v171_v27 = vld [vmem:[%s7098_s0 + $0x480] sm:$0xff] }
 0x11d   :  { %v793_v47 = vadd.f32 %v4848_v25, %v792_v31 }
 0x11e   :  { %v689_v36 = vpop.f32.mrf.mxu1  ;;  %v5312_v31 = vpack.c.bf16 %v1062_v26, %v1061_v11  ;;  %v200_v26 = vpack.c.bf16 %v54_v14, %v53_v13 }
 0x11f   :  { %v690_v39 = vadd.f32 %v4848_v25, %v689_v36  ;;  %v1039_v63 = vmax.f32 %v793_v47, 0.0 }
 0x120   :  { %7120 = vst [vmem:[#allocation2_spill] sm:$0xff] %v5312_v31 }
 0x121   :  { %v998_v44 = vmax.f32 %v690_v39, 0.0  ;;  %v5315_v39 = vpop.f32.mrf.mxu0  ;;  %v852_v42 = vpop.f32.mrf.mxu3 }
 0x123   :  { %v5286_v55 = vpack.c.bf16 %v998_v44, %v997_v43 }
 0x124   :  { %v794_v56 = vpop.f32.mrf.mxu2 }
 0x125   :  { %v795_v58 = vadd.f32 %v4848_v25, %v794_v56 }
 0x126   :  { %v692_v1 = vpop.f32.mrf.mxu1 }
 0x127   :  { %v1040_v4 = vmax.f32 %v795_v58, 0.0  ;;  %v693_v30 = vadd.f32 %v4848_v25, %v692_v1 }
 0x129   :  { %4059 = vmatmul.msk.bf16.gmra.mxu1 %vm287_vm0, %v226_v59  ;;  %4080 = vmatmul.msk.bf16.gmra.mxu2 %vm287_vm0, %v247_v60  ;;  %v5307_v23 = vpack.c.bf16 %v1040_v4, %v1039_v63  ;;  %v999_v43 = vmax.f32 %v693_v30, 0.0  ;;  %v227_v60 = vpack.c.bf16 %v108_v48, %v107_v45  ;;  %v853_v63 = vadd.f32 %v4848_v25, %v852_v42  ;;  %v5337_v10 = vpop.f32.mrf.mxu0  ;;  %v854_v11 = vpop.f32.mrf.mxu3 }
 0x12a   :  { %v855_v22 = vadd.f32 %v4848_v25, %v854_v11  ;;  %v540_v48 = vadd.f32 %v4848_v25, %v5121_v33  ;;  %v110_v33 = vld [vmem:[%s7098_s0 + $0x298] sm:$0xff] }
 0x12b   :  { %v1063_v20 = vmax.f32 %v853_v63, 0.0 }
 0x12c   :  { %v797_v28 = vpop.f32.mrf.mxu2  ;;  %4033 = vmatmul.msk.bf16.gmra.mxu0 %vm287_vm0, %v200_v26 }
 0x12d   :  { %v798_v47 = vadd.f32 %v4848_v25, %v797_v28  ;;  %v172_v28 = vld [vmem:[%s7098_s0 + $0x488] sm:$0xff] }
 0x12e   :  { %v694_v32 = vpop.f32.mrf.mxu1 }
 0x12f   :  { %v695_v36 = vadd.f32 %v4848_v25, %v694_v32  ;;  %v1041_v1 = vmax.f32 %v798_v47, 0.0  ;;  %v1064_v32 = vmax.f32 %v855_v22, 0.0  ;;  %v538_v47 = vadd.f32 %v4848_v25, %v5093_v15  ;;  %v109_v15 = vld [vmem:[%s7098_s0 + $0x290] sm:$0xff] }
 0x130   :  { %v228_v13 = vpack.c.bf16 %v110_v33, %v109_v15 }
 0x131   :  { %v1000_v44 = vmax.f32 %v695_v36, 0.0  ;;  %v259_v36 = vpack.c.bf16 %v172_v28, %v171_v27  ;;  %v5366_v54 = vpop.f32.mrf.mxu0 }
 0x133   :  { %v5330_v56 = vpack.c.bf16 %v1000_v44, %v999_v43  ;;  %4092 = vmatmul.msk.bf16.gmra.mxu3 %vm287_vm0, %v259_v36  ;;  %v5359_v44 = vpack.c.bf16 %v1064_v32, %v1063_v20  ;;  %v55_v36 = vld [vmem:[%s7098_s0 + $0xe0] sm:$0xff] }
 0x134   :  { %v799_v58 = vpop.f32.mrf.mxu2 }
 0x135   :  { %v800_v59 = vadd.f32 %v4848_v25, %v799_v58  ;;  %7121 = vst [vmem:[#allocation3_spill] sm:$0xff] %v5359_v44  ;;  %v857_v58 = vpop.f32.mrf.mxu3 }
 0x136   :  { %v697_v4 = vpop.f32.mrf.mxu1  ;;  %v858_v14 = vadd.f32 %v4848_v25, %v857_v58 }
 0x137   :  { %v1042_v6 = vmax.f32 %v800_v59, 0.0  ;;  %v698_v43 = vadd.f32 %v4848_v25, %v697_v4  ;;  %v938_v4 = vmax.f32 %v540_v48, 0.0  ;;  %v173_v48 = vld [vmem:[%s7098_s0 + $0x490] sm:$0xff] }
 0x139   :  { %4060 = vmatmul.msk.bf16.gmra.mxu1 %vm287_vm0, %v227_v60  ;;  %4081 = vmatmul.msk.bf16.gmra.mxu2 %vm287_vm0, %v248_v62  ;;  %v5354_v30 = vpack.c.bf16 %v1042_v6, %v1041_v1  ;;  %v1001_v59 = vmax.f32 %v698_v43, 0.0  ;;  %v5371_v62 = vld [vmem:[%s7101_s5 + $0x58] sm:$0xff]  ;;  %v937_v1 = vmax.f32 %v538_v47, 0.0  ;;  %v5385_v28 = vpop.f32.mrf.mxu0  ;;  %v1065_v43 = vmax.f32 %v858_v14, 0.0 }
 0x13a   :  { %3118 = vmatpush.bf16.msrb.mxu0 %v5371_v62 }
 0x13b   :  { %v1097_v26 = vpack.c.bf16 %v938_v4, %v937_v1  ;;  %v543_v4 = vadd.f32 %v4848_v25, %v5148_v57 }
 0x13c   :  { %v802_v42 = vpop.f32.mrf.mxu2 }
 0x13d   :  { %v803_v63 = vadd.f32 %v4848_v25, %v802_v42  ;;  %v859_v32 = vpop.f32.mrf.mxu3  ;;  %v56_v42 = vld [vmem:[%s7098_s0 + $0xe8] sm:$0xff] }
 0x13e   :  { %v699_v45 = vpop.f32.mrf.mxu1  ;;  %v201_v47 = vpack.c.bf16 %v56_v42, %v55_v36 }
 0x13f   :  { %v700_v52 = vadd.f32 %v4848_v25, %v699_v45  ;;  %v1043_v20 = vmax.f32 %v803_v63, 0.0  ;;  %v860_v45 = vadd.f32 %v4848_v25, %v859_v32  ;;  %v939_v32 = vmax.f32 %v543_v4, 0.0 }
 0x140   :  { %4034 = vmatmul.msk.bf16.gmra.mxu0 %vm287_vm0, %v201_v47 }
 0x141   :  { %v1002_v60 = vmax.f32 %v700_v52, 0.0  ;;  %v174_v52 = vld [vmem:[%s7098_s0 + $0x498] sm:$0xff] }
 0x143   :  { %v5381_v6 = vpack.c.bf16 %v1002_v60, %v1001_v59  ;;  %v1066_v59 = vmax.f32 %v860_v45, 0.0  ;;  %v260_v60 = vpack.c.bf16 %v174_v52, %v173_v48 }
 0x144   :  { %v804_v9 = vpop.f32.mrf.mxu2 }
 0x145   :  { %v805_v11 = vadd.f32 %v4848_v25, %v804_v9  ;;  %4093 = vmatmul.msk.bf16.gmra.mxu3 %vm287_vm0, %v260_v60  ;;  %v5406_v33 = vpack.c.bf16 %v1066_v59, %v1065_v43  ;;  %v545_v9 = vadd.f32 %v4848_v25, %v5170_v8  ;;  %v862_v14 = vpop.f32.mrf.mxu3 }
 0x146   :  { %v702_v22 = vpop.f32.mrf.mxu1  ;;  %v863_v57 = vadd.f32 %v4848_v25, %v862_v14  ;;  %v175_v14 = vld [vmem:[%s7098_s0 + $0x4a0] sm:$0xff] }
 0x147   :  { %v1044_v27 = vmax.f32 %v805_v11, 0.0  ;;  %v703_v15 = vadd.f32 %v4848_v25, %v702_v22  ;;  %7123 = vst [vmem:[#allocation5_spill] sm:$0xff] %v5406_v33  ;;  %v940_v36 = vmax.f32 %v545_v9, 0.0  ;;  %v4248_v9 = vld [vmem:[%s7101_s5 + $0x10] sm:$0xff] }
 0x148   :  { %2710 = vmatpush.bf16.msrb.mxu3 %v4248_v9 }
 0x149   :  { %4061 = vmatmul.msk.bf16.gmra.mxu1 %vm287_vm0, %v228_v13  ;;  %1696 = vmatmul.bf16.vlgmr.msrb.gmra.mxu2 %v1097_v26  ;;  %v5401_v58 = vpack.c.bf16 %v1044_v27, %v1043_v20  ;;  %v5413_v13 = vpop.f32.mrf.mxu0  ;;  %v1003_v20 = vmax.f32 %v703_v15, 0.0  ;;  %v1098_v52 = vpack.c.bf16 %v940_v36, %v939_v32  ;;  %v58_v15 = vld [vmem:[%s7098_s0 + $0xf8] sm:$0xff] }
 0x14b   :  { %7122 = vst [vmem:[#allocation4_spill] sm:$0xff] %v5401_v58 }
 0x14c   :  { %v807_v63 = vpop.f32.mrf.mxu2 }
 0x14d   :  { %v808_v22 = vadd.f32 %v4848_v25, %v807_v63  ;;  %v864_v60 = vpop.f32.mrf.mxu3  ;;  %v57_v63 = vld [vmem:[%s7098_s0 + $0xf0] sm:$0xff] }
 0x14e   :  { %v704_v1 = vpop.f32.mrf.mxu1  ;;  %v865_v4 = vadd.f32 %v4848_v25, %v864_v60 }
 0x14f   :  { %v705_v11 = vadd.f32 %v4848_v25, %v704_v1  ;;  %v1045_v47 = vmax.f32 %v808_v22, 0.0  ;;  %v1067_v1 = vmax.f32 %v863_v57, 0.0  ;;  %v548_v57 = vadd.f32 %v4848_v25, %v5188_v29 }
 0x151   :  { %v1004_v27 = vmax.f32 %v705_v11, 0.0  ;;  %v5420_v59 = vpop.f32.mrf.mxu0  ;;  %v202_v11 = vpack.c.bf16 %v58_v15, %v57_v63  ;;  %v941_v9 = vmax.f32 %v548_v57, 0.0 }
 0x153   :  { %v5416_v42 = vpack.c.bf16 %v1004_v27, %v1003_v20  ;;  %v176_v20 = vld [vmem:[%s7098_s0 + $0x4a8] sm:$0xff]  ;;  %4035 = vmatmul.msk.bf16.gmra.mxu0 %vm287_vm0, %v202_v11 }
 0x154   :  { %v809_v43 = vpop.f32.mrf.mxu2  ;;  %v261_v22 = vpack.c.bf16 %v176_v20, %v175_v14 }
 0x155   :  { %v810_v45 = vadd.f32 %v4848_v25, %v809_v43  ;;  %v867_v63 = vpop.f32.mrf.mxu3 }
 0x156   :  { %v707_v8 = vpop.f32.mrf.mxu1  ;;  %4094 = vmatmul.msk.bf16.gmra.mxu3 %vm287_vm0, %v261_v22  ;;  %v868_v29 = vadd.f32 %v4848_v25, %v867_v63  ;;  %v177_v63 = vld [vmem:[%s7098_s0 + $0x4b0] sm:$0xff] }
 0x157   :  { %v1046_v48 = vmax.f32 %v810_v45, 0.0  ;;  %v708_v36 = vadd.f32 %v4848_v25, %v707_v8 }
 0x158   :  { %v1069_v57 = vmax.f32 %v868_v29, 0.0 }
 0x159   :  { %1287 = vmatmul.bf16.vlgmr.msrb.gmra.mxu1 %v1097_v26  ;;  %1701 = vmatmul.bf16.gmra.mxu2 %v1098_v52  ;;  %v5438_v27 = vpack.c.bf16 %v1046_v48, %v1045_v47  ;;  %v1068_v26 = vmax.f32 %v865_v4, 0.0  ;;  %v550_v47 = vadd.f32 %v4848_v25, %v5213_v51  ;;  %v5450_v60 = vpop.f32.mrf.mxu0  ;;  %v1005_v15 = vmax.f32 %v708_v36, 0.0  ;;  %v60_v36 = vld [vmem:[%s7098_s0 + $0x108] sm:$0xff] }
 0x15b   :  { %7124 = vst [vmem:[#allocation6_spill] sm:$0xff] %v5438_v27  ;;  %v5443_v43 = vpack.c.bf16 %v1068_v26, %v1067_v1  ;;  %v942_v11 = vmax.f32 %v550_v47, 0.0 }
 0x15c   :  { %v812_v32 = vpop.f32.mrf.mxu2 }
 0x15d   :  { %7125 = vst [vmem:[#allocation7_spill] sm:$0xff] %v5443_v43  ;;  %v813_v8 = vadd.f32 %v4848_v25, %v812_v32  ;;  %v869_v33 = vpop.f32.mrf.mxu3  ;;  %v59_v32 = vld [vmem:[%s7098_s0 + $0x100] sm:$0xff] }
 0x15e   :  { %v709_v45 = vpop.f32.mrf.mxu1 }
 0x15f   :  { %v710_v48 = vadd.f32 %v4848_v25, %v709_v45  ;;  %v1047_v26 = vmax.f32 %v813_v8, 0.0  ;;  %v1099_v45 = vpack.c.bf16 %v942_v11, %v941_v9 }
 0x161   :  { %v1006_v4 = vmax.f32 %v710_v48, 0.0  ;;  %v5457_v43 = vpop.f32.mrf.mxu0  ;;  %v203_v48 = vpack.c.bf16 %v60_v36, %v59_v32 }
 0x163   :  { %v5453_v1 = vpack.c.bf16 %v1006_v4, %v1005_v15  ;;  %v178_v15 = vld [vmem:[%s7098_s0 + $0x4b8] sm:$0xff]  ;;  %4036 = vmatmul.msk.bf16.gmra.mxu0 %vm287_vm0, %v203_v48 }
 0x164   :  { %v814_v14 = vpop.f32.mrf.mxu2  ;;  %v262_v8 = vpack.c.bf16 %v178_v15, %v177_v63 }
 0x165   :  { %v815_v20 = vadd.f32 %v4848_v25, %v814_v14  ;;  %v5468_v25 = vld [vmem:[%s7100_s2] ss:$0 sm:$0xff] }
 0x166   :  { %v712_v51 = vpop.f32.mrf.mxu1  ;;  %v870_v47 = vadd.f32 %v5468_v25, %v869_v33  ;;  %4095 = vmatmul.msk.bf16.gmra.mxu3 %vm287_vm0, %v262_v8  ;;  %v555_v29 = vadd.f32 %v5468_v25, %v5271_v40 }
 0x167   :  { %v1048_v22 = vmax.f32 %v815_v20, 0.0  ;;  %v713_v11 = vadd.f32 %v5468_v25, %v712_v51  ;;  %v553_v20 = vadd.f32 %v5468_v25, %v5237_v12  ;;  %v872_v51 = vpop.f32.mrf.mxu3 }
 0x168   :  { %v944_v48 = vmax.f32 %v555_v29, 0.0 }
 0x169   :  { %1292 = vmatmul.bf16.gmra.mxu1 %v1098_v52  ;;  %1706 = vmatmul.bf16.gmra.mxu2 %v1099_v45  ;;  %v5477_v4 = vpack.c.bf16 %v1048_v22, %v1047_v26  ;;  %v1070_v52 = vmax.f32 %v870_v47, 0.0  ;;  %v5492_v22 = vld [vmem:[%s7101_s5 + $0x50] sm:$0xff]  ;;  %v5494_v32 = vpop.f32.mrf.mxu0  ;;  %v1007_v36 = vmax.f32 %v713_v11, 0.0  ;;  %v943_v12 = vmax.f32 %v553_v20, 0.0  ;;  %v62_v20 = vld [vmem:[%s7098_s0 + $0x118] sm:$0xff] }
 0x16a   :  { %3119 = vmatpush.bf16.msrb.mxu0 %v5492_v22 }
 0x16b   :  { %7126 = vst [vmem:[#allocation8_spill] sm:$0xff] %v5477_v4  ;;  %v5482_v33 = vpack.c.bf16 %v1070_v52, %v1069_v57  ;;  %v873_v52 = vadd.f32 %v5468_v25, %v872_v51  ;;  %v1100_v44 = vpack.c.bf16 %v944_v48, %v943_v12 }
 0x16c   :  { %v817_v9 = vpop.f32.mrf.mxu2 }
 0x16d   :  { %7127 = vst [vmem:[#allocation9_spill] sm:$0xff] %v5482_v33  ;;  %v818_v47 = vadd.f32 %v5468_v25, %v817_v9  ;;  %v61_v9 = vld [vmem:[%s7098_s0 + $0x110] sm:$0xff]  ;;  %v1071_v29 = vmax.f32 %v873_v52, 0.0 }
 0x16e   :  { %v714_v14 = vpop.f32.mrf.mxu1  ;;  %v204_v51 = vpack.c.bf16 %v62_v20, %v61_v9  ;;  %v560_v9 = vadd.f32 %v5468_v25, %v5315_v39 }
 0x16f   :  { %v715_v26 = vadd.f32 %v5468_v25, %v714_v14  ;;  %v1049_v8 = vmax.f32 %v818_v47, 0.0  ;;  %v874_v11 = vpop.f32.mrf.mxu3 }
 0x171   :  { %v1008_v57 = vmax.f32 %v715_v26, 0.0  ;;  %v5502_v31 = vpop.f32.mrf.mxu0  ;;  %v875_v26 = vadd.f32 %v5468_v25, %v874_v11  ;;  %v558_v11 = vadd.f32 %v5468_v25, %v5290_v5  ;;  %v946_v5 = vmax.f32 %v560_v9, 0.0  ;;  %v181_v9 = vld [vmem:[%s7098_s0 + $0x4d0] sm:$0xff] }
 0x173   :  { %v5498_v63 = vpack.c.bf16 %v1008_v57, %v1007_v36  ;;  %v179_v36 = vld [vmem:[%s7098_s0 + $0x4c0] sm:$0xff]  ;;  %v180_v57 = vld [vmem:[%s7098_s0 + $0x4c8] sm:$0xff]  ;;  %v1072_v12 = vmax.f32 %v875_v26, 0.0  ;;  %4037 = vmatmul.msk.bf16.gmra.mxu0 %vm287_vm0, %v204_v51 }
 0x174   :  { %v819_v40 = vpop.f32.mrf.mxu2  ;;  %v263_v48 = vpack.c.bf16 %v180_v57, %v179_v36  ;;  %v945_v36 = vmax.f32 %v558_v11, 0.0 }
 0x175   :  { %v820_v15 = vadd.f32 %v5468_v25, %v819_v40 }
 0x176   :  { %v717_v14 = vpop.f32.mrf.mxu1  ;;  %4096 = vmatmul.msk.bf16.gmra.mxu3 %vm287_vm0, %v263_v48 }
 0x177   :  { %v1050_v33 = vmax.f32 %v820_v15, 0.0  ;;  %v5522_v15 = vpack.c.bf16 %v1072_v12, %v1071_v29 }
 0x179   :  { %1297 = vmatmul.bf16.gmra.mxu1 %v1099_v45  ;;  %1711 = vmatmul.bf16.gmra.mxu2 %v1100_v44  ;;  %v5517_v47 = vpack.c.bf16 %v1050_v33, %v1049_v8  ;;  %v718_v45 = vadd.f32 %v5468_v25, %v717_v14  ;;  %7129 = vst [vmem:[#allocation11_spill] sm:$0xff] %v5522_v15  ;;  %v4247_v8 = vld [vmem:[%s7101_s5 + $0x8] sm:$0xff]  ;;  %v5532_v20 = vpop.f32.mrf.mxu0  ;;  %v5534_v14 = vpop.f32.mrf.mxu3 }
 0x17a   :  { %7130 = vst [vmem:[#allocation12_spill] sm:$0xff] %v5534_v14  ;;  %2711 = vmatpush.bf16.msrb.mxu3 %v4247_v8 }
 0x17b   :  { %7128 = vst [vmem:[#allocation10_spill] sm:$0xff] %v5517_v47  ;;  %v1009_v26 = vmax.f32 %v718_v45, 0.0  ;;  %v1101_v47 = vpack.c.bf16 %v946_v5, %v945_v36  ;;  %v63_v45 = vld [vmem:[%s7098_s0 + $0x120] sm:$0xff]  ;;  %v563_v36 = vadd.f32 %v5468_v25, %v5337_v10  ;;  %v565_v5 = vadd.f32 %v5468_v25, %v5366_v54 }
 0x17c   :  { %v822_v40 = vpop.f32.mrf.mxu2 }
 0x17d   :  { %v823_v51 = vadd.f32 %v5468_v25, %v822_v40  ;;  %v64_v40 = vld [vmem:[%s7098_s0 + $0x128] sm:$0xff] }
 0x17e   :  { %v719_v52 = vpop.f32.mrf.mxu1  ;;  %v205_v11 = vpack.c.bf16 %v64_v40, %v63_v45 }
 0x17f   :  { %v720_v33 = vadd.f32 %v5468_v25, %v719_v52  ;;  %v1051_v48 = vmax.f32 %v823_v51, 0.0 }
 0x181   :  { %v1010_v29 = vmax.f32 %v720_v33, 0.0  ;;  %v5540_v4 = vpop.f32.mrf.mxu0  ;;  %v5542_v27 = vpop.f32.mrf.mxu3  ;;  %v182_v33 = vld [vmem:[%s7098_s0 + $0x4d8] sm:$0xff] }
 0x182   :  { %7131 = vst [vmem:[#allocation13_spill] sm:$0xff] %v5542_v27 }
 0x183   :  { %v5537_v57 = vpack.c.bf16 %v1010_v29, %v1009_v26  ;;  %v264_v26 = vpack.c.bf16 %v182_v33, %v181_v9  ;;  %4038 = vmatmul.msk.bf16.gmra.mxu0 %vm287_vm0, %v205_v11  ;;  %v948_v11 = vmax.f32 %v565_v5, 0.0 }
 0x184   :  { %v824_v39 = vpop.f32.mrf.mxu2 }
 0x185   :  { %v825_v12 = vadd.f32 %v5468_v25, %v824_v39 }
 0x186   :  { %v722_v52 = vpop.f32.mrf.mxu1  ;;  %4097 = vmatmul.msk.bf16.gmra.mxu3 %vm287_vm0, %v264_v26 }
 0x187   :  { %v1052_v15 = vmax.f32 %v825_v12, 0.0  ;;  %v723_v51 = vadd.f32 %v5468_v25, %v722_v52  ;;  %v947_v52 = vmax.f32 %v563_v36, 0.0  ;;  %v5585_v36 = vld [vmem:[%s7101_s5 + $0x48] sm:$0xff] }
 0x188   :  { %3120 = vmatpush.bf16.msrb.mxu0 %v5585_v36 }
 0x189   :  { %1302 = vmatmul.bf16.gmra.mxu1 %v1100_v44  ;;  %1716 = vmatmul.bf16.gmra.mxu2 %v1101_v47  ;;  %v5556_v8 = vpack.c.bf16 %v1052_v15, %v1051_v48  ;;  %v5566_v12 = vpop.f32.mrf.mxu0  ;;  %v5568_v15 = vpop.f32.mrf.mxu3  ;;  %v1011_v48 = vmax.f32 %v723_v51, 0.0  ;;  %v1102_v14 = vpack.c.bf16 %v948_v11, %v947_v52  ;;  %v65_v51 = vld [vmem:[%s7098_s0 + $0x130] sm:$0xff] }
 0x18a   :  { %7133 = vst [vmem:[#allocation15_spill] sm:$0xff] %v5568_v15 }
 0x18b   :  { %7132 = vst [vmem:[#allocation14_spill] sm:$0xff] %v5556_v8 }
 0x18c   :  { %v827_v29 = vpop.f32.mrf.mxu2 }
 0x18d   :  { %v828_v45 = vadd.f32 %v5468_v25, %v827_v29  ;;  %v66_v29 = vld [vmem:[%s7098_s0 + $0x138] sm:$0xff] }
 0x18e   :  { %v724_v44 = vpop.f32.mrf.mxu1 }
 0x18f   :  { %v725_v39 = vadd.f32 %v5468_v25, %v724_v44  ;;  %v1053_v26 = vmax.f32 %v828_v45, 0.0  ;;  %v183_v45 = vld [vmem:[%s7098_s0 + $0x4e0] sm:$0xff] }
 0x191   :  { %v1012_v40 = vmax.f32 %v725_v39, 0.0  ;;  %v5574_v44 = vpop.f32.mrf.mxu3  ;;  %v5587_v5 = vpop.f32.mrf.mxu0  ;;  %v206_v39 = vpack.c.bf16 %v66_v29, %v65_v51 }
 0x192   :  { %7134 = vst [vmem:[#allocation16_spill] sm:$0xff] %v5574_v44 }
 0x193   :  { %v5571_v9 = vpack.c.bf16 %v1012_v40, %v1011_v48  ;;  %v184_v40 = vld [vmem:[%s7098_s0 + $0x4e8] sm:$0xff]  ;;  %4039 = vmatmul.msk.bf16.gmra.mxu0 %vm287_vm0, %v206_v39 }
 0x194   :  { %v829_v33 = vpop.f32.mrf.mxu2 }
 0x195   :  { %v830_v10 = vadd.f32 %v5468_v25, %v829_v33 }
 0x196   :  { %v727_v27 = vpop.f32.mrf.mxu1 }
 0x197   :  { %v1054_v54 = vmax.f32 %v830_v10, 0.0  ;;  %v728_v11 = vadd.f32 %v5468_v25, %v727_v27  ;;  %v570_v10 = vadd.f32 %v5468_v25, %v5413_v13  ;;  %v4246_v27 = vld [vmem:[%s7101_s5] sm:$0xff] }
 0x198   :  { %2712 = vmatpush.bf16.msrb.mxu3 %v4246_v27 }
 0x199   :  { %1307 = vmatmul.bf16.gmra.mxu1 %v1101_v47  ;;  %1721 = vmatmul.bf16.gmra.mxu2 %v1102_v14  ;;  %v5589_v48 = vpack.c.bf16 %v1054_v54, %v1053_v26  ;;  %v265_v47 = vpack.c.bf16 %v184_v40, %v183_v45  ;;  %v568_v26 = vadd.f32 %v5468_v25, %v5385_v28  ;;  %v1013_v51 = vmax.f32 %v728_v11, 0.0  ;;  %v5607_v40 = vpop.f32.mrf.mxu0  ;;  %v5612_v39 = vpop.f32.mrf.mxu3  ;;  %v4599_v11 = vld [vmem:[%s7101_s5 + $0x78] sm:$0xff] }
 0x19a   :  { %7136 = vst [vmem:[#allocation18_spill] sm:$0xff] %v5612_v39  ;;  %v950_v44 = vmax.f32 %v570_v10, 0.0  ;;  %v68_v10 = vld [vmem:[%s7098_s0 + $0x148] sm:$0xff] }
 0x19b   :  { %7135 = vst [vmem:[#allocation17_spill] sm:$0xff] %v5589_v48  ;;  %4098 = vmatmul.msk.bf16.gmra.mxu3 %vm287_vm0, %v265_v47  ;;  %v949_v47 = vmax.f32 %v568_v26, 0.0  ;;  %v67_v26 = vld [vmem:[%s7098_s0 + $0x140] sm:$0xff] }
 0x19c   :  { %v832_v52 = vpop.f32.mrf.mxu2  ;;  %4268 = vmatpush.bf16.msra.mxu3 %v4599_v11 }
 0x19d   :  { %v833_v29 = vadd.f32 %v5468_v25, %v832_v52  ;;  %v1103_v48 = vpack.c.bf16 %v950_v44, %v949_v47  ;;  %v185_v44 = vld [vmem:[%s7098_s0 + $0x4f0] sm:$0xff]  ;;  %v186_v47 = vld [vmem:[%s7098_s0 + $0x4f8] sm:$0xff] }
 0x19e   :  { %v729_v33 = vpop.f32.mrf.mxu1 }
 0x19f   :  { %v730_v54 = vadd.f32 %v5468_v25, %v729_v33  ;;  %v1055_v52 = vmax.f32 %v833_v29, 0.0 }
 0x1a1   :  { %v1014_v45 = vmax.f32 %v730_v54, 0.0  ;;  %v5629_v29 = vpop.f32.mrf.mxu0 }
 0x1a3   :  { %v5614_v28 = vpack.c.bf16 %v1014_v45, %v1013_v51  ;;  %v4600_v51 = vld [vmem:[%s7101_s5 + $0x70] sm:$0xff]  ;;  %v207_v45 = vpack.c.bf16 %v68_v10, %v67_v26  ;;  %v575_v26 = vadd.f32 %v5468_v25, %v5450_v60 }
 0x1a4   :  { %v834_v13 = vpop.f32.mrf.mxu2  ;;  %4269 = vmatpush.bf16.msra.mxu3 %v4600_v51 }
 0x1a5   :  { %v835_v33 = vadd.f32 %v5468_v25, %v834_v13  ;;  %v266_v13 = vpack.c.bf16 %v186_v47, %v185_v44  ;;  %4040 = vmatmul.msk.bf16.gmra.mxu0 %vm287_vm0, %v207_v45  ;;  %v952_v47 = vmax.f32 %v575_v26, 0.0 }
 0x1a6   :  { %v732_v54 = vpop.f32.mrf.mxu1 }
 0x1a7   :  { %v1056_v15 = vmax.f32 %v835_v33, 0.0  ;;  %v5639_v33 = vpop.f32.mrf.mxu3 }
 0x1a8   :  { %7138 = vst [vmem:[#allocation20_spill] sm:$0xff] %v5639_v33  ;;  %4270 = vmatpush.bf16.msra.mxu3 %v5127_v38 }
 0x1a9   :  { %1312 = vmatmul.bf16.gmra.mxu1 %v1102_v14  ;;  %1726 = vmatmul.bf16.gmra.mxu2 %v1103_v48  ;;  %v5631_v27 = vpack.c.bf16 %v1056_v15, %v1055_v52  ;;  %v733_v14 = vadd.f32 %v5468_v25, %v732_v54  ;;  %v573_v52 = vadd.f32 %v5468_v25, %v5420_v59  ;;  %v5652_v38 = vpop.f32.mrf.mxu0 }
 0x1ab   :  { %7137 = vst [vmem:[#allocation19_spill] sm:$0xff] %v5631_v27  ;;  %4099 = vmatmul.msk.bf16.gmra.mxu3 %vm287_vm0, %v266_v13  ;;  %v1015_v51 = vmax.f32 %v733_v14, 0.0  ;;  %v951_v54 = vmax.f32 %v573_v52, 0.0 }
 0x1ac   :  { %v837_v11 = vpop.f32.mrf.mxu2  ;;  %4271 = vmatpush.bf16.msra.mxu3 %v5250_v16  ;;  %v4254_v16 = vld [vmem:[%s7101_s5 + $0x40] sm:$0xff] }
 0x1ad   :  { %v838_v45 = vadd.f32 %v5468_v25, %v837_v11  ;;  %v1104_v14 = vpack.c.bf16 %v952_v47, %v951_v54  ;;  %3121 = vmatpush.bf16.msrb.mxu0 %v4254_v16 }
 0x1ae   :  { %v734_v15 = vpop.f32.mrf.mxu1 }
 0x1af   :  { %v735_v10 = vadd.f32 %v5468_v25, %v734_v15  ;;  %v1057_v59 = vmax.f32 %v838_v45, 0.0  ;;  %v5658_v15 = vpop.f32.mrf.mxu3  ;;  %v580_v45 = vadd.f32 %v5468_v25, %v5494_v32 }
 0x1b0   :  { %4272 = vmatpush.bf16.msra.mxu3 %v5371_v62  ;;  %7139 = vst [vmem:[#allocation21_spill] sm:$0xff] %v5658_v15 }
 0x1b1   :  { %v1016_v44 = vmax.f32 %v735_v10, 0.0  ;;  %v5664_v52 = vpop.f32.mrf.mxu0 }
 0x1b3   :  { %v5654_v13 = vpack.c.bf16 %v1016_v44, %v1015_v51  ;;  %v578_v51 = vadd.f32 %v5468_v25, %v5457_v43 }
 0x1b4   :  { %v839_v33 = vpop.f32.mrf.mxu2  ;;  %4273 = vmatpush.bf16.msra.mxu3 %v5492_v22 }
 0x1b5   :  { %v840_v60 = vadd.f32 %v5468_v25, %v839_v33 }
 0x1b6   :  { %v737_v39 = vpop.f32.mrf.mxu1 }
 0x1b7   :  { %v1058_v11 = vmax.f32 %v840_v60, 0.0  ;;  %v738_v33 = vadd.f32 %v5468_v25, %v737_v39  ;;  %v954_v39 = vmax.f32 %v580_v45, 0.0 }
 0x1b8   :  { %4274 = vmatpush.bf16.msra.mxu3 %v5585_v36  ;;  %v953_v36 = vmax.f32 %v578_v51, 0.0 }
 0x1b9   :  { %1317 = vmatmul.bf16.gmra.mxu1 %v1103_v48  ;;  %1731 = vmatmul.bf16.gmra.mxu2 %v1104_v14  ;;  %v5666_v62 = vpack.c.bf16 %v1058_v11, %v1057_v59  ;;  %v5675_v48 = vpop.f32.mrf.mxu3  ;;  %v1017_v44 = vmax.f32 %v738_v33, 0.0  ;;  %v5678_v59 = vpop.f32.mrf.mxu0 }
 0x1ba   :  { %7141 = vst [vmem:[#allocation23_spill] sm:$0xff] %v5675_v48 }
 0x1bb   :  { %7140 = vst [vmem:[#allocation22_spill] sm:$0xff] %v5666_v62 }
 0x1bc   :  { %v842_v26 = vpop.f32.mrf.mxu2  ;;  %4275 = vmatpush.bf16.msra.mxu3 %v4254_v16 }
 0x1bd   :  { %v843_v54 = vadd.f32 %v5468_v25, %v842_v26  ;;  %v1193_v26 = vld [vmem:[%s7102_s4] sm:$0x3] }
 0x1be   :  { %v739_v10 = vpop.f32.mrf.mxu1 }
 0x1bf   :  { %v740_v22 = vadd.f32 %v5468_v25, %v739_v10  ;;  %v1059_v43 = vmax.f32 %v843_v54, 0.0  ;;  %v1105_v10 = vpack.c.bf16 %v954_v39, %v953_v36 }
 0x1c1   :  { %v1018_v47 = vmax.f32 %v740_v22, 0.0  ;;  %v5685_v33 = vpop.f32.mrf.mxu3  ;;  %v5690_v45 = vpop.f32.mrf.mxu0 }
 0x1c2   :  { %7143 = vst [vmem:[#allocation25_spill] sm:$0xff] %v5685_v33 }
 0x1c3   :  { %v5680_v60 = vpack.c.bf16 %v1018_v47, %v1017_v44 }
 0x1c4   :  { %v844_v11 = vpop.f32.mrf.mxu2 }
 0x1c5   :  { %v845_v15 = vadd.f32 %v5468_v25, %v844_v11 }
 0x1c6   :  { %v742_v32 = vpop.f32.mrf.mxu1 }
 0x1c7   :  { %v1060_v62 = vmax.f32 %v845_v15, 0.0  ;;  %v743_v22 = vadd.f32 %v5468_v25, %v742_v32  ;;  %v583_v15 = vadd.f32 %v5468_v25, %v5502_v31 }
 0x1c9   :  { %1322 = vmatmul.bf16.gmra.mxu1 %v1104_v14  ;;  %1736 = vmatmul.bf16.gmra.mxu2 %v1105_v10  ;;  %v5683_v16 = vpack.c.bf16 %v1060_v62, %v1059_v43  ;;  %v585_v14 = vadd.f32 %v5468_v25, %v5532_v20  ;;  %v5697_v62 = vperm.slane %v1193_v26, 1  ;;  %v1019_v47 = vmax.f32 %v743_v22, 0.0  ;;  %v5703_v48 = vpop.f32.mrf.mxu3  ;;  %v5706_v27 = vpop.f32.mrf.mxu0 }
 0x1ca   :  { %v955_v39 = vmax.f32 %v583_v15, 0.0  ;;  %7144 = vst [vmem:[#allocation26_spill] sm:$0xff] %v5703_v48  ;;  %v5708_v22 = vperm.slane %v1193_v26, 0 }
 0x1cb   :  { %7142 = vst [vmem:[#allocation24_spill] sm:$0xff] %v5683_v16  ;;  %v956_v11 = vmax.f32 %v585_v14, 0.0 }
 0x1cc   :  { %v1697_v51 = vpop.f32.mrf.mxu2 }
 0x1cd   :  { %v1698_v43 = vadd.f32 %v1697_v51, %v5697_v62  ;;  %v1106_v58 = vpack.c.bf16 %v956_v11, %v955_v39 }
 0x1ce   :  { %v744_v44 = vpop.f32.mrf.mxu1 }
 0x1cf   :  { %v745_v54 = vadd.f32 %v5468_v25, %v744_v44  ;;  %v2098_v20 = vmax.f32 %v1698_v43, 0.0 }
 0x1d1   :  { %v1020_v36 = vmax.f32 %v745_v54, 0.0  ;;  %v5711_v54 = vpop.f32.mrf.mxu3 }
 0x1d2   :  { %7145 = vst [vmem:[#allocation27_spill] sm:$0xff] %v5711_v54 }
 0x1d3   :  { %v5701_v33 = vpack.c.bf16 %v1020_v36, %v1019_v47  ;;  %v588_v47 = vadd.f32 %v5468_v25, %v5540_v4  ;;  %v590_v36 = vadd.f32 %v5468_v25, %v5566_v12 }
 0x1d4   :  { %v1699_v32 = vpop.f32.mrf.mxu2 }
 0x1d5   :  { %v1700_v31 = vadd.f32 %v1699_v32, %v5697_v62  ;;  %v957_v11 = vmax.f32 %v588_v47, 0.0  ;;  %v958_v43 = vmax.f32 %v590_v36, 0.0 }
 0x1d6   :  { %v1288_v16 = vpop.f32.mrf.mxu1 }
 0x1d7   :  { %v2100_v8 = vmax.f32 %v1700_v31, 0.0  ;;  %v1289_v15 = vadd.f32 %v1288_v16, %v5708_v22  ;;  %v1107_v48 = vpack.c.bf16 %v958_v43, %v957_v11 }
 0x1d9   :  { %v2418_v44 = vpack.c.bf16 %v2100_v8, %v2098_v20  ;;  %1327 = vmatmul.bf16.gmra.mxu1 %v1105_v10  ;;  %1741 = vmatmul.bf16.gmra.mxu2 %v1106_v58  ;;  %v5718_v8 = vpop.f32.mrf.mxu0  ;;  %v2097_v26 = vmax.f32 %v1289_v15, 0.0  ;;  %v5722_v12 = vpop.f32.mrf.mxu3 }
 0x1da   :  { %7146 = vst [vmem:[#allocation28_spill] sm:$0xff] %v5722_v12 }
 0x1db   :  { %3122 = vmatmul.bf16.vlgmr.msrb.gmra.mxu0 %v2418_v44 }
 0x1dc   :  { %v1702_v51 = vpop.f32.mrf.mxu2 }
 0x1dd   :  { %v1703_v32 = vadd.f32 %v1702_v51, %v5697_v62 }
 0x1de   :  { %v1290_v14 = vpop.f32.mrf.mxu1 }
 0x1df   :  { %v1291_v39 = vadd.f32 %v1290_v14, %v5708_v22  ;;  %v2102_v4 = vmax.f32 %v1703_v32, 0.0 }
 0x1e1   :  { %v2099_v10 = vmax.f32 %v1291_v39, 0.0  ;;  %v5724_v15 = vpop.f32.mrf.mxu0  ;;  %v593_v39 = vadd.f32 %v5468_v25, %v5587_v5 }
 0x1e3   :  { %v2417_v16 = vpack.c.bf16 %v2099_v10, %v2097_v26  ;;  %v595_v26 = vadd.f32 %v5468_v25, %v5607_v40 }
 0x1e4   :  { %v1704_v31 = vpop.f32.mrf.mxu2 }
 0x1e5   :  { %v1705_v20 = vadd.f32 %v1704_v31, %v5697_v62  ;;  %2713 = vmatmul.bf16.vlgmr.msrb.gmra.mxu3 %v2417_v16  ;;  %v960_v32 = vmax.f32 %v595_v26, 0.0 }
 0x1e6   :  { %v1293_v44 = vpop.f32.mrf.mxu1 }
 0x1e7   :  { %v2104_v54 = vmax.f32 %v1705_v20, 0.0  ;;  %v1294_v51 = vadd.f32 %v1293_v44, %v5708_v22 }
 0x1e9   :  { %1332 = vmatmul.bf16.gmra.mxu1 %v1106_v58  ;;  %1746 = vmatmul.bf16.gmra.mxu2 %v1107_v48  ;;  %v2420_v14 = vpack.c.bf16 %v2104_v54, %v2102_v4  ;;  %v2101_v11 = vmax.f32 %v1294_v51, 0.0  ;;  %v5732_v58 = vpop.f32.mrf.mxu3  ;;  %v959_v54 = vmax.f32 %v593_v39, 0.0  ;;  %v5735_v44 = vpop.f32.mrf.mxu0 }
 0x1ea   :  { %7147 = vst [vmem:[#allocation29_spill] sm:$0xff] %v5732_v58 }
 0x1eb   :  { %3127 = vmatmul.bf16.gmra.mxu0 %v2420_v14  ;;  %v1108_v12 = vpack.c.bf16 %v960_v32, %v959_v54 }
 0x1ec   :  { %v1707_v47 = vpop.f32.mrf.mxu2 }
 0x1ed   :  { %v1708_v16 = vadd.f32 %v1707_v47, %v5697_v62 }
 0x1ee   :  { %v1295_v36 = vpop.f32.mrf.mxu1 }
 0x1ef   :  { %v1296_v10 = vadd.f32 %v1295_v36, %v5708_v22  ;;  %v2106_v14 = vmax.f32 %v1708_v16, 0.0 }
 0x1f1   :  { %v2103_v43 = vmax.f32 %v1296_v10, 0.0  ;;  %v5738_v39 = vpop.f32.mrf.mxu3  ;;  %v5741_v10 = vpop.f32.mrf.mxu0 }
 0x1f2   :  { %7148 = vst [vmem:[#allocation30_spill] sm:$0xff] %v5738_v39 }
 0x1f3   :  { %v2419_v31 = vpack.c.bf16 %v2103_v43, %v2101_v11  ;;  %v598_v11 = vadd.f32 %v5468_v25, %v5629_v29  ;;  %v600_v43 = vadd.f32 %v5468_v25, %v5652_v38 }
 0x1f4   :  { %v1709_v20 = vpop.f32.mrf.mxu2 }
 0x1f5   :  { %v1710_v4 = vadd.f32 %v1709_v20, %v5697_v62  ;;  %2718 = vmatmul.bf16.gmra.mxu3 %v2419_v31  ;;  %v961_v16 = vmax.f32 %v598_v11, 0.0  ;;  %v962_v31 = vmax.f32 %v600_v43, 0.0  ;;  %v603_v43 = vadd.f32 %v5468_v25, %v5664_v52 }
 0x1f6   :  { %v1298_v5 = vpop.f32.mrf.mxu1 }
 0x1f7   :  { %v2108_v40 = vmax.f32 %v1710_v4, 0.0  ;;  %v1299_v47 = vadd.f32 %v1298_v5, %v5708_v22  ;;  %v1109_v58 = vpack.c.bf16 %v962_v31, %v961_v16 }
 0x1f9   :  { %1337 = vmatmul.bf16.gmra.mxu1 %v1107_v48  ;;  %1751 = vmatmul.bf16.gmra.mxu2 %v1108_v12  ;;  %v2422_v51 = vpack.c.bf16 %v2108_v40, %v2106_v14  ;;  %v2105_v48 = vmax.f32 %v1299_v47, 0.0  ;;  %v5752_v38 = vpop.f32.mrf.mxu0 }
 0x1fb   :  { %3132 = vmatmul.bf16.gmra.mxu0 %v2422_v51  ;;  %v5750_v51 = vpop.f32.mrf.mxu3 }
 0x1fc   :  { %v1712_v36 = vpop.f32.mrf.mxu2 }
 0x1fd   :  { %v1713_v20 = vadd.f32 %v1712_v36, %v5697_v62 }
 0x1fe   :  { %v1300_v26 = vpop.f32.mrf.mxu1 }
 0x1ff   :  { %v1301_v54 = vadd.f32 %v1300_v26, %v5708_v22  ;;  %v2110_v29 = vmax.f32 %v1713_v20, 0.0 }
 0x201   :  { %v2107_v32 = vmax.f32 %v1301_v54, 0.0  ;;  %v605_v54 = vadd.f32 %v5468_v25, %v5678_v59 }
 0x203   :  { %v2421_v4 = vpack.c.bf16 %v2107_v32, %v2105_v48  ;;  %v5760_v32 = vpop.f32.mrf.mxu3  ;;  %v964_v20 = vmax.f32 %v605_v54, 0.0 }
 0x204   :  { %v1714_v14 = vpop.f32.mrf.mxu2  ;;  %7149 = vst [vmem:[#allocation31_spill] sm:$0xff] %v5760_v32 }
 0x205   :  { %v1715_v5 = vadd.f32 %v1714_v14, %v5697_v62  ;;  %2723 = vmatmul.bf16.gmra.mxu3 %v2421_v4 }
 0x206   :  { %v1303_v40 = vpop.f32.mrf.mxu1 }
 0x207   :  { %v2112_v39 = vmax.f32 %v1715_v5, 0.0  ;;  %v1304_v36 = vadd.f32 %v1303_v40, %v5708_v22 }
 0x209   :  { %1342 = vmatmul.bf16.gmra.mxu1 %v1108_v12  ;;  %1756 = vmatmul.bf16.gmra.mxu2 %v1109_v58  ;;  %v2424_v47 = vpack.c.bf16 %v2112_v39, %v2110_v29  ;;  %v2109_v16 = vmax.f32 %v1304_v36, 0.0  ;;  %v5762_v12 = vpop.f32.mrf.mxu0  ;;  %v963_v39 = vmax.f32 %v603_v43, 0.0 }
 0x20b   :  { %3137 = vmatmul.bf16.gmra.mxu0 %v2424_v47  ;;  %v1110_v47 = vpack.c.bf16 %v964_v20, %v963_v39  ;;  %v5766_v36 = vpop.f32.mrf.mxu3 }
 0x20c   :  { %v1717_v26 = vpop.f32.mrf.mxu2  ;;  %7150 = vst [vmem:[#allocation32_spill] sm:$0xff] %v5766_v36 }
 0x20d   :  { %v1718_v4 = vadd.f32 %v1717_v26, %v5697_v62 }
 0x20e   :  { %v1305_v11 = vpop.f32.mrf.mxu1 }
 0x20f   :  { %v1306_v48 = vadd.f32 %v1305_v11, %v5708_v22  ;;  %v2114_v29 = vmax.f32 %v1718_v4, 0.0 }
 0x211   :  { %v2111_v31 = vmax.f32 %v1306_v48, 0.0  ;;  %v5768_v43 = vpop.f32.mrf.mxu0 }
 0x213   :  { %v2423_v14 = vpack.c.bf16 %v2111_v31, %v2109_v16  ;;  %v608_v16 = vadd.f32 %v5468_v25, %v5690_v45  ;;  %v610_v31 = vadd.f32 %v5468_v25, %v5706_v27 }
 0x214   :  { %v1719_v5 = vpop.f32.mrf.mxu2 }
 0x215   :  { %v1720_v40 = vadd.f32 %v1719_v5, %v5697_v62  ;;  %2728 = vmatmul.bf16.gmra.mxu3 %v2423_v14  ;;  %v965_v4 = vmax.f32 %v608_v16, 0.0  ;;  %v966_v14 = vmax.f32 %v610_v31, 0.0 }
 0x216   :  { %v1308_v52 = vpop.f32.mrf.mxu1 }
 0x217   :  { %v2116_v59 = vmax.f32 %v1720_v40, 0.0  ;;  %v1309_v26 = vadd.f32 %v1308_v52, %v5708_v22  ;;  %v1111_v32 = vpack.c.bf16 %v966_v14, %v965_v4 }
 0x219   :  { %1347 = vmatmul.bf16.gmra.mxu1 %v1109_v58  ;;  %1761 = vmatmul.bf16.gmra.mxu2 %v1110_v47  ;;  %v2426_v11 = vpack.c.bf16 %v2116_v59, %v2114_v29  ;;  %v2113_v58 = vmax.f32 %v1309_v26, 0.0  ;;  %v5777_v59 = vpop.f32.mrf.mxu3  ;;  %v5780_v45 = vpop.f32.mrf.mxu0 }
 0x21b   :  { %3142 = vmatmul.bf16.gmra.mxu0 %v2426_v11 }
 0x21c   :  { %v1722_v48 = vpop.f32.mrf.mxu2 }
 0x21d   :  { %v1723_v5 = vadd.f32 %v1722_v48, %v5697_v62 }
 0x21e   :  { %v1310_v54 = vpop.f32.mrf.mxu1 }
 0x21f   :  { %v1311_v39 = vadd.f32 %v1310_v54, %v5708_v22  ;;  %v2118_v36 = vmax.f32 %v1723_v5, 0.0 }
 0x221   :  { %v2115_v20 = vmax.f32 %v1311_v39, 0.0  ;;  %v5783_v31 = vpop.f32.mrf.mxu3  ;;  %v613_v39 = vadd.f32 %v5468_v25, %v5718_v8  ;;  %v5790_v5 = vpop.f32.mrf.mxu0 }
 0x222   :  { %7151 = vst [vmem:[#allocation33_spill] sm:$0xff] %v5783_v31 }
 0x223   :  { %v2425_v40 = vpack.c.bf16 %v2115_v20, %v2113_v58  ;;  %v615_v58 = vadd.f32 %v5468_v25, %v5724_v15 }
 0x224   :  { %v1724_v29 = vpop.f32.mrf.mxu2 }
 0x225   :  { %v1725_v52 = vadd.f32 %v1724_v29, %v5697_v62  ;;  %2733 = vmatmul.bf16.gmra.mxu3 %v2425_v40  ;;  %v968_v14 = vmax.f32 %v615_v58, 0.0 }
 0x226   :  { %v1313_v11 = vpop.f32.mrf.mxu1 }
 0x227   :  { %v2120_v27 = vmax.f32 %v1725_v52, 0.0  ;;  %v1314_v48 = vadd.f32 %v1313_v11, %v5708_v22 }
 0x229   :  { %1352 = vmatmul.bf16.gmra.mxu1 %v1110_v47  ;;  %1766 = vmatmul.bf16.gmra.mxu2 %v1111_v32  ;;  %v2428_v26 = vpack.c.bf16 %v2120_v27, %v2118_v36  ;;  %v2117_v47 = vmax.f32 %v1314_v48, 0.0  ;;  %v967_v36 = vmax.f32 %v613_v39, 0.0  ;;  %v5794_v15 = vpop.f32.mrf.mxu3  ;;  %v5796_v48 = vpop.f32.mrf.mxu0 }
 0x22a   :  { %7152 = vst [vmem:[#allocation34_spill] sm:$0xff] %v5794_v15 }
 0x22b   :  { %3147 = vmatmul.bf16.gmra.mxu0 %v2428_v26  ;;  %v1112_v31 = vpack.c.bf16 %v968_v14, %v967_v36 }
 0x22c   :  { %v1727_v54 = vpop.f32.mrf.mxu2 }
 0x22d   :  { %v1728_v40 = vadd.f32 %v1727_v54, %v5697_v62 }
 0x22e   :  { %v1315_v16 = vpop.f32.mrf.mxu1 }
 0x22f   :  { %v1316_v20 = vadd.f32 %v1315_v16, %v5708_v22  ;;  %v2122_v8 = vmax.f32 %v1728_v40, 0.0 }
 0x231   :  { %v2119_v4 = vmax.f32 %v1316_v20, 0.0  ;;  %v618_v20 = vadd.f32 %v5468_v25, %v5735_v44 }
 0x233   :  { %v2427_v29 = vpack.c.bf16 %v2119_v4, %v2117_v47  ;;  %v620_v47 = vadd.f32 %v5468_v25, %v5741_v10  ;;  %v969_v40 = vmax.f32 %v618_v20, 0.0 }
 0x234   :  { %v1729_v52 = vpop.f32.mrf.mxu2 }
 0x235   :  { %v1730_v11 = vadd.f32 %v1729_v52, %v5697_v62  ;;  %2738 = vmatmul.bf16.gmra.mxu3 %v2427_v29  ;;  %v970_v29 = vmax.f32 %v620_v47, 0.0 }
 0x236   :  { %v1318_v27 = vpop.f32.mrf.mxu1 }
 0x237   :  { %v2124_v26 = vmax.f32 %v1730_v11, 0.0  ;;  %v1319_v54 = vadd.f32 %v1318_v27, %v5708_v22  ;;  %v5807_v27 = vpop.f32.mrf.mxu0  ;;  %v1113_v15 = vpack.c.bf16 %v970_v29, %v969_v40 }
 0x239   :  { %1357 = vmatmul.bf16.gmra.mxu1 %v1111_v32  ;;  %1771 = vmatmul.bf16.gmra.mxu2 %v1112_v31  ;;  %v2430_v16 = vpack.c.bf16 %v2124_v26, %v2122_v8  ;;  %v2121_v36 = vmax.f32 %v1319_v54, 0.0  ;;  %v5804_v32 = vpop.f32.mrf.mxu3 }
 0x23a   :  { %7153 = vst [vmem:[#allocation35_spill] sm:$0xff] %v5804_v32 }
 0x23b   :  { %3152 = vmatmul.bf16.gmra.mxu0 %v2430_v16 }
 0x23c   :  { %v1732_v39 = vpop.f32.mrf.mxu2 }
 0x23d   :  { %v1733_v52 = vadd.f32 %v1732_v39, %v5697_v62 }
 0x23e   :  { %v1320_v58 = vpop.f32.mrf.mxu1 }
 0x23f   :  { %v1321_v4 = vadd.f32 %v1320_v58, %v5708_v22  ;;  %v2126_v16 = vmax.f32 %v1733_v52, 0.0 }
 0x241   :  { %v2123_v14 = vmax.f32 %v1321_v4, 0.0  ;;  %v5810_v58 = vpop.f32.mrf.mxu3  ;;  %v5813_v4 = vpop.f32.mrf.mxu0 }
 0x242   :  { %7154 = vst [vmem:[#allocation36_spill] sm:$0xff] %v5810_v58 }
 0x243   :  { %v2429_v11 = vpack.c.bf16 %v2123_v14, %v2121_v36  ;;  %v623_v36 = vadd.f32 %v5468_v25, %v5752_v38  ;;  %v625_v14 = vadd.f32 %v5468_v25, %v5762_v12 }
 0x244   :  { %v1734_v8 = vpop.f32.mrf.mxu2 }
 0x245   :  { %v1735_v26 = vadd.f32 %v1734_v8, %v5697_v62  ;;  %2743 = vmatmul.bf16.gmra.mxu3 %v2429_v11  ;;  %v971_v52 = vmax.f32 %v623_v36, 0.0  ;;  %v972_v11 = vmax.f32 %v625_v14, 0.0  ;;  %v628_v14 = vadd.f32 %v5468_v25, %v5768_v43 }
 0x246   :  { %v1323_v44 = vpop.f32.mrf.mxu1 }
 0x247   :  { %v2128_v10 = vmax.f32 %v1735_v26, 0.0  ;;  %v1324_v39 = vadd.f32 %v1323_v44, %v5708_v22  ;;  %v1114_v32 = vpack.c.bf16 %v972_v11, %v971_v52 }
 0x249   :  { %1362 = vmatmul.bf16.gmra.mxu1 %v1112_v31  ;;  %1776 = vmatmul.bf16.gmra.mxu2 %v1113_v15  ;;  %v2432_v54 = vpack.c.bf16 %v2128_v10, %v2126_v16  ;;  %v2125_v31 = vmax.f32 %v1324_v39, 0.0  ;;  %v5822_v10 = vpop.f32.mrf.mxu3 }
 0x24b   :  { %3157 = vmatmul.bf16.gmra.mxu0 %v2432_v54 }
 0x24c   :  { %v1737_v20 = vpop.f32.mrf.mxu2 }
 0x24d   :  { %v1738_v8 = vadd.f32 %v1737_v20, %v5697_v62 }
 0x24e   :  { %v1325_v47 = vpop.f32.mrf.mxu1 }
 0x24f   :  { %v1326_v40 = vadd.f32 %v1325_v47, %v5708_v22  ;;  %v2130_v38 = vmax.f32 %v1738_v8, 0.0  ;;  %v973_v8 = vmax.f32 %v628_v14, 0.0 }
 0x251   :  { %v2127_v29 = vmax.f32 %v1326_v40, 0.0  ;;  %v630_v40 = vadd.f32 %v5468_v25, %v5780_v45  ;;  %v5837_v45 = vld [vmem:[%s7103_s6] ss:$0 sm:$0xff] }
 0x253   :  { %v2431_v26 = vpack.c.bf16 %v2127_v29, %v2125_v31  ;;  %v5830_v29 = vpop.f32.mrf.mxu3 }
 0x254   :  { %v1739_v16 = vpop.f32.mrf.mxu2 }
 0x255   :  { %v1740_v44 = vadd.f32 %v1739_v16, %v5697_v62  ;;  %2748 = vmatmul.bf16.gmra.mxu3 %v2431_v26 }
 0x256   :  { %v1328_v54 = vpop.f32.mrf.mxu1 }
 0x257   :  { %v2132_v58 = vmax.f32 %v1740_v44, 0.0  ;;  %v1329_v36 = vadd.f32 %v1328_v54, %v5708_v22 }
 0x258   :  { %v3123_v12 = vpop.f32.mrf.mxu0 }
 0x259   :  { %1367 = vmatmul.bf16.gmra.mxu1 %v1113_v15  ;;  %1781 = vmatmul.bf16.gmra.mxu2 %v1114_v32  ;;  %v2434_v39 = vpack.c.bf16 %v2132_v58, %v2130_v38  ;;  %v2129_v11 = vmax.f32 %v1329_v36, 0.0  ;;  %v974_v58 = vmax.f32 %v630_v40, 0.0 }
 0x25b   :  { %3162 = vmatmul.bf16.gmra.mxu0 %v2434_v39 }
 0x25c   :  { %v1742_v47 = vpop.f32.mrf.mxu2 }
 0x25d   :  { %v1743_v26 = vadd.f32 %v1742_v47, %v5697_v62 }
 0x25e   :  { %v1330_v20 = vpop.f32.mrf.mxu1 }
 0x25f   :  { %v1331_v31 = vadd.f32 %v1330_v20, %v5708_v22  ;;  %v2134_v38 = vmax.f32 %v1743_v26, 0.0  ;;  %v1115_v20 = vpack.c.bf16 %v974_v58, %v973_v8  ;;  %v633_v26 = vadd.f32 %v5468_v25, %v5790_v5 }
 0x260   :  { %v3125_v52 = vpop.f32.mrf.mxu0  ;;  %v635_v8 = vadd.f32 %v5468_v25, %v5796_v48 }
 0x261   :  { %v2131_v15 = vmax.f32 %v1331_v31, 0.0 }
 0x263   :  { %v2433_v16 = vpack.c.bf16 %v2131_v15, %v2129_v11 }
 0x264   :  { %v1744_v44 = vpop.f32.mrf.mxu2 }
 0x265   :  { %v1745_v54 = vadd.f32 %v1744_v44, %v5697_v62  ;;  %2753 = vmatmul.bf16.gmra.mxu3 %v2433_v16 }
 0x266   :  { %v1333_v43 = vpop.f32.mrf.mxu1 }
 0x267   :  { %v2136_v39 = vmax.f32 %v1745_v54, 0.0  ;;  %v1334_v15 = vadd.f32 %v1333_v43, %v5708_v22 }
 0x268   :  { %v2714_v36 = vpop.f32.mrf.mxu3  ;;  %v3128_v31 = vpop.f32.mrf.mxu0 }
 0x269   :  { %v3124_v14 = vadd.f32 %v3123_v12, %v2714_v36  ;;  %1372 = vmatmul.bf16.gmra.mxu1 %v1114_v32  ;;  %1786 = vmatmul.bf16.gmra.mxu2 %v1115_v20  ;;  %v2436_v47 = vpack.c.bf16 %v2136_v39, %v2134_v38  ;;  %v2133_v44 = vmax.f32 %v1334_v15, 0.0  ;;  %v975_v39 = vmax.f32 %v633_v26, 0.0 }
 0x26b   :  { %v3527_v40 = vadd.f32 %v5837_v45, %v3124_v14  ;;  %3167 = vmatmul.bf16.gmra.mxu0 %v2436_v47  ;;  %v976_v14 = vmax.f32 %v635_v8, 0.0 }
 0x26c   :  { %v1747_v11 = vpop.f32.mrf.mxu2 }
 0x26d   :  { %4278 = vtanh.f32 %v3527_v40  ;;  %v1748_v43 = vadd.f32 %v1747_v11, %v5697_v62  ;;  %v1116_v26 = vpack.c.bf16 %v976_v14, %v975_v39 }
 0x26e   :  { %v1335_v16 = vpop.f32.mrf.mxu1 }
 0x26f   :  { %v1336_v58 = vadd.f32 %v1335_v16, %v5708_v22 }
 0x270   :  { %v2716_v12 = vpop.f32.mrf.mxu3  ;;  %v3130_v32 = vpop.f32.mrf.mxu0 }
 0x271   :  { %v2135_v54 = vmax.f32 %v1336_v58, 0.0  ;;  %v3126_v38 = vadd.f32 %v3125_v52, %v2716_v12  ;;  %v2138_v52 = vmax.f32 %v1748_v43, 0.0 }
 0x273   :  { %v4279_v36 = vpop.eup %4278  ;;  %v3528_v47 = vadd.f32 %v5837_v45, %v3126_v38  ;;  %v2435_v5 = vpack.c.bf16 %v2135_v54, %v2133_v44 }
 0x274   :  { %3848 = vst.msk [vmem:[%s7104_s7] sm:$0xff] %vm3847_vm1, %v4279_v36  ;;  %v1749_v25 = vpop.f32.mrf.mxu2 }
 0x275   :  { %4280 = vtanh.f32 %v3528_v47  ;;  %v1750_v48 = vadd.f32 %v1749_v25, %v5697_v62  ;;  %2758 = vmatmul.bf16.gmra.mxu3 %v2435_v5 }
 0x276   :  { %v1338_v40 = vpop.f32.mrf.mxu1 }
 0x277   :  { %v2140_v15 = vmax.f32 %v1750_v48, 0.0  ;;  %v1339_v38 = vadd.f32 %v1338_v40, %v5708_v22 }
 0x278   :  { %v2719_v16 = vpop.f32.mrf.mxu3  ;;  %v3133_v8 = vpop.f32.mrf.mxu0 }
 0x279   :  { %v3129_v11 = vadd.f32 %v3128_v31, %v2719_v16  ;;  %1377 = vmatmul.bf16.gmra.mxu1 %v1115_v20  ;;  %1791 = vmatmul.bf16.gmra.mxu2 %v1116_v26  ;;  %v2438_v58 = vpack.c.bf16 %v2140_v15, %v2138_v52  ;;  %v4601_v31 = vld [vmem:[%s7100_s2] ss:$0 sm:$0xff]  ;;  %v2137_v5 = vmax.f32 %v1339_v38, 0.0 }
 0x27a   :  { %v638_v20 = vadd.f32 %v4601_v31, %v5807_v27  ;;  %v640_v36 = vadd.f32 %v4601_v31, %v5813_v4 }
 0x27b   :  { %v4281_v12 = vpop.eup %4280  ;;  %v3529_v44 = vadd.f32 %v5837_v45, %v3129_v11  ;;  %3172 = vmatmul.bf16.gmra.mxu0 %v2438_v58 }
 0x27c   :  { %3849 = vst.msk [vmem:[%s7104_s7 + $0x8] sm:$0xff] %vm3847_vm1, %v4281_v12  ;;  %v1752_v54 = vpop.f32.mrf.mxu2  ;;  %v977_v52 = vmax.f32 %v638_v20, 0.0  ;;  %v978_v40 = vmax.f32 %v640_v36, 0.0 }
 0x27d   :  { %4282 = vtanh.f32 %v3529_v44  ;;  %v1753_v16 = vadd.f32 %v1752_v54, %v5697_v62 }
 0x27e   :  { %v1340_v39 = vpop.f32.mrf.mxu1  ;;  %v1117_v38 = vpack.c.bf16 %v978_v40, %v977_v52 }
 0x27f   :  { %v1341_v14 = vadd.f32 %v1340_v39, %v5708_v22 }
 0x280   :  { %v2721_v43 = vpop.f32.mrf.mxu3  ;;  %v3135_v47 = vpop.f32.mrf.mxu0 }
 0x281   :  { %v2139_v25 = vmax.f32 %v1341_v14, 0.0  ;;  %v3131_v48 = vadd.f32 %v3130_v32, %v2721_v43  ;;  %v2142_v32 = vmax.f32 %v1753_v16, 0.0 }
 0x283   :  { %v4283_v15 = vpop.eup %4282  ;;  %v3530_v11 = vadd.f32 %v5837_v45, %v3131_v48  ;;  %v2437_v58 = vpack.c.bf16 %v2139_v25, %v2137_v5 }
 0x284   :  { %3850 = vst.msk [vmem:[%s7104_s7 + $0x10] sm:$0xff] %vm3847_vm1, %v4283_v15  ;;  %v1754_v27 = vpop.f32.mrf.mxu2 }
 0x285   :  { %4284 = vtanh.f32 %v3530_v11  ;;  %v1755_v4 = vadd.f32 %v1754_v27, %v5697_v62  ;;  %2763 = vmatmul.bf16.gmra.mxu3 %v2437_v58 }
 0x286   :  { %v1343_v12 = vpop.f32.mrf.mxu1 }
 0x287   :  { %v2144_v44 = vmax.f32 %v1755_v4, 0.0  ;;  %v1344_v5 = vadd.f32 %v1343_v12, %v5708_v22 }
 0x288   :  { %v2724_v31 = vpop.f32.mrf.mxu3  ;;  %v3138_v20 = vpop.f32.mrf.mxu0 }
 0x289   :  { %v3134_v54 = vadd.f32 %v3133_v8, %v2724_v31  ;;  %1382 = vmatmul.bf16.gmra.mxu1 %v1116_v26  ;;  %1796 = vmatmul.bf16.gmra.mxu2 %v1117_v38  ;;  %v2440_v39 = vpack.c.bf16 %v2144_v44, %v2142_v32  ;;  %v2141_v52 = vmax.f32 %v1344_v5, 0.0 }
 0x28b   :  { %v4285_v36 = vpop.eup %4284  ;;  %v3531_v14 = vadd.f32 %v5837_v45, %v3134_v54  ;;  %3177 = vmatmul.bf16.gmra.mxu0 %v2440_v39 }
 0x28c   :  { %3851 = vst.msk [vmem:[%s7104_s7 + $0x18] sm:$0xff] %vm3847_vm1, %v4285_v36  ;;  %v1757_v43 = vpop.f32.mrf.mxu2 }
 0x28d   :  { %4286 = vtanh.f32 %v3531_v14  ;;  %v1758_v11 = vadd.f32 %v1757_v43, %v5697_v62 }
 0x28e   :  { %v1345_v25 = vpop.f32.mrf.mxu1 }
 0x28f   :  { %v1346_v48 = vadd.f32 %v1345_v25, %v5708_v22  ;;  %v2146_v44 = vmax.f32 %v1758_v11, 0.0 }
 0x290   :  { %v2726_v8 = vpop.f32.mrf.mxu3  ;;  %v3140_v26 = vpop.f32.mrf.mxu0 }
 0x291   :  { %v2143_v15 = vmax.f32 %v1346_v48, 0.0  ;;  %v3136_v40 = vadd.f32 %v3135_v47, %v2726_v8 }
 0x293   :  { %v4287_v16 = vpop.eup %4286  ;;  %v3532_v58 = vadd.f32 %v5837_v45, %v3136_v40  ;;  %v2439_v27 = vpack.c.bf16 %v2143_v15, %v2141_v52 }
 0x294   :  { %3852 = vst.msk [vmem:[%s7104_s7 + $0x20] sm:$0xff] %vm3847_vm1, %v4287_v16  ;;  %v1759_v4 = vpop.f32.mrf.mxu2 }
 0x295   :  { %4288 = vtanh.f32 %v3532_v58  ;;  %v1760_v12 = vadd.f32 %v1759_v4, %v5697_v62  ;;  %2768 = vmatmul.bf16.gmra.mxu3 %v2439_v27 }
 0x296   :  { %v1348_v32 = vpop.f32.mrf.mxu1 }
 0x297   :  { %v2148_v31 = vmax.f32 %v1760_v12, 0.0  ;;  %v1349_v25 = vadd.f32 %v1348_v32, %v5708_v22 }
 0x298   :  { %v2729_v47 = vpop.f32.mrf.mxu3  ;;  %v3143_v54 = vpop.f32.mrf.mxu0 }
 0x299   :  { %v3139_v39 = vadd.f32 %v3138_v20, %v2729_v47  ;;  %1387 = vmatmul.bf16.gmra.mxu1 %v1117_v38  ;;  %1801 = vmatmul.bf16.gmra.mxu2 %v4874_v41  ;;  %v2442_v36 = vpack.c.bf16 %v2148_v31, %v2146_v44  ;;  %v2145_v52 = vmax.f32 %v1349_v25, 0.0 }
 0x29b   :  { %v4289_v14 = vpop.eup %4288  ;;  %v3533_v43 = vadd.f32 %v5837_v45, %v3139_v39  ;;  %3182 = vmatmul.bf16.gmra.mxu0 %v2442_v36 }
 0x29c   :  { %3853 = vst.msk [vmem:[%s7104_s7 + $0x28] sm:$0xff] %vm3847_vm1, %v4289_v14  ;;  %v1762_v5 = vpop.f32.mrf.mxu2 }
 0x29d   :  { %4290 = vtanh.f32 %v3533_v43  ;;  %v1763_v11 = vadd.f32 %v1762_v5, %v5697_v62 }
 0x29e   :  { %v1350_v48 = vpop.f32.mrf.mxu1 }
 0x29f   :  { %v1351_v20 = vadd.f32 %v1350_v48, %v5708_v22  ;;  %v2150_v44 = vmax.f32 %v1763_v11, 0.0 }
 0x2a0   :  { %v2731_v38 = vpop.f32.mrf.mxu3  ;;  %v3145_v8 = vpop.f32.mrf.mxu0 }
 0x2a1   :  { %v2147_v15 = vmax.f32 %v1351_v20, 0.0  ;;  %v3141_v40 = vadd.f32 %v3140_v26, %v2731_v38 }
 0x2a3   :  { %v4291_v16 = vpop.eup %4290  ;;  %v3534_v58 = vadd.f32 %v5837_v45, %v3141_v40  ;;  %v2441_v27 = vpack.c.bf16 %v2147_v15, %v2145_v52 }
 0x2a4   :  { %3854 = vst.msk [vmem:[%s7104_s7 + $0x30] sm:$0xff] %vm3847_vm1, %v4291_v16  ;;  %v1764_v4 = vpop.f32.mrf.mxu2 }
 0x2a5   :  { %4292 = vtanh.f32 %v3534_v58  ;;  %v1765_v12 = vadd.f32 %v1764_v4, %v5697_v62  ;;  %2773 = vmatmul.bf16.gmra.mxu3 %v2441_v27 }
 0x2a6   :  { %v1353_v32 = vpop.f32.mrf.mxu1 }
 0x2a7   :  { %v2152_v31 = vmax.f32 %v1765_v12, 0.0  ;;  %v1354_v25 = vadd.f32 %v1353_v32, %v5708_v22 }
 0x2a8   :  { %v2734_v26 = vpop.f32.mrf.mxu3  ;;  %v3148_v47 = vpop.f32.mrf.mxu0 }
 0x2a9   :  { %v3144_v39 = vadd.f32 %v3143_v54, %v2734_v26  ;;  %1392 = vmatmul.bf16.gmra.mxu1 %v4874_v41  ;;  %1806 = vmatmul.bf16.gmra.mxu2 %v4919_v7  ;;  %v2444_v36 = vpack.c.bf16 %v2152_v31, %v2150_v44  ;;  %v2149_v38 = vmax.f32 %v1354_v25, 0.0 }
 0x2ab   :  { %v4293_v14 = vpop.eup %4292  ;;  %v3535_v43 = vadd.f32 %v5837_v45, %v3144_v39  ;;  %3187 = vmatmul.bf16.gmra.mxu0 %v2444_v36 }
 0x2ac   :  { %3855 = vst.msk [vmem:[%s7104_s7 + $0x38] sm:$0xff] %vm3847_vm1, %v4293_v14  ;;  %v1767_v5 = vpop.f32.mrf.mxu2 }
 0x2ad   :  { %4294 = vtanh.f32 %v3535_v43  ;;  %v1768_v16 = vadd.f32 %v1767_v5, %v5697_v62 }
 0x2ae   :  { %v1355_v48 = vpop.f32.mrf.mxu1 }
 0x2af   :  { %v1356_v54 = vadd.f32 %v1355_v48, %v5708_v22  ;;  %v2154_v32 = vmax.f32 %v1768_v16, 0.0 }
 0x2b0   :  { %v2736_v41 = vpop.f32.mrf.mxu3  ;;  %v3150_v20 = vpop.f32.mrf.mxu0 }
 0x2b1   :  { %v2151_v52 = vmax.f32 %v1356_v54, 0.0  ;;  %v3146_v15 = vadd.f32 %v3145_v8, %v2736_v41 }
 0x2b3   :  { %v4295_v40 = vpop.eup %4294  ;;  %v3536_v11 = vadd.f32 %v5837_v45, %v3146_v15  ;;  %v2443_v58 = vpack.c.bf16 %v2151_v52, %v2149_v38 }
 0x2b4   :  { %3856 = vst.msk [vmem:[%s7104_s7 + $0x40] sm:$0xff] %vm3847_vm1, %v4295_v40  ;;  %v1769_v27 = vpop.f32.mrf.mxu2 }
 0x2b5   :  { %4296 = vtanh.f32 %v3536_v11  ;;  %v1770_v4 = vadd.f32 %v1769_v27, %v5697_v62  ;;  %2778 = vmatmul.bf16.gmra.mxu3 %v2443_v58 }
 0x2b6   :  { %v1358_v12 = vpop.f32.mrf.mxu1 }
 0x2b7   :  { %v2156_v44 = vmax.f32 %v1770_v4, 0.0  ;;  %v1359_v5 = vadd.f32 %v1358_v12, %v5708_v22 }
 0x2b8   :  { %v2739_v8 = vpop.f32.mrf.mxu3  ;;  %v3153_v31 = vpop.f32.mrf.mxu0 }
 0x2b9   :  { %v3149_v26 = vadd.f32 %v3148_v47, %v2739_v8  ;;  %1397 = vmatmul.bf16.gmra.mxu1 %v4919_v7  ;;  %1811 = vmatmul.bf16.gmra.mxu2 %v4958_v35  ;;  %v2446_v39 = vpack.c.bf16 %v2156_v44, %v2154_v32  ;;  %v2153_v54 = vmax.f32 %v1359_v5, 0.0 }
 0x2bb   :  { %v4297_v36 = vpop.eup %4296  ;;  %v3537_v14 = vadd.f32 %v5837_v45, %v3149_v26  ;;  %3192 = vmatmul.bf16.gmra.mxu0 %v2446_v39 }
 0x2bc   :  { %3857 = vst.msk [vmem:[%s7104_s7 + $0x48] sm:$0xff] %vm3847_vm1, %v4297_v36  ;;  %v1772_v43 = vpop.f32.mrf.mxu2 }
 0x2bd   :  { %4298 = vtanh.f32 %v3537_v14  ;;  %v1773_v15 = vadd.f32 %v1772_v43, %v5697_v62 }
 0x2be   :  { %v1360_v25 = vpop.f32.mrf.mxu1 }
 0x2bf   :  { %v1361_v47 = vadd.f32 %v1360_v25, %v5708_v22  ;;  %v2158_v4 = vmax.f32 %v1773_v15, 0.0 }
 0x2c0   :  { %v2741_v7 = vpop.f32.mrf.mxu3  ;;  %v3155_v48 = vpop.f32.mrf.mxu0 }
 0x2c1   :  { %v2155_v41 = vmax.f32 %v1361_v47, 0.0  ;;  %v3151_v38 = vadd.f32 %v3150_v20, %v2741_v7 }
 0x2c3   :  { %v4299_v52 = vpop.eup %4298  ;;  %v3538_v40 = vadd.f32 %v5837_v45, %v3151_v38  ;;  %v2445_v16 = vpack.c.bf16 %v2155_v41, %v2153_v54 }
 0x2c4   :  { %3858 = vst.msk [vmem:[%s7104_s7 + $0x50] sm:$0xff] %vm3847_vm1, %v4299_v52  ;;  %v1774_v11 = vpop.f32.mrf.mxu2 }
 0x2c5   :  { %4300 = vtanh.f32 %v3538_v40  ;;  %v1775_v58 = vadd.f32 %v1774_v11, %v5697_v62  ;;  %2783 = vmatmul.bf16.gmra.mxu3 %v2445_v16 }
 0x2c6   :  { %v1363_v27 = vpop.f32.mrf.mxu1 }
 0x2c7   :  { %v2160_v12 = vmax.f32 %v1775_v58, 0.0  ;;  %v1364_v14 = vadd.f32 %v1363_v27, %v5708_v22 }
 0x2c8   :  { %v2744_v20 = vpop.f32.mrf.mxu3  ;;  %v3158_v32 = vpop.f32.mrf.mxu0 }
 0x2c9   :  { %v3154_v44 = vadd.f32 %v3153_v31, %v2744_v20  ;;  %1402 = vmatmul.bf16.gmra.mxu1 %v4958_v35  ;;  %1816 = vmatmul.bf16.gmra.mxu2 %v5000_v2  ;;  %v2448_v8 = vpack.c.bf16 %v2160_v12, %v2158_v4  ;;  %v2157_v25 = vmax.f32 %v1364_v14, 0.0 }
 0x2cb   :  { %v4301_v26 = vpop.eup %4300  ;;  %v3539_v39 = vadd.f32 %v5837_v45, %v3154_v44  ;;  %3197 = vmatmul.bf16.gmra.mxu0 %v2448_v8 }
 0x2cc   :  { %3859 = vst.msk [vmem:[%s7104_s7 + $0x58] sm:$0xff] %vm3847_vm1, %v4301_v26  ;;  %v1777_v36 = vpop.f32.mrf.mxu2 }
 0x2cd   :  { %4302 = vtanh.f32 %v3539_v39  ;;  %v1778_v41 = vadd.f32 %v1777_v36, %v5697_v62 }
 0x2ce   :  { %v1365_v43 = vpop.f32.mrf.mxu1 }
 0x2cf   :  { %v1366_v31 = vadd.f32 %v1365_v43, %v5708_v22  ;;  %v2162_v11 = vmax.f32 %v1778_v41, 0.0 }
 0x2d0   :  { %v2746_v35 = vpop.f32.mrf.mxu3  ;;  %v3160_v5 = vpop.f32.mrf.mxu0 }
 0x2d1   :  { %v2159_v47 = vmax.f32 %v1366_v31, 0.0  ;;  %v3156_v7 = vadd.f32 %v3155_v48, %v2746_v35 }
 0x2d3   :  { %v4303_v54 = vpop.eup %4302  ;;  %v3540_v38 = vadd.f32 %v5837_v45, %v3156_v7  ;;  %v2447_v52 = vpack.c.bf16 %v2159_v47, %v2157_v25 }
 0x2d4   :  { %3860 = vst.msk [vmem:[%s7104_s7 + $0x60] sm:$0xff] %vm3847_vm1, %v4303_v54  ;;  %v1779_v15 = vpop.f32.mrf.mxu2 }
 0x2d5   :  { %4304 = vtanh.f32 %v3540_v38  ;;  %v1780_v40 = vadd.f32 %v1779_v15, %v5697_v62  ;;  %2788 = vmatmul.bf16.gmra.mxu3 %v2447_v52 }
 0x2d6   :  { %v1368_v16 = vpop.f32.mrf.mxu1 }
 0x2d7   :  { %v2164_v58 = vmax.f32 %v1780_v40, 0.0  ;;  %v1369_v26 = vadd.f32 %v1368_v16, %v5708_v22 }
 0x2d8   :  { %v2749_v48 = vpop.f32.mrf.mxu3  ;;  %v3163_v27 = vpop.f32.mrf.mxu0 }
 0x2d9   :  { %v3159_v4 = vadd.f32 %v3158_v32, %v2749_v48  ;;  %1407 = vmatmul.bf16.gmra.mxu1 %v5000_v2  ;;  %1821 = vmatmul.bf16.gmra.mxu2 %v5048_v37  ;;  %v2450_v12 = vpack.c.bf16 %v2164_v58, %v2162_v11  ;;  %v2161_v14 = vmax.f32 %v1369_v26, 0.0 }
 0x2db   :  { %v4305_v20 = vpop.eup %4304  ;;  %v3541_v44 = vadd.f32 %v5837_v45, %v3159_v4  ;;  %3202 = vmatmul.bf16.gmra.mxu0 %v2450_v12 }
 0x2dc   :  { %3861 = vst.msk [vmem:[%s7104_s7 + $0x68] sm:$0xff] %vm3847_vm1, %v4305_v20  ;;  %v1782_v8 = vpop.f32.mrf.mxu2 }
 0x2dd   :  { %4306 = vtanh.f32 %v3541_v44  ;;  %v1783_v25 = vadd.f32 %v1782_v8, %v5697_v62 }
 0x2de   :  { %v1370_v39 = vpop.f32.mrf.mxu1 }
 0x2df   :  { %v1371_v32 = vadd.f32 %v1370_v39, %v5708_v22  ;;  %v2166_v52 = vmax.f32 %v1783_v25, 0.0 }
 0x2e0   :  { %v2751_v2 = vpop.f32.mrf.mxu3  ;;  %v3165_v36 = vpop.f32.mrf.mxu0 }
 0x2e1   :  { %v2163_v43 = vmax.f32 %v1371_v32, 0.0  ;;  %v3161_v31 = vadd.f32 %v3160_v5, %v2751_v2 }
 0x2e3   :  { %v4307_v35 = vpop.eup %4306  ;;  %v3542_v47 = vadd.f32 %v5837_v45, %v3161_v31  ;;  %v2449_v7 = vpack.c.bf16 %v2163_v43, %v2161_v14 }
 0x2e4   :  { %3862 = vst.msk [vmem:[%s7104_s7 + $0x70] sm:$0xff] %vm3847_vm1, %v4307_v35  ;;  %v1784_v54 = vpop.f32.mrf.mxu2 }
 0x2e5   :  { %4308 = vtanh.f32 %v3542_v47  ;;  %v1785_v41 = vadd.f32 %v1784_v54, %v5697_v62  ;;  %2793 = vmatmul.bf16.gmra.mxu3 %v2449_v7 }
 0x2e6   :  { %v1373_v38 = vpop.f32.mrf.mxu1 }
 0x2e7   :  { %v2168_v15 = vmax.f32 %v1785_v41, 0.0  ;;  %v1374_v12 = vadd.f32 %v1373_v38, %v5708_v22 }
 0x2e8   :  { %v2754_v5 = vpop.f32.mrf.mxu3  ;;  %v3168_v40 = vpop.f32.mrf.mxu0 }
 0x2e9   :  { %v3164_v16 = vadd.f32 %v3163_v27, %v2754_v5  ;;  %1412 = vmatmul.bf16.gmra.mxu1 %v5048_v37  ;;  %1826 = vmatmul.bf16.gmra.mxu2 %v5084_v3  ;;  %v2452_v11 = vpack.c.bf16 %v2168_v15, %v2166_v52  ;;  %v2165_v8 = vmax.f32 %v1374_v12, 0.0 }
 0x2eb   :  { %v4309_v58 = vpop.eup %4308  ;;  %v3543_v48 = vadd.f32 %v5837_v45, %v3164_v16  ;;  %3207 = vmatmul.bf16.gmra.mxu0 %v2452_v11 }
 0x2ec   :  { %3863 = vst.msk [vmem:[%s7104_s7 + $0x78] sm:$0xff] %vm3847_vm1, %v4309_v58  ;;  %v1787_v4 = vpop.f32.mrf.mxu2 }
 0x2ed   :  { %4310 = vtanh.f32 %v3543_v48  ;;  %v1788_v2 = vadd.f32 %v1787_v4, %v5697_v62 }
 0x2ee   :  { %v1375_v20 = vpop.f32.mrf.mxu1 }
 0x2ef   :  { %v1376_v27 = vadd.f32 %v1375_v20, %v5708_v22  ;;  %v2170_v47 = vmax.f32 %v1788_v2, 0.0 }
 0x2f0   :  { %v2756_v37 = vpop.f32.mrf.mxu3  ;;  %v3170_v44 = vpop.f32.mrf.mxu0 }
 0x2f1   :  { %v2167_v26 = vmax.f32 %v1376_v27, 0.0  ;;  %v3166_v39 = vadd.f32 %v3165_v36, %v2756_v37 }
 0x2f3   :  { %v4311_v32 = vpop.eup %4310  ;;  %v3544_v14 = vadd.f32 %v5837_v45, %v3166_v39  ;;  %v2451_v43 = vpack.c.bf16 %v2167_v26, %v2165_v8 }
 0x2f4   :  { %3864 = vst.msk [vmem:[%s7104_s7 + $0x80] sm:$0xff] %vm3847_vm1, %v4311_v32  ;;  %v1789_v31 = vpop.f32.mrf.mxu2 }
 0x2f5   :  { %4312 = vtanh.f32 %v3544_v14  ;;  %v1790_v35 = vadd.f32 %v1789_v31, %v5697_v62  ;;  %2798 = vmatmul.bf16.gmra.mxu3 %v2451_v43 }
 0x2f6   :  { %v1378_v25 = vpop.f32.mrf.mxu1 }
 0x2f7   :  { %v2172_v7 = vmax.f32 %v1790_v35, 0.0  ;;  %v1379_v16 = vadd.f32 %v1378_v25, %v5708_v22 }
 0x2f8   :  { %v2759_v36 = vpop.f32.mrf.mxu3  ;;  %v3173_v54 = vpop.f32.mrf.mxu0 }
 0x2f9   :  { %v3169_v41 = vadd.f32 %v3168_v40, %v2759_v36  ;;  %1417 = vmatmul.bf16.gmra.mxu1 %v5084_v3  ;;  %1831 = vmatmul.bf16.gmra.mxu2 %v5145_v46  ;;  %v2454_v38 = vpack.c.bf16 %v2172_v7, %v2170_v47  ;;  %v2169_v48 = vmax.f32 %v1379_v16, 0.0 }
 0x2fb   :  { %v4313_v52 = vpop.eup %4312  ;;  %v3545_v15 = vadd.f32 %v5837_v45, %v3169_v41  ;;  %3212 = vmatmul.bf16.gmra.mxu0 %v2454_v38 }
 0x2fc   :  { %3865 = vst.msk [vmem:[%s7104_s7 + $0x88] sm:$0xff] %vm3847_vm1, %v4313_v52  ;;  %v1792_v5 = vpop.f32.mrf.mxu2 }
 0x2fd   :  { %4314 = vtanh.f32 %v3545_v15  ;;  %v1793_v27 = vadd.f32 %v1792_v5, %v5697_v62 }
 0x2fe   :  { %v1380_v11 = vpop.f32.mrf.mxu1 }
 0x2ff   :  { %v1381_v40 = vadd.f32 %v1380_v11, %v5708_v22  ;;  %v2174_v2 = vmax.f32 %v1793_v27, 0.0 }
 0x300   :  { %v2761_v3 = vpop.f32.mrf.mxu3  ;;  %v3175_v58 = vpop.f32.mrf.mxu0 }
 0x301   :  { %v2171_v4 = vmax.f32 %v1381_v40, 0.0  ;;  %v3171_v12 = vadd.f32 %v3170_v44, %v2761_v3 }
 0x303   :  { %v4315_v20 = vpop.eup %4314  ;;  %v3546_v37 = vadd.f32 %v5837_v45, %v3171_v12  ;;  %v2453_v8 = vpack.c.bf16 %v2171_v4, %v2169_v48 }
 0x304   :  { %3866 = vst.msk [vmem:[%s7104_s7 + $0x90] sm:$0xff] %vm3847_vm1, %v4315_v20  ;;  %v1794_v26 = vpop.f32.mrf.mxu2 }
 0x305   :  { %4316 = vtanh.f32 %v3546_v37  ;;  %v1795_v39 = vadd.f32 %v1794_v26, %v5697_v62  ;;  %2803 = vmatmul.bf16.gmra.mxu3 %v2453_v8 }
 0x306   :  { %v1383_v32 = vpop.f32.mrf.mxu1 }
 0x307   :  { %v2176_v14 = vmax.f32 %v1795_v39, 0.0  ;;  %v1384_v36 = vadd.f32 %v1383_v32, %v5708_v22 }
 0x308   :  { %v2764_v44 = vpop.f32.mrf.mxu3  ;;  %v3178_v43 = vpop.f32.mrf.mxu0 }
 0x309   :  { %v3174_v31 = vadd.f32 %v3173_v54, %v2764_v44  ;;  %1422 = vmatmul.bf16.gmra.mxu1 %v5145_v46  ;;  %1836 = vmatmul.bf16.gmra.mxu2 %v5185_v17  ;;  %v2456_v35 = vpack.c.bf16 %v2176_v14, %v2174_v2  ;;  %v2173_v52 = vmax.f32 %v1384_v36, 0.0 }
 0x30b   :  { %v4317_v25 = vpop.eup %4316  ;;  %v3547_v47 = vadd.f32 %v5837_v45, %v3174_v31  ;;  %3217 = vmatmul.bf16.gmra.mxu0 %v2456_v35 }
 0x30c   :  { %3867 = vst.msk [vmem:[%s7104_s7 + $0x98] sm:$0xff] %vm3847_vm1, %v4317_v25  ;;  %v1797_v7 = vpop.f32.mrf.mxu2 }
 0x30d   :  { %4318 = vtanh.f32 %v3547_v47  ;;  %v1798_v11 = vadd.f32 %v1797_v7, %v5697_v62 }
 0x30e   :  { %v1385_v41 = vpop.f32.mrf.mxu1 }
 0x30f   :  { %v1386_v54 = vadd.f32 %v1385_v41, %v5708_v22  ;;  %v2178_v20 = vmax.f32 %v1798_v11, 0.0 }
 0x310   :  { %v2766_v46 = vpop.f32.mrf.mxu3  ;;  %v3180_v38 = vpop.f32.mrf.mxu0 }
 0x311   :  { %v2175_v15 = vmax.f32 %v1386_v54, 0.0  ;;  %v3176_v5 = vadd.f32 %v3175_v58, %v2766_v46 }
 0x313   :  { %v4319_v16 = vpop.eup %4318  ;;  %v3548_v40 = vadd.f32 %v5837_v45, %v3176_v5  ;;  %v2455_v3 = vpack.c.bf16 %v2175_v15, %v2173_v52 }
 0x314   :  { %3868 = vst.msk [vmem:[%s7104_s7 + $0xa0] sm:$0xff] %vm3847_vm1, %v4319_v16  ;;  %v1799_v48 = vpop.f32.mrf.mxu2 }
 0x315   :  { %4320 = vtanh.f32 %v3548_v40  ;;  %v1800_v4 = vadd.f32 %v1799_v48, %v5697_v62  ;;  %2808 = vmatmul.bf16.gmra.mxu3 %v2455_v3 }
 0x316   :  { %v1388_v12 = vpop.f32.mrf.mxu1 }
 0x317   :  { %v2180_v27 = vmax.f32 %v1800_v4, 0.0  ;;  %v1389_v14 = vadd.f32 %v1388_v12, %v5708_v22 }
 0x318   :  { %v2769_v58 = vpop.f32.mrf.mxu3  ;;  %v3183_v37 = vpop.f32.mrf.mxu0 }
 0x319   :  { %v3179_v8 = vadd.f32 %v3178_v43, %v2769_v58  ;;  %1427 = vmatmul.bf16.gmra.mxu1 %v5185_v17  ;;  %1841 = vmatmul.bf16.gmra.mxu2 %v5234_v0  ;;  %v2458_v26 = vpack.c.bf16 %v2180_v27, %v2178_v20  ;;  %v2177_v35 = vmax.f32 %v1389_v14, 0.0 }
 0x31b   :  { %v4321_v39 = vpop.eup %4320  ;;  %v3549_v32 = vadd.f32 %v5837_v45, %v3179_v8  ;;  %3222 = vmatmul.bf16.gmra.mxu0 %v2458_v26 }
 0x31c   :  { %3869 = vst.msk [vmem:[%s7104_s7 + $0xa8] sm:$0xff] %vm3847_vm1, %v4321_v39  ;;  %v1802_v2 = vpop.f32.mrf.mxu2 }
 0x31d   :  { %4322 = vtanh.f32 %v3549_v32  ;;  %v1803_v36 = vadd.f32 %v1802_v2, %v5697_v62 }
 0x31e   :  { %v1390_v44 = vpop.f32.mrf.mxu1 }
 0x31f   :  { %v1391_v43 = vadd.f32 %v1390_v44, %v5708_v22  ;;  %v2182_v5 = vmax.f32 %v1803_v36, 0.0 }
 0x320   :  { %v2771_v17 = vpop.f32.mrf.mxu3  ;;  %v3185_v31 = vpop.f32.mrf.mxu0 }
 0x321   :  { %v2179_v25 = vmax.f32 %v1391_v43, 0.0  ;;  %v3181_v47 = vadd.f32 %v3180_v38, %v2771_v17 }
 0x323   :  { %v4323_v7 = vpop.eup %4322  ;;  %v3550_v41 = vadd.f32 %v5837_v45, %v3181_v47  ;;  %v2457_v54 = vpack.c.bf16 %v2179_v25, %v2177_v35 }
 0x324   :  { %3870 = vst.msk [vmem:[%s7104_s7 + $0xb0] sm:$0xff] %vm3847_vm1, %v4323_v7  ;;  %v1804_v46 = vpop.f32.mrf.mxu2 }
 0x325   :  { %4324 = vtanh.f32 %v3550_v41  ;;  %v1805_v52 = vadd.f32 %v1804_v46, %v5697_v62  ;;  %2813 = vmatmul.bf16.gmra.mxu3 %v2457_v54 }
 0x326   :  { %v1393_v15 = vpop.f32.mrf.mxu1 }
 0x327   :  { %v2184_v16 = vmax.f32 %v1805_v52, 0.0  ;;  %v1394_v20 = vadd.f32 %v1393_v15, %v5708_v22 }
 0x328   :  { %v2774_v38 = vpop.f32.mrf.mxu3  ;;  %v3188_v11 = vpop.f32.mrf.mxu0 }
 0x329   :  { %v3184_v40 = vadd.f32 %v3183_v37, %v2774_v38  ;;  %1432 = vmatmul.bf16.gmra.mxu1 %v5234_v0  ;;  %1846 = vmatmul.bf16.gmra.mxu2 %v5286_v55  ;;  %v2460_v3 = vpack.c.bf16 %v2184_v16, %v2182_v5  ;;  %v2181_v8 = vmax.f32 %v1394_v20, 0.0 }
 0x32b   :  { %v4325_v48 = vpop.eup %4324  ;;  %v3551_v4 = vadd.f32 %v5837_v45, %v3184_v40  ;;  %3227 = vmatmul.bf16.gmra.mxu0 %v2460_v3 }
 0x32c   :  { %3871 = vst.msk [vmem:[%s7104_s7 + $0xb8] sm:$0xff] %vm3847_vm1, %v4325_v48  ;;  %v1807_v12 = vpop.f32.mrf.mxu2 }
 0x32d   :  { %4326 = vtanh.f32 %v3551_v4  ;;  %v1808_v2 = vadd.f32 %v1807_v12, %v5697_v62 }
 0x32e   :  { %v1395_v27 = vpop.f32.mrf.mxu1 }
 0x32f   :  { %v1396_v58 = vadd.f32 %v1395_v27, %v5708_v22  ;;  %v2186_v25 = vmax.f32 %v1808_v2, 0.0 }
 0x330   :  { %v2776_v0 = vpop.f32.mrf.mxu3  ;;  %v3190_v37 = vpop.f32.mrf.mxu0 }
 0x331   :  { %v2183_v26 = vmax.f32 %v1396_v58, 0.0  ;;  %v3186_v39 = vadd.f32 %v3185_v31, %v2776_v0 }
 0x333   :  { %v4327_v32 = vpop.eup %4326  ;;  %v3552_v14 = vadd.f32 %v5837_v45, %v3186_v39  ;;  %v2459_v44 = vpack.c.bf16 %v2183_v26, %v2181_v8 }
 0x334   :  { %3872 = vst.msk [vmem:[%s7104_s7 + $0xc0] sm:$0xff] %vm3847_vm1, %v4327_v32  ;;  %v1809_v43 = vpop.f32.mrf.mxu2 }
 0x335   :  { %4328 = vtanh.f32 %v3552_v14  ;;  %v1810_v17 = vadd.f32 %v1809_v43, %v5697_v62  ;;  %2818 = vmatmul.bf16.gmra.mxu3 %v2459_v44 }
 0x336   :  { %v1398_v35 = vpop.f32.mrf.mxu1 }
 0x337   :  { %v2188_v47 = vmax.f32 %v1810_v17, 0.0  ;;  %v1399_v15 = vadd.f32 %v1398_v35, %v5708_v22 }
 0x338   :  { %v2779_v31 = vpop.f32.mrf.mxu3  ;;  %v3193_v7 = vpop.f32.mrf.mxu0 }
 0x339   :  { %v3189_v36 = vadd.f32 %v3188_v11, %v2779_v31  ;;  %1437 = vmatmul.bf16.gmra.mxu1 %v5286_v55  ;;  %1851 = vmatmul.bf16.gmra.mxu2 %v5330_v56  ;;  %v2462_v41 = vpack.c.bf16 %v2188_v47, %v2186_v25  ;;  %v2185_v11 = vmax.f32 %v1399_v15, 0.0 }
 0x33b   :  { %v4329_v54 = vpop.eup %4328  ;;  %v3553_v46 = vadd.f32 %v5837_v45, %v3189_v36  ;;  %3232 = vmatmul.bf16.gmra.mxu0 %v2462_v41 }
 0x33c   :  { %3873 = vst.msk [vmem:[%s7104_s7 + $0xc8] sm:$0xff] %vm3847_vm1, %v4329_v54  ;;  %v1812_v52 = vpop.f32.mrf.mxu2 }
 0x33d   :  { %4330 = vtanh.f32 %v3553_v46  ;;  %v1813_v4 = vadd.f32 %v1812_v52, %v5697_v62 }
 0x33e   :  { %v1400_v5 = vpop.f32.mrf.mxu1 }
 0x33f   :  { %v1401_v16 = vadd.f32 %v1400_v5, %v5708_v22  ;;  %v2190_v8 = vmax.f32 %v1813_v4, 0.0 }
 0x340   :  { %v2781_v55 = vpop.f32.mrf.mxu3  ;;  %v3195_v38 = vpop.f32.mrf.mxu0 }
 0x341   :  { %v2187_v40 = vmax.f32 %v1401_v16, 0.0  ;;  %v3191_v3 = vadd.f32 %v3190_v37, %v2781_v55 }
 0x343   :  { %v4331_v48 = vpop.eup %4330  ;;  %v3554_v12 = vadd.f32 %v5837_v45, %v3191_v3  ;;  %v2461_v20 = vpack.c.bf16 %v2187_v40, %v2185_v11 }
 0x344   :  { %3874 = vst.msk [vmem:[%s7104_s7 + $0xd0] sm:$0xff] %vm3847_vm1, %v4331_v48  ;;  %v1814_v27 = vpop.f32.mrf.mxu2 }
 0x345   :  { %4332 = vtanh.f32 %v3554_v12  ;;  %v1815_v58 = vadd.f32 %v1814_v27, %v5697_v62  ;;  %2823 = vmatmul.bf16.gmra.mxu3 %v2461_v20 }
 0x346   :  { %v1403_v0 = vpop.f32.mrf.mxu1 }
 0x347   :  { %v2192_v26 = vmax.f32 %v1815_v58, 0.0  ;;  %v1404_v17 = vadd.f32 %v1403_v0, %v5708_v22 }
 0x348   :  { %v2784_v37 = vpop.f32.mrf.mxu3  ;;  %v3198_v39 = vpop.f32.mrf.mxu0 }
 0x349   :  { %v3194_v32 = vadd.f32 %v3193_v7, %v2784_v37  ;;  %1442 = vmatmul.bf16.gmra.mxu1 %v5330_v56  ;;  %1856 = vmatmul.bf16.gmra.mxu2 %v5381_v6  ;;  %v2464_v2 = vpack.c.bf16 %v2192_v26, %v2190_v8  ;;  %v2189_v31 = vmax.f32 %v1404_v17, 0.0 }
 0x34b   :  { %v4333_v14 = vpop.eup %4332  ;;  %v3555_v44 = vadd.f32 %v5837_v45, %v3194_v32  ;;  %3237 = vmatmul.bf16.gmra.mxu0 %v2464_v2  ;;  %v6090_v2 = vld [vmem:[%s7103_s6] ss:$0 sm:$0xff] }
 0x34c   :  { %3875 = vst.msk [vmem:[%s7104_s7 + $0xd8] sm:$0xff] %vm3847_vm1, %v4333_v14  ;;  %v1817_v43 = vpop.f32.mrf.mxu2 }
 0x34d   :  { %4334 = vtanh.f32 %v3555_v44  ;;  %v1818_v54 = vadd.f32 %v1817_v43, %v5697_v62 }
 0x34e   :  { %v1405_v35 = vpop.f32.mrf.mxu1 }
 0x34f   :  { %v1406_v25 = vadd.f32 %v1405_v35, %v5708_v22  ;;  %v2194_v55 = vmax.f32 %v1818_v54, 0.0 }
 0x350   :  { %v2786_v56 = vpop.f32.mrf.mxu3  ;;  %v3200_v47 = vpop.f32.mrf.mxu0 }
 0x351   :  { %v2191_v7 = vmax.f32 %v1406_v25, 0.0  ;;  %v3196_v36 = vadd.f32 %v3195_v38, %v2786_v56 }
 0x353   :  { %v4335_v41 = vpop.eup %4334  ;;  %v3556_v46 = vadd.f32 %v5837_v45, %v3196_v36  ;;  %v2463_v52 = vpack.c.bf16 %v2191_v7, %v2189_v31 }
 0x354   :  { %3876 = vst.msk [vmem:[%s7104_s7 + $0xe0] sm:$0xff] %vm3847_vm1, %v4335_v41  ;;  %v1819_v15 = vpop.f32.mrf.mxu2 }
 0x355   :  { %4336 = vtanh.f32 %v3556_v46  ;;  %v1820_v5 = vadd.f32 %v1819_v15, %v5697_v62  ;;  %2828 = vmatmul.bf16.gmra.mxu3 %v2463_v52 }
 0x356   :  { %v1408_v16 = vpop.f32.mrf.mxu1 }
 0x357   :  { %v2196_v11 = vmax.f32 %v1820_v5, 0.0  ;;  %v1409_v27 = vadd.f32 %v1408_v16, %v5708_v22 }
 0x358   :  { %v2789_v38 = vpop.f32.mrf.mxu3  ;;  %v3203_v40 = vpop.f32.mrf.mxu0 }
 0x359   :  { %v3199_v3 = vadd.f32 %v3198_v39, %v2789_v38  ;;  %1447 = vmatmul.bf16.gmra.mxu1 %v5381_v6  ;;  %1861 = vmatmul.bf16.gmra.mxu2 %v5416_v42  ;;  %v2466_v48 = vpack.c.bf16 %v2196_v11, %v2194_v55  ;;  %v2193_v26 = vmax.f32 %v1409_v27, 0.0 }
 0x35b   :  { %v4337_v4 = vpop.eup %4336  ;;  %v3557_v12 = vadd.f32 %v5837_v45, %v3199_v3  ;;  %3242 = vmatmul.bf16.gmra.mxu0 %v2466_v48 }
 0x35c   :  { %3877 = vst.msk [vmem:[%s7104_s7 + $0xe8] sm:$0xff] %vm3847_vm1, %v4337_v4  ;;  %v1822_v20 = vpop.f32.mrf.mxu2 }
 0x35d   :  { %4338 = vtanh.f32 %v3557_v12  ;;  %v1823_v45 = vadd.f32 %v1822_v20, %v5697_v62 }
 0x35e   :  { %v1410_v58 = vpop.f32.mrf.mxu1 }
 0x35f   :  { %v1411_v0 = vadd.f32 %v1410_v58, %v5708_v22  ;;  %v2198_v25 = vmax.f32 %v1823_v45, 0.0 }
 0x360   :  { %v2791_v6 = vpop.f32.mrf.mxu3  ;;  %v3205_v8 = vpop.f32.mrf.mxu0 }
 0x361   :  { %v2195_v37 = vmax.f32 %v1411_v0, 0.0  ;;  %v3201_v39 = vadd.f32 %v3200_v47, %v2791_v6 }
 0x363   :  { %v4339_v32 = vpop.eup %4338  ;;  %v3558_v14 = vadd.f32 %v6090_v2, %v3201_v39  ;;  %v2465_v44 = vpack.c.bf16 %v2195_v37, %v2193_v26 }
 0x364   :  { %3878 = vst.msk [vmem:[%s7104_s7 + $0xf0] sm:$0xff] %vm3847_vm1, %v4339_v32  ;;  %v1824_v43 = vpop.f32.mrf.mxu2 }
 0x365   :  { %4340 = vtanh.f32 %v3558_v14  ;;  %v1825_v17 = vadd.f32 %v1824_v43, %v5697_v62  ;;  %2833 = vmatmul.bf16.gmra.mxu3 %v2465_v44 }
 0x366   :  { %v1413_v35 = vpop.f32.mrf.mxu1 }
 0x367   :  { %v2200_v56 = vmax.f32 %v1825_v17, 0.0  ;;  %v1414_v52 = vadd.f32 %v1413_v35, %v5708_v22 }
 0x368   :  { %v2794_v47 = vpop.f32.mrf.mxu3  ;;  %v3208_v31 = vpop.f32.mrf.mxu0 }
 0x369   :  { %v3204_v7 = vadd.f32 %v3203_v40, %v2794_v47  ;;  %1452 = vmatmul.bf16.gmra.mxu1 %v5416_v42  ;;  %1866 = vmatmul.bf16.gmra.mxu2 %v5453_v1  ;;  %v2468_v36 = vpack.c.bf16 %v2200_v56, %v2198_v25  ;;  %v2197_v55 = vmax.f32 %v1414_v52, 0.0 }
 0x36b   :  { %v4341_v41 = vpop.eup %4340  ;;  %v3559_v54 = vadd.f32 %v6090_v2, %v3204_v7  ;;  %3247 = vmatmul.bf16.gmra.mxu0 %v2468_v36 }
 0x36c   :  { %3879 = vst.msk [vmem:[%s7104_s7 + $0xf8] sm:$0xff] %vm3847_vm1, %v4341_v41  ;;  %v1827_v46 = vpop.f32.mrf.mxu2 }
 0x36d   :  { %4342 = vtanh.f32 %v3559_v54  ;;  %v1828_v3 = vadd.f32 %v1827_v46, %v5697_v62 }
 0x36e   :  { %v1415_v15 = vpop.f32.mrf.mxu1 }
 0x36f   :  { %v1416_v5 = vadd.f32 %v1415_v15, %v5708_v22  ;;  %v2202_v58 = vmax.f32 %v1828_v3, 0.0 }
 0x370   :  { %v2796_v42 = vpop.f32.mrf.mxu3  ;;  %v3210_v16 = vpop.f32.mrf.mxu0 }
 0x371   :  { %v2199_v11 = vmax.f32 %v1416_v5, 0.0  ;;  %v3206_v38 = vadd.f32 %v3205_v8, %v2796_v42 }
 0x373   :  { %v4343_v40 = vpop.eup %4342  ;;  %v3560_v48 = vadd.f32 %v6090_v2, %v3206_v38  ;;  %v2467_v4 = vpack.c.bf16 %v2199_v11, %v2197_v55 }
 0x374   :  { %3880 = vst.msk [vmem:[%s7104_s7 + $0x100] sm:$0xff] %vm3847_vm1, %v4343_v40  ;;  %v1829_v12 = vpop.f32.mrf.mxu2 }
 0x375   :  { %4344 = vtanh.f32 %v3560_v48  ;;  %v1830_v20 = vadd.f32 %v1829_v12, %v5697_v62  ;;  %2838 = vmatmul.bf16.gmra.mxu3 %v2467_v4 }
 0x376   :  { %v1418_v27 = vpop.f32.mrf.mxu1 }
 0x377   :  { %v2204_v0 = vmax.f32 %v1830_v20, 0.0  ;;  %v1419_v14 = vadd.f32 %v1418_v27, %v5708_v22 }
 0x378   :  { %v2799_v6 = vpop.f32.mrf.mxu3  ;;  %v3213_v8 = vpop.f32.mrf.mxu0 }
 0x379   :  { %v3209_v26 = vadd.f32 %v3208_v31, %v2799_v6  ;;  %1457 = vmatmul.bf16.gmra.mxu1 %v5453_v1  ;;  %1871 = vmatmul.bf16.gmra.mxu2 %v5498_v63  ;;  %v2470_v37 = vpack.c.bf16 %v2204_v0, %v2202_v58  ;;  %v2201_v35 = vmax.f32 %v1419_v14, 0.0 }
 0x37b   :  { %v4345_v39 = vpop.eup %4344  ;;  %v3561_v32 = vadd.f32 %v6090_v2, %v3209_v26  ;;  %3252 = vmatmul.bf16.gmra.mxu0 %v2470_v37 }
 0x37c   :  { %3881 = vst.msk [vmem:[%s7104_s7 + $0x108] sm:$0xff] %vm3847_vm1, %v4345_v39  ;;  %v1832_v45 = vpop.f32.mrf.mxu2 }
 0x37d   :  { %4346 = vtanh.f32 %v3561_v32  ;;  %v1833_v31 = vadd.f32 %v1832_v45, %v5697_v62 }
 0x37e   :  { %v1420_v44 = vpop.f32.mrf.mxu1 }
 0x37f   :  { %v1421_v43 = vadd.f32 %v1420_v44, %v5708_v22  ;;  %v2206_v52 = vmax.f32 %v1833_v31, 0.0 }
 0x380   :  { %v2801_v1 = vpop.f32.mrf.mxu3  ;;  %v3215_v17 = vpop.f32.mrf.mxu0 }
 0x381   :  { %v2203_v25 = vmax.f32 %v1421_v43, 0.0  ;;  %v3211_v56 = vadd.f32 %v3210_v16, %v2801_v1 }
 0x383   :  { %v4347_v47 = vpop.eup %4346  ;;  %v3562_v7 = vadd.f32 %v6090_v2, %v3211_v56  ;;  %v2469_v36 = vpack.c.bf16 %v2203_v25, %v2201_v35 }
 0x384   :  { %3882 = vst.msk [vmem:[%s7104_s7 + $0x110] sm:$0xff] %vm3847_vm1, %v4347_v47  ;;  %v1834_v41 = vpop.f32.mrf.mxu2 }
 0x385   :  { %4348 = vtanh.f32 %v3562_v7  ;;  %v1835_v54 = vadd.f32 %v1834_v41, %v5697_v62  ;;  %2843 = vmatmul.bf16.gmra.mxu3 %v2469_v36 }
 0x386   :  { %v1423_v46 = vpop.f32.mrf.mxu1 }
 0x387   :  { %v2208_v15 = vmax.f32 %v1835_v54, 0.0  ;;  %v1424_v3 = vadd.f32 %v1423_v46, %v5708_v22 }
 0x388   :  { %v2804_v5 = vpop.f32.mrf.mxu3  ;;  %v3218_v42 = vpop.f32.mrf.mxu0 }
 0x389   :  { %v3214_v16 = vadd.f32 %v3213_v8, %v2804_v5  ;;  %1462 = vmatmul.bf16.gmra.mxu1 %v5498_v63  ;;  %1876 = vmatmul.bf16.gmra.mxu2 %v5537_v57  ;;  %v2472_v55 = vpack.c.bf16 %v2208_v15, %v2206_v52  ;;  %v2205_v20 = vmax.f32 %v1424_v3, 0.0 }
 0x38b   :  { %v4349_v11 = vpop.eup %4348  ;;  %v3563_v38 = vadd.f32 %v6090_v2, %v3214_v16  ;;  %3257 = vmatmul.bf16.gmra.mxu0 %v2472_v55 }
 0x38c   :  { %3883 = vst.msk [vmem:[%s7104_s7 + $0x118] sm:$0xff] %vm3847_vm1, %v4349_v11  ;;  %v1837_v40 = vpop.f32.mrf.mxu2 }
 0x38d   :  { %4350 = vtanh.f32 %v3563_v38  ;;  %v1838_v6 = vadd.f32 %v1837_v40, %v5697_v62 }
 0x38e   :  { %v1425_v48 = vpop.f32.mrf.mxu1 }
 0x38f   :  { %v1426_v4 = vadd.f32 %v1425_v48, %v5708_v22  ;;  %v2210_v45 = vmax.f32 %v1838_v6, 0.0 }
 0x390   :  { %v2806_v63 = vpop.f32.mrf.mxu3  ;;  %v3220_v12 = vpop.f32.mrf.mxu0 }
 0x391   :  { %v2207_v27 = vmax.f32 %v1426_v4, 0.0  ;;  %v3216_v58 = vadd.f32 %v3215_v17, %v2806_v63 }
 0x393   :  { %v4351_v0 = vpop.eup %4350  ;;  %v3564_v8 = vadd.f32 %v6090_v2, %v3216_v58  ;;  %v2471_v26 = vpack.c.bf16 %v2207_v27, %v2205_v20 }
 0x394   :  { %3884 = vst.msk [vmem:[%s7104_s7 + $0x120] sm:$0xff] %vm3847_vm1, %v4351_v0  ;;  %v1839_v37 = vpop.f32.mrf.mxu2 }
 0x395   :  { %4352 = vtanh.f32 %v3564_v8  ;;  %v1840_v39 = vadd.f32 %v1839_v37, %v5697_v62  ;;  %2848 = vmatmul.bf16.gmra.mxu3 %v2471_v26 }
 0x396   :  { %v1428_v32 = vpop.f32.mrf.mxu1 }
 0x397   :  { %v2212_v14 = vmax.f32 %v1840_v39, 0.0  ;;  %v1429_v47 = vadd.f32 %v1428_v32, %v5708_v22 }
 0x398   :  { %v2809_v44 = vpop.f32.mrf.mxu3  ;;  %v3223_v43 = vpop.f32.mrf.mxu0 }
 0x399   :  { %v3219_v1 = vadd.f32 %v3218_v42, %v2809_v44  ;;  %1467 = vmatmul.bf16.gmra.mxu1 %v5537_v57  ;;  %1881 = vmatmul.bf16.gmra.mxu2 %v5571_v9  ;;  %v2474_v17 = vpack.c.bf16 %v2212_v14, %v2210_v45  ;;  %v2209_v41 = vmax.f32 %v1429_v47, 0.0 }
 0x39b   :  { %v4353_v35 = vpop.eup %4352  ;;  %v3565_v25 = vadd.f32 %v6090_v2, %v3219_v1  ;;  %3262 = vmatmul.bf16.gmra.mxu0 %v2474_v17 }
 0x39c   :  { %3885 = vst.msk [vmem:[%s7104_s7 + $0x128] sm:$0xff] %vm3847_vm1, %v4353_v35  ;;  %v1842_v56 = vpop.f32.mrf.mxu2 }
 0x39d   :  { %4354 = vtanh.f32 %v3565_v25  ;;  %v1843_v15 = vadd.f32 %v1842_v56, %v5697_v62 }
 0x39e   :  { %v1430_v31 = vpop.f32.mrf.mxu1 }
 0x39f   :  { %v1431_v7 = vadd.f32 %v1430_v31, %v5708_v22  ;;  %v2214_v38 = vmax.f32 %v1843_v15, 0.0 }
 0x3a0   :  { %v2811_v57 = vpop.f32.mrf.mxu3  ;;  %v3225_v36 = vpop.f32.mrf.mxu0 }
 0x3a1   :  { %v2211_v54 = vmax.f32 %v1431_v7, 0.0  ;;  %v3221_v46 = vadd.f32 %v3220_v12, %v2811_v57 }
 0x3a3   :  { %v4355_v52 = vpop.eup %4354  ;;  %v3566_v5 = vadd.f32 %v6090_v2, %v3221_v46  ;;  %v2473_v42 = vpack.c.bf16 %v2211_v54, %v2209_v41 }
 0x3a4   :  { %3886 = vst.msk [vmem:[%s7104_s7 + $0x130] sm:$0xff] %vm3847_vm1, %v4355_v52  ;;  %v1844_v16 = vpop.f32.mrf.mxu2 }
 0x3a5   :  { %4356 = vtanh.f32 %v3566_v5  ;;  %v1845_v55 = vadd.f32 %v1844_v16, %v5697_v62  ;;  %2853 = vmatmul.bf16.gmra.mxu3 %v2473_v42 }
 0x3a6   :  { %v1433_v11 = vpop.f32.mrf.mxu1 }
 0x3a7   :  { %v2216_v40 = vmax.f32 %v1845_v55, 0.0  ;;  %v1434_v58 = vadd.f32 %v1433_v11, %v5708_v22 }
 0x3a8   :  { %v2814_v3 = vpop.f32.mrf.mxu3  ;;  %v3228_v48 = vpop.f32.mrf.mxu0 }
 0x3a9   :  { %v3224_v4 = vadd.f32 %v3223_v43, %v2814_v3  ;;  %1472 = vmatmul.bf16.gmra.mxu1 %v5571_v9  ;;  %1886 = vmatmul.bf16.gmra.mxu2 %v5614_v28  ;;  %v2476_v63 = vpack.c.bf16 %v2216_v40, %v2214_v38  ;;  %v2213_v26 = vmax.f32 %v1434_v58, 0.0 }
 0x3ab   :  { %v4357_v12 = vpop.eup %4356  ;;  %v3567_v20 = vadd.f32 %v6090_v2, %v3224_v4  ;;  %3267 = vmatmul.bf16.gmra.mxu0 %v2476_v63 }
 0x3ac   :  { %3887 = vst.msk [vmem:[%s7104_s7 + $0x138] sm:$0xff] %vm3847_vm1, %v4357_v12  ;;  %v1847_v27 = vpop.f32.mrf.mxu2 }
 0x3ad   :  { %4358 = vtanh.f32 %v3567_v20  ;;  %v1848_v45 = vadd.f32 %v1847_v27, %v5697_v62 }
 0x3ae   :  { %v1435_v0 = vpop.f32.mrf.mxu1 }
 0x3af   :  { %v1436_v6 = vadd.f32 %v1435_v0, %v5708_v22  ;;  %v2218_v35 = vmax.f32 %v1848_v45, 0.0 }
 0x3b0   :  { %v2816_v9 = vpop.f32.mrf.mxu3  ;;  %v3230_v8 = vpop.f32.mrf.mxu0 }
 0x3b1   :  { %v2215_v37 = vmax.f32 %v1436_v6, 0.0  ;;  %v3226_v39 = vadd.f32 %v3225_v36, %v2816_v9 }
 0x3b3   :  { %v4359_v32 = vpop.eup %4358  ;;  %v3568_v14 = vadd.f32 %v6090_v2, %v3226_v39  ;;  %v2475_v44 = vpack.c.bf16 %v2215_v37, %v2213_v26 }
 0x3b4   :  { %3888 = vst.msk [vmem:[%s7104_s7 + $0x140] sm:$0xff] %vm3847_vm1, %v4359_v32  ;;  %v1849_v43 = vpop.f32.mrf.mxu2 }
 0x3b5   :  { %4360 = vtanh.f32 %v3568_v14  ;;  %v1850_v1 = vadd.f32 %v1849_v43, %v5697_v62  ;;  %2858 = vmatmul.bf16.gmra.mxu3 %v2475_v44 }
 0x3b6   :  { %v1438_v17 = vpop.f32.mrf.mxu1 }
 0x3b7   :  { %v2220_v25 = vmax.f32 %v1850_v1, 0.0  ;;  %v1439_v54 = vadd.f32 %v1438_v17, %v5708_v22 }
 0x3b8   :  { %v2819_v56 = vpop.f32.mrf.mxu3  ;;  %v3233_v47 = vpop.f32.mrf.mxu0 }
 0x3b9   :  { %v3229_v31 = vadd.f32 %v3228_v48, %v2819_v56  ;;  %1477 = vmatmul.bf16.gmra.mxu1 %v5614_v28  ;;  %1891 = vmatmul.bf16.gmra.mxu2 %v5654_v13  ;;  %v2478_v7 = vpack.c.bf16 %v2220_v25, %v2218_v35  ;;  %v2217_v5 = vmax.f32 %v1439_v54, 0.0 }
 0x3bb   :  { %v4361_v57 = vpop.eup %4360  ;;  %v3569_v36 = vadd.f32 %v6090_v2, %v3229_v31  ;;  %3272 = vmatmul.bf16.gmra.mxu0 %v2478_v7 }
 0x3bc   :  { %3889 = vst.msk [vmem:[%s7104_s7 + $0x148] sm:$0xff] %vm3847_vm1, %v4361_v57  ;;  %v1852_v41 = vpop.f32.mrf.mxu2 }
 0x3bd   :  { %4362 = vtanh.f32 %v3569_v36  ;;  %v1853_v11 = vadd.f32 %v1852_v41, %v5697_v62 }
 0x3be   :  { %v1440_v46 = vpop.f32.mrf.mxu1 }
 0x3bf   :  { %v1441_v52 = vadd.f32 %v1440_v46, %v5708_v22  ;;  %v2222_v63 = vmax.f32 %v1853_v11, 0.0 }
 0x3c0   :  { %v2821_v28 = vpop.f32.mrf.mxu3  ;;  %v3235_v15 = vpop.f32.mrf.mxu0 }
 0x3c1   :  { %v2219_v42 = vmax.f32 %v1441_v52, 0.0  ;;  %v3231_v16 = vadd.f32 %v3230_v8, %v2821_v28 }
 0x3c3   :  { %v4363_v55 = vpop.eup %4362  ;;  %v3570_v38 = vadd.f32 %v6090_v2, %v3231_v16  ;;  %v2477_v40 = vpack.c.bf16 %v2219_v42, %v2217_v5 }
 0x3c4   :  { %3890 = vst.msk [vmem:[%s7104_s7 + $0x150] sm:$0xff] %vm3847_vm1, %v4363_v55  ;;  %v1854_v3 = vpop.f32.mrf.mxu2 }
 0x3c5   :  { %4364 = vtanh.f32 %v3570_v38  ;;  %v1855_v48 = vadd.f32 %v1854_v3, %v5697_v62  ;;  %2863 = vmatmul.bf16.gmra.mxu3 %v2477_v40 }
 0x3c6   :  { %v1443_v4 = vpop.f32.mrf.mxu1 }
 0x3c7   :  { %v2224_v12 = vmax.f32 %v1855_v48, 0.0  ;;  %v1444_v26 = vadd.f32 %v1443_v4, %v5708_v22 }
 0x3c8   :  { %v2824_v20 = vpop.f32.mrf.mxu3  ;;  %v3238_v27 = vpop.f32.mrf.mxu0 }
 0x3c9   :  { %v3234_v58 = vadd.f32 %v3233_v47, %v2824_v20  ;;  %1482 = vmatmul.bf16.gmra.mxu1 %v5654_v13  ;;  %1896 = vmatmul.bf16.gmra.mxu2 %v5680_v60  ;;  %v2480_v0 = vpack.c.bf16 %v2224_v12, %v2222_v63  ;;  %v2221_v45 = vmax.f32 %v1444_v26, 0.0 }
 0x3cb   :  { %v4365_v6 = vpop.eup %4364  ;;  %v3571_v9 = vadd.f32 %v6090_v2, %v3234_v58  ;;  %3277 = vmatmul.bf16.gmra.mxu0 %v2480_v0 }
 0x3cc   :  { %3891 = vst.msk [vmem:[%s7104_s7 + $0x158] sm:$0xff] %vm3847_vm1, %v4365_v6  ;;  %v1857_v8 = vpop.f32.mrf.mxu2 }
 0x3cd   :  { %4366 = vtanh.f32 %v3571_v9  ;;  %v1858_v1 = vadd.f32 %v1857_v8, %v5697_v62 }
 0x3ce   :  { %v1445_v37 = vpop.f32.mrf.mxu1 }
 0x3cf   :  { %v1446_v39 = vadd.f32 %v1445_v37, %v5708_v22  ;;  %v2226_v31 = vmax.f32 %v1858_v1, 0.0 }
 0x3d0   :  { %v2826_v13 = vpop.f32.mrf.mxu3  ;;  %v3240_v32 = vpop.f32.mrf.mxu0 }
 0x3d1   :  { %v2223_v14 = vmax.f32 %v1446_v39, 0.0  ;;  %v3236_v44 = vadd.f32 %v3235_v15, %v2826_v13 }
 0x3d3   :  { %v4367_v43 = vpop.eup %4366  ;;  %v3572_v17 = vadd.f32 %v6090_v2, %v3236_v44  ;;  %v2479_v35 = vpack.c.bf16 %v2223_v14, %v2221_v45 }
 0x3d4   :  { %3892 = vst.msk [vmem:[%s7104_s7 + $0x160] sm:$0xff] %vm3847_vm1, %v4367_v43  ;;  %v1859_v25 = vpop.f32.mrf.mxu2 }
 0x3d5   :  { %4368 = vtanh.f32 %v3572_v17  ;;  %v1860_v56 = vadd.f32 %v1859_v25, %v5697_v62  ;;  %2868 = vmatmul.bf16.gmra.mxu3 %v2479_v35 }
 0x3d6   :  { %v1448_v47 = vpop.f32.mrf.mxu1 }
 0x3d7   :  { %v2228_v7 = vmax.f32 %v1860_v56, 0.0  ;;  %v1449_v15 = vadd.f32 %v1448_v47, %v5708_v22 }
 0x3d8   :  { %v2829_v57 = vpop.f32.mrf.mxu3  ;;  %v3243_v36 = vpop.f32.mrf.mxu0 }
 0x3d9   :  { %v3239_v41 = vadd.f32 %v3238_v27, %v2829_v57  ;;  %1487 = vmatmul.bf16.gmra.mxu1 %v5680_v60  ;;  %1901 = vmatmul.bf16.gmra.mxu2 %v5701_v33  ;;  %v2482_v54 = vpack.c.bf16 %v2228_v7, %v2226_v31  ;;  %v2225_v55 = vmax.f32 %v1449_v15, 0.0 }
 0x3db   :  { %v4369_v46 = vpop.eup %4368  ;;  %v3573_v52 = vadd.f32 %v6090_v2, %v3239_v41  ;;  %3282 = vmatmul.bf16.gmra.mxu0 %v2482_v54 }
 0x3dc   :  { %3893 = vst.msk [vmem:[%s7104_s7 + $0x168] sm:$0xff] %vm3847_vm1, %v4369_v46  ;;  %v1862_v28 = vpop.f32.mrf.mxu2 }
 0x3dd   :  { %4370 = vtanh.f32 %v3573_v52  ;;  %v1863_v3 = vadd.f32 %v1862_v28, %v5697_v62 }
 0x3de   :  { %v1450_v5 = vpop.f32.mrf.mxu1 }
 0x3df   :  { %v1451_v42 = vadd.f32 %v1450_v5, %v5708_v22  ;;  %v2230_v27 = vmax.f32 %v1863_v3, 0.0 }
 0x3e0   :  { %v2831_v60 = vpop.f32.mrf.mxu3  ;;  %v3245_v16 = vpop.f32.mrf.mxu0 }
 0x3e1   :  { %v2227_v11 = vmax.f32 %v1451_v42, 0.0  ;;  %v3241_v38 = vadd.f32 %v3240_v32, %v2831_v60 }
 0x3e3   :  { %v4371_v40 = vpop.eup %4370  ;;  %v3574_v48 = vadd.f32 %v6090_v2, %v3241_v38  ;;  %v2481_v4 = vpack.c.bf16 %v2227_v11, %v2225_v55 }
 0x3e4   :  { %3894 = vst.msk [vmem:[%s7104_s7 + $0x170] sm:$0xff] %vm3847_vm1, %v4371_v40  ;;  %v1864_v63 = vpop.f32.mrf.mxu2 }
 0x3e5   :  { %4372 = vtanh.f32 %v3574_v48  ;;  %v1865_v12 = vadd.f32 %v1864_v63, %v5697_v62  ;;  %2873 = vmatmul.bf16.gmra.mxu3 %v2481_v4 }
 0x3e6   :  { %v1453_v20 = vpop.f32.mrf.mxu1 }
 0x3e7   :  { %v2232_v58 = vmax.f32 %v1865_v12, 0.0  ;;  %v1454_v13 = vadd.f32 %v1453_v20, %v5708_v22 }
 0x3e8   :  { %v2834_v0 = vpop.f32.mrf.mxu3  ;;  %v3248_v6 = vpop.f32.mrf.mxu0 }
 0x3e9   :  { %v3244_v9 = vadd.f32 %v3243_v36, %v2834_v0  ;;  %1492 = vmatmul.bf16.gmra.mxu1 %v5701_v33  ;;  %1906 = vmatmul.bf16.gmra.mxu2 %v4888_v53  ;;  %v2484_v8 = vpack.c.bf16 %v2232_v58, %v2230_v27  ;;  %v2229_v44 = vmax.f32 %v1454_v13, 0.0 }
 0x3eb   :  { %v4373_v26 = vpop.eup %4372  ;;  %v3575_v37 = vadd.f32 %v6090_v2, %v3244_v9  ;;  %3287 = vmatmul.bf16.gmra.mxu0 %v2484_v8 }
 0x3ec   :  { %3895 = vst.msk [vmem:[%s7104_s7 + $0x178] sm:$0xff] %vm3847_vm1, %v4373_v26  ;;  %v1867_v39 = vpop.f32.mrf.mxu2 }
 0x3ed   :  { %4374 = vtanh.f32 %v3575_v37  ;;  %v1868_v35 = vadd.f32 %v1867_v39, %v5697_v62 }
 0x3ee   :  { %v1455_v32 = vpop.f32.mrf.mxu1 }
 0x3ef   :  { %v1456_v45 = vadd.f32 %v1455_v32, %v5708_v22  ;;  %v2234_v57 = vmax.f32 %v1868_v35, 0.0 }
 0x3f0   :  { %v2836_v33 = vpop.f32.mrf.mxu3  ;;  %v3250_v14 = vpop.f32.mrf.mxu0 }
 0x3f1   :  { %v2231_v43 = vmax.f32 %v1456_v45, 0.0  ;;  %v3246_v1 = vadd.f32 %v3245_v16, %v2836_v33 }
 0x3f3   :  { %v4375_v17 = vpop.eup %4374  ;;  %v3576_v25 = vadd.f32 %v6090_v2, %v3246_v1  ;;  %v2483_v56 = vpack.c.bf16 %v2231_v43, %v2229_v44 }
 0x3f4   :  { %3896 = vst.msk [vmem:[%s7104_s7 + $0x180] sm:$0xff] %vm3847_vm1, %v4375_v17  ;;  %v1869_v47 = vpop.f32.mrf.mxu2 }
 0x3f5   :  { %4376 = vtanh.f32 %v3576_v25  ;;  %v1870_v31 = vadd.f32 %v1869_v47, %v5697_v62  ;;  %2878 = vmatmul.bf16.gmra.mxu3 %v2483_v56 }
 0x3f6   :  { %v1458_v7 = vpop.f32.mrf.mxu1 }
 0x3f7   :  { %v2236_v36 = vmax.f32 %v1870_v31, 0.0  ;;  %v1459_v42 = vadd.f32 %v1458_v7, %v5708_v22 }
 0x3f8   :  { %v2839_v41 = vpop.f32.mrf.mxu3  ;;  %v3253_v54 = vpop.f32.mrf.mxu0 }
 0x3f9   :  { %v3249_v46 = vadd.f32 %v3248_v6, %v2839_v41  ;;  %1497 = vmatmul.bf16.gmra.mxu1 %v4888_v53  ;;  %1911 = vmatmul.bf16.gmra.mxu2 %v4933_v19  ;;  %v2486_v52 = vpack.c.bf16 %v2236_v36, %v2234_v57  ;;  %v2233_v11 = vmax.f32 %v1459_v42, 0.0 }
 0x3fb   :  { %v4377_v28 = vpop.eup %4376  ;;  %v3577_v15 = vadd.f32 %v6090_v2, %v3249_v46  ;;  %3292 = vmatmul.bf16.gmra.mxu0 %v2486_v52 }
 0x3fc   :  { %3897 = vst.msk [vmem:[%s7104_s7 + $0x188] sm:$0xff] %vm3847_vm1, %v4377_v28  ;;  %v1872_v5 = vpop.f32.mrf.mxu2 }
 0x3fd   :  { %4378 = vtanh.f32 %v3577_v15  ;;  %v1873_v48 = vadd.f32 %v1872_v5, %v5697_v62 }
 0x3fe   :  { %v1460_v60 = vpop.f32.mrf.mxu1 }
 0x3ff   :  { %v1461_v16 = vadd.f32 %v1460_v60, %v5708_v22  ;;  %v2238_v58 = vmax.f32 %v1873_v48, 0.0 }
 0x400   :  { %v2841_v53 = vpop.f32.mrf.mxu3  ;;  %v3255_v55 = vpop.f32.mrf.mxu0 }
 0x401   :  { %v2235_v38 = vmax.f32 %v1461_v16, 0.0  ;;  %v3251_v40 = vadd.f32 %v3250_v14, %v2841_v53 }
 0x403   :  { %v4379_v3 = vpop.eup %4378  ;;  %v3578_v4 = vadd.f32 %v6090_v2, %v3251_v40  ;;  %v2485_v63 = vpack.c.bf16 %v2235_v38, %v2233_v11 }
 0x404   :  { %3898 = vst.msk [vmem:[%s7104_s7 + $0x190] sm:$0xff] %vm3847_vm1, %v4379_v3  ;;  %v1874_v12 = vpop.f32.mrf.mxu2 }
 0x405   :  { %4380 = vtanh.f32 %v3578_v4  ;;  %v1875_v20 = vadd.f32 %v1874_v12, %v5697_v62  ;;  %2883 = vmatmul.bf16.gmra.mxu3 %v2485_v63 }
 0x406   :  { %v1463_v27 = vpop.f32.mrf.mxu1 }
 0x407   :  { %v2240_v0 = vmax.f32 %v1875_v20, 0.0  ;;  %v1464_v32 = vadd.f32 %v1463_v27, %v5708_v22 }
 0x408   :  { %v2844_v6 = vpop.f32.mrf.mxu3  ;;  %v3258_v9 = vpop.f32.mrf.mxu0 }
 0x409   :  { %v3254_v8 = vadd.f32 %v3253_v54, %v2844_v6  ;;  %1502 = vmatmul.bf16.gmra.mxu1 %v4933_v19  ;;  %1916 = vmatmul.bf16.gmra.mxu2 %v4975_v49  ;;  %v2488_v26 = vpack.c.bf16 %v2240_v0, %v2238_v58  ;;  %v2237_v44 = vmax.f32 %v1464_v32, 0.0 }
 0x40b   :  { %v4381_v37 = vpop.eup %4380  ;;  %v3579_v39 = vadd.f32 %v6090_v2, %v3254_v8  ;;  %3297 = vmatmul.bf16.gmra.mxu0 %v2488_v26 }
 0x40c   :  { %3899 = vst.msk [vmem:[%s7104_s7 + $0x198] sm:$0xff] %vm3847_vm1, %v4381_v37  ;;  %v1877_v13 = vpop.f32.mrf.mxu2 }
 0x40d   :  { %4382 = vtanh.f32 %v3579_v39  ;;  %v1878_v35 = vadd.f32 %v1877_v13, %v5697_v62 }
 0x40e   :  { %v1465_v45 = vpop.f32.mrf.mxu1 }
 0x40f   :  { %v1466_v33 = vadd.f32 %v1465_v45, %v5708_v22  ;;  %v2242_v57 = vmax.f32 %v1878_v35, 0.0 }
 0x410   :  { %v2846_v19 = vpop.f32.mrf.mxu3  ;;  %v3260_v14 = vpop.f32.mrf.mxu0 }
 0x411   :  { %v2239_v43 = vmax.f32 %v1466_v33, 0.0  ;;  %v3256_v1 = vadd.f32 %v3255_v55, %v2846_v19 }
 0x413   :  { %v4383_v17 = vpop.eup %4382  ;;  %v3580_v25 = vadd.f32 %v6090_v2, %v3256_v1  ;;  %v2487_v56 = vpack.c.bf16 %v2239_v43, %v2237_v44 }
 0x414   :  { %3900 = vst.msk [vmem:[%s7104_s7 + $0x1a0] sm:$0xff] %vm3847_vm1, %v4383_v17  ;;  %v1879_v47 = vpop.f32.mrf.mxu2 }
 0x415   :  { %4384 = vtanh.f32 %v3580_v25  ;;  %v1880_v31 = vadd.f32 %v1879_v47, %v5697_v62  ;;  %2888 = vmatmul.bf16.gmra.mxu3 %v2487_v56 }
 0x416   :  { %v1468_v7 = vpop.f32.mrf.mxu1 }
 0x417   :  { %v2244_v36 = vmax.f32 %v1880_v31, 0.0  ;;  %v1469_v42 = vadd.f32 %v1468_v7, %v5708_v22 }
 0x418   :  { %v2849_v41 = vpop.f32.mrf.mxu3  ;;  %v3263_v54 = vpop.f32.mrf.mxu0 }
 0x419   :  { %v3259_v46 = vadd.f32 %v3258_v9, %v2849_v41  ;;  %1507 = vmatmul.bf16.gmra.mxu1 %v4975_v49  ;;  %1921 = vmatmul.bf16.gmra.mxu2 %v5023_v18  ;;  %v2490_v52 = vpack.c.bf16 %v2244_v36, %v2242_v57  ;;  %v2241_v55 = vmax.f32 %v1469_v42, 0.0 }
 0x41b   :  { %v4385_v28 = vpop.eup %4384  ;;  %v3581_v15 = vadd.f32 %v6090_v2, %v3259_v46  ;;  %3302 = vmatmul.bf16.gmra.mxu0 %v2490_v52 }
 0x41c   :  { %3901 = vst.msk [vmem:[%s7104_s7 + $0x1a8] sm:$0xff] %vm3847_vm1, %v4385_v28  ;;  %v1882_v5 = vpop.f32.mrf.mxu2 }
 0x41d   :  { %4386 = vtanh.f32 %v3581_v15  ;;  %v1883_v3 = vadd.f32 %v1882_v5, %v5697_v62 }
 0x41e   :  { %v1470_v60 = vpop.f32.mrf.mxu1 }
 0x41f   :  { %v1471_v16 = vadd.f32 %v1470_v60, %v5708_v22  ;;  %v2246_v27 = vmax.f32 %v1883_v3, 0.0 }
 0x420   :  { %v2851_v49 = vpop.f32.mrf.mxu3  ;;  %v3265_v53 = vpop.f32.mrf.mxu0 }
 0x421   :  { %v2243_v11 = vmax.f32 %v1471_v16, 0.0  ;;  %v3261_v38 = vadd.f32 %v3260_v14, %v2851_v49 }
 0x423   :  { %v4387_v40 = vpop.eup %4386  ;;  %v3582_v48 = vadd.f32 %v6090_v2, %v3261_v38  ;;  %v2489_v4 = vpack.c.bf16 %v2243_v11, %v2241_v55 }
 0x424   :  { %3902 = vst.msk [vmem:[%s7104_s7 + $0x1b0] sm:$0xff] %vm3847_vm1, %v4387_v40  ;;  %v1884_v63 = vpop.f32.mrf.mxu2 }
 0x425   :  { %4388 = vtanh.f32 %v3582_v48  ;;  %v1885_v12 = vadd.f32 %v1884_v63, %v5697_v62  ;;  %2893 = vmatmul.bf16.gmra.mxu3 %v2489_v4 }
 0x426   :  { %v1473_v20 = vpop.f32.mrf.mxu1 }
 0x427   :  { %v2248_v58 = vmax.f32 %v1885_v12, 0.0  ;;  %v1474_v13 = vadd.f32 %v1473_v20, %v5708_v22 }
 0x428   :  { %v2854_v0 = vpop.f32.mrf.mxu3  ;;  %v3268_v6 = vpop.f32.mrf.mxu0 }
 0x429   :  { %v3264_v9 = vadd.f32 %v3263_v54, %v2854_v0  ;;  %1512 = vmatmul.bf16.gmra.mxu1 %v5023_v18  ;;  %1926 = vmatmul.bf16.gmra.mxu2 %v5059_v50  ;;  %v2492_v8 = vpack.c.bf16 %v2248_v58, %v2246_v27  ;;  %v2245_v19 = vmax.f32 %v1474_v13, 0.0 }
 0x42b   :  { %v4389_v26 = vpop.eup %4388  ;;  %v3583_v37 = vadd.f32 %v6090_v2, %v3264_v9  ;;  %3307 = vmatmul.bf16.gmra.mxu0 %v2492_v8 }
 0x42c   :  { %3903 = vst.msk [vmem:[%s7104_s7 + $0x1b8] sm:$0xff] %vm3847_vm1, %v4389_v26  ;;  %v1887_v39 = vpop.f32.mrf.mxu2 }
 0x42d   :  { %4390 = vtanh.f32 %v3583_v37  ;;  %v1888_v1 = vadd.f32 %v1887_v39, %v5697_v62 }
 0x42e   :  { %v1475_v32 = vpop.f32.mrf.mxu1 }
 0x42f   :  { %v1476_v45 = vadd.f32 %v1475_v32, %v5708_v22  ;;  %v2250_v31 = vmax.f32 %v1888_v1, 0.0 }
 0x430   :  { %v2856_v18 = vpop.f32.mrf.mxu3  ;;  %v3270_v33 = vpop.f32.mrf.mxu0 }
 0x431   :  { %v2247_v14 = vmax.f32 %v1476_v45, 0.0  ;;  %v3266_v44 = vadd.f32 %v3265_v53, %v2856_v18 }
 0x433   :  { %v4391_v43 = vpop.eup %4390  ;;  %v3584_v17 = vadd.f32 %v6090_v2, %v3266_v44  ;;  %v2491_v35 = vpack.c.bf16 %v2247_v14, %v2245_v19 }
 0x434   :  { %3904 = vst.msk [vmem:[%s7104_s7 + $0x1c0] sm:$0xff] %vm3847_vm1, %v4391_v43  ;;  %v1889_v25 = vpop.f32.mrf.mxu2 }
 0x435   :  { %4392 = vtanh.f32 %v3584_v17  ;;  %v1890_v56 = vadd.f32 %v1889_v25, %v5697_v62  ;;  %2898 = vmatmul.bf16.gmra.mxu3 %v2491_v35 }
 0x436   :  { %v1478_v47 = vpop.f32.mrf.mxu1 }
 0x437   :  { %v2252_v7 = vmax.f32 %v1890_v56, 0.0  ;;  %v1479_v15 = vadd.f32 %v1478_v47, %v5708_v22 }
 0x438   :  { %v2859_v57 = vpop.f32.mrf.mxu3  ;;  %v3273_v36 = vpop.f32.mrf.mxu0 }
 0x439   :  { %v3269_v41 = vadd.f32 %v3268_v6, %v2859_v57  ;;  %1517 = vmatmul.bf16.gmra.mxu1 %v5059_v50  ;;  %1931 = vmatmul.bf16.gmra.mxu2 %v5103_v21  ;;  %v2494_v54 = vpack.c.bf16 %v2252_v7, %v2250_v31  ;;  %v2249_v16 = vmax.f32 %v1479_v15, 0.0 }
 0x43b   :  { %v4393_v46 = vpop.eup %4392  ;;  %v3585_v52 = vadd.f32 %v6090_v2, %v3269_v41  ;;  %3312 = vmatmul.bf16.gmra.mxu0 %v2494_v54 }
 0x43c   :  { %3905 = vst.msk [vmem:[%s7104_s7 + $0x1c8] sm:$0xff] %vm3847_vm1, %v4393_v46  ;;  %v1892_v28 = vpop.f32.mrf.mxu2 }
 0x43d   :  { %4394 = vtanh.f32 %v3585_v52  ;;  %v1893_v11 = vadd.f32 %v1892_v28, %v5697_v62 }
 0x43e   :  { %v1480_v5 = vpop.f32.mrf.mxu1 }
 0x43f   :  { %v1481_v42 = vadd.f32 %v1480_v5, %v5708_v22  ;;  %v2254_v63 = vmax.f32 %v1893_v11, 0.0 }
 0x440   :  { %v2861_v50 = vpop.f32.mrf.mxu3  ;;  %v3275_v60 = vpop.f32.mrf.mxu0 }
 0x441   :  { %v2251_v49 = vmax.f32 %v1481_v42, 0.0  ;;  %v3271_v53 = vadd.f32 %v3270_v33, %v2861_v50 }
 0x443   :  { %v4395_v55 = vpop.eup %4394  ;;  %v3586_v38 = vadd.f32 %v6090_v2, %v3271_v53  ;;  %v2493_v40 = vpack.c.bf16 %v2251_v49, %v2249_v16 }
 0x444   :  { %3906 = vst.msk [vmem:[%s7104_s7 + $0x1d0] sm:$0xff] %vm3847_vm1, %v4395_v55  ;;  %v1894_v3 = vpop.f32.mrf.mxu2 }
 0x445   :  { %4396 = vtanh.f32 %v3586_v38  ;;  %v1895_v48 = vadd.f32 %v1894_v3, %v5697_v62  ;;  %2903 = vmatmul.bf16.gmra.mxu3 %v2493_v40 }
 0x446   :  { %v1483_v4 = vpop.f32.mrf.mxu1 }
 0x447   :  { %v2256_v12 = vmax.f32 %v1895_v48, 0.0  ;;  %v1484_v26 = vadd.f32 %v1483_v4, %v5708_v22 }
 0x448   :  { %v2864_v20 = vpop.f32.mrf.mxu3  ;;  %v3278_v27 = vpop.f32.mrf.mxu0 }
 0x449   :  { %v3274_v58 = vadd.f32 %v3273_v36, %v2864_v20  ;;  %1522 = vmatmul.bf16.gmra.mxu1 %v5103_v21  ;;  %1936 = vmatmul.bf16.gmra.mxu2 %v5158_v61  ;;  %v2496_v0 = vpack.c.bf16 %v2256_v12, %v2254_v63  ;;  %v2253_v32 = vmax.f32 %v1484_v26, 0.0 }
 0x44b   :  { %v4397_v6 = vpop.eup %4396  ;;  %v3587_v9 = vadd.f32 %v6090_v2, %v3274_v58  ;;  %3317 = vmatmul.bf16.gmra.mxu0 %v2496_v0 }
 0x44c   :  { %3907 = vst.msk [vmem:[%s7104_s7 + $0x1d8] sm:$0xff] %vm3847_vm1, %v4397_v6  ;;  %v1897_v8 = vpop.f32.mrf.mxu2 }
 0x44d   :  { %4398 = vtanh.f32 %v3587_v9  ;;  %v1898_v19 = vadd.f32 %v1897_v8, %v5697_v62 }
 0x44e   :  { %v1485_v37 = vpop.f32.mrf.mxu1 }
 0x44f   :  { %v1486_v39 = vadd.f32 %v1485_v37, %v5708_v22  ;;  %v2258_v35 = vmax.f32 %v1898_v19, 0.0 }
 0x450   :  { %v2866_v21 = vpop.f32.mrf.mxu3  ;;  %v3280_v13 = vpop.f32.mrf.mxu0 }
 0x451   :  { %v2255_v45 = vmax.f32 %v1486_v39, 0.0  ;;  %v3276_v18 = vadd.f32 %v3275_v60, %v2866_v21  ;;  %v6351_v60 = vld [vmem:[%s7103_s6] ss:$0 sm:$0xff] }
 0x453   :  { %v4399_v33 = vpop.eup %4398  ;;  %v3588_v14 = vadd.f32 %v6090_v2, %v3276_v18  ;;  %v2495_v44 = vpack.c.bf16 %v2255_v45, %v2253_v32 }
 0x454   :  { %3908 = vst.msk [vmem:[%s7104_s7 + $0x1e0] sm:$0xff] %vm3847_vm1, %v4399_v33  ;;  %v1899_v43 = vpop.f32.mrf.mxu2 }
 0x455   :  { %4400 = vtanh.f32 %v3588_v14  ;;  %v1900_v1 = vadd.f32 %v1899_v43, %v5697_v62  ;;  %2908 = vmatmul.bf16.gmra.mxu3 %v2495_v44 }
 0x456   :  { %v1488_v17 = vpop.f32.mrf.mxu1 }
 0x457   :  { %v2260_v25 = vmax.f32 %v1900_v1, 0.0  ;;  %v1489_v54 = vadd.f32 %v1488_v17, %v5708_v22 }
 0x458   :  { %v2869_v56 = vpop.f32.mrf.mxu3  ;;  %v3283_v47 = vpop.f32.mrf.mxu0 }
 0x459   :  { %v3279_v31 = vadd.f32 %v3278_v27, %v2869_v56  ;;  %1527 = vmatmul.bf16.gmra.mxu1 %v5158_v61  ;;  %1941 = vmatmul.bf16.gmra.mxu2 %v5198_v34  ;;  %v2498_v7 = vpack.c.bf16 %v2260_v25, %v2258_v35  ;;  %v2257_v15 = vmax.f32 %v1489_v54, 0.0 }
 0x45b   :  { %v4401_v57 = vpop.eup %4400  ;;  %v3589_v36 = vadd.f32 %v6090_v2, %v3279_v31  ;;  %3322 = vmatmul.bf16.gmra.mxu0 %v2498_v7 }
 0x45c   :  { %3909 = vst.msk [vmem:[%s7104_s7 + $0x1e8] sm:$0xff] %vm3847_vm1, %v4401_v57  ;;  %v1902_v41 = vpop.f32.mrf.mxu2 }
 0x45d   :  { %4402 = vtanh.f32 %v3589_v36  ;;  %v1903_v2 = vadd.f32 %v1902_v41, %v5697_v62 }
 0x45e   :  { %v1490_v46 = vpop.f32.mrf.mxu1 }
 0x45f   :  { %v1491_v52 = vadd.f32 %v1490_v46, %v5708_v22  ;;  %v2262_v38 = vmax.f32 %v1903_v2, 0.0 }
 0x460   :  { %v2871_v61 = vpop.f32.mrf.mxu3  ;;  %v3285_v28 = vpop.f32.mrf.mxu0 }
 0x461   :  { %v2259_v5 = vmax.f32 %v1491_v52, 0.0  ;;  %v3281_v42 = vadd.f32 %v3280_v13, %v2871_v61 }
 0x463   :  { %v4403_v50 = vpop.eup %4402  ;;  %v3590_v16 = vadd.f32 %v6351_v60, %v3281_v42  ;;  %v2497_v49 = vpack.c.bf16 %v2259_v5, %v2257_v15 }
 0x464   :  { %3910 = vst.msk [vmem:[%s7104_s7 + $0x1f0] sm:$0xff] %vm3847_vm1, %v4403_v50  ;;  %v1904_v53 = vpop.f32.mrf.mxu2 }
 0x465   :  { %4404 = vtanh.f32 %v3590_v16  ;;  %v1905_v55 = vadd.f32 %v1904_v53, %v5697_v62  ;;  %2913 = vmatmul.bf16.gmra.mxu3 %v2497_v49 }
 0x466   :  { %v1493_v11 = vpop.f32.mrf.mxu1 }
 0x467   :  { %v2264_v40 = vmax.f32 %v1905_v55, 0.0  ;;  %v1494_v58 = vadd.f32 %v1493_v11, %v5708_v22 }
 0x468   :  { %v2874_v3 = vpop.f32.mrf.mxu3  ;;  %v3288_v48 = vpop.f32.mrf.mxu0 }
 0x469   :  { %v3284_v4 = vadd.f32 %v3283_v47, %v2874_v3  ;;  %1532 = vmatmul.bf16.gmra.mxu1 %v5198_v34  ;;  %1946 = vmatmul.bf16.gmra.mxu2 %v5258_v24  ;;  %v2500_v63 = vpack.c.bf16 %v2264_v40, %v2262_v38  ;;  %v2261_v8 = vmax.f32 %v1494_v58, 0.0 }
 0x46b   :  { %v4405_v12 = vpop.eup %4404  ;;  %v3591_v20 = vadd.f32 %v6351_v60, %v3284_v4  ;;  %3327 = vmatmul.bf16.gmra.mxu0 %v2500_v63 }
 0x46c   :  { %3911 = vst.msk [vmem:[%s7104_s7 + $0x1f8] sm:$0xff] %vm3847_vm1, %v4405_v12  ;;  %v1907_v27 = vpop.f32.mrf.mxu2 }
 0x46d   :  { %4406 = vtanh.f32 %v3591_v20  ;;  %v1908_v21 = vadd.f32 %v1907_v27, %v5697_v62 }
 0x46e   :  { %v1495_v0 = vpop.f32.mrf.mxu1 }
 0x46f   :  { %v1496_v6 = vadd.f32 %v1495_v0, %v5708_v22  ;;  %v2266_v19 = vmax.f32 %v1908_v21, 0.0 }
 0x470   :  { %v2876_v34 = vpop.f32.mrf.mxu3  ;;  %v3290_v9 = vpop.f32.mrf.mxu0 }
 0x471   :  { %v2263_v26 = vmax.f32 %v1496_v6, 0.0  ;;  %v3286_v37 = vadd.f32 %v3285_v28, %v2876_v34 }
 0x473   :  { %v4407_v39 = vpop.eup %4406  ;;  %v3592_v13 = vadd.f32 %v6351_v60, %v3286_v37  ;;  %v2499_v32 = vpack.c.bf16 %v2263_v26, %v2261_v8 }
 0x474   :  { %3912 = vst.msk [vmem:[%s7104_s7 + $0x200] sm:$0xff] %vm3847_vm1, %v4407_v39  ;;  %v1909_v45 = vpop.f32.mrf.mxu2 }
 0x475   :  { %4408 = vtanh.f32 %v3592_v13  ;;  %v1910_v18 = vadd.f32 %v1909_v45, %v5697_v62  ;;  %2918 = vmatmul.bf16.gmra.mxu3 %v2499_v32  ;;  %v7155_v45 = vld [vmem:[#allocation4_spill] sm:$0xff] }
 0x476   :  { %v1498_v33 = vpop.f32.mrf.mxu1 }
 0x477   :  { %v2268_v14 = vmax.f32 %v1910_v18, 0.0  ;;  %v1499_v47 = vadd.f32 %v1498_v33, %v5708_v22 }
 0x478   :  { %v2879_v44 = vpop.f32.mrf.mxu3  ;;  %v3293_v43 = vpop.f32.mrf.mxu0 }
 0x479   :  { %v3289_v1 = vadd.f32 %v3288_v48, %v2879_v44  ;;  %1537 = vmatmul.bf16.gmra.mxu1 %v5258_v24  ;;  %1951 = vmatmul.bf16.gmra.mxu2 %v5307_v23  ;;  %v2502_v17 = vpack.c.bf16 %v2268_v14, %v2266_v19  ;;  %v2265_v36 = vmax.f32 %v1499_v47, 0.0 }
 0x47b   :  { %v4409_v35 = vpop.eup %4408  ;;  %v3593_v25 = vadd.f32 %v6351_v60, %v3289_v1  ;;  %3332 = vmatmul.bf16.gmra.mxu0 %v2502_v17 }
 0x47c   :  { %3913 = vst.msk [vmem:[%s7104_s7 + $0x208] sm:$0xff] %vm3847_vm1, %v4409_v35  ;;  %v1912_v56 = vpop.f32.mrf.mxu2 }
 0x47d   :  { %4410 = vtanh.f32 %v3593_v25  ;;  %v1913_v52 = vadd.f32 %v1912_v56, %v5697_v62 }
 0x47e   :  { %v1500_v31 = vpop.f32.mrf.mxu1 }
 0x47f   :  { %v1501_v7 = vadd.f32 %v1500_v31, %v5708_v22  ;;  %v2270_v50 = vmax.f32 %v1913_v52, 0.0 }
 0x480   :  { %v2881_v24 = vpop.f32.mrf.mxu3  ;;  %v3295_v57 = vpop.f32.mrf.mxu0 }
 0x481   :  { %v2267_v41 = vmax.f32 %v1501_v7, 0.0  ;;  %v3291_v54 = vadd.f32 %v3290_v9, %v2881_v24 }
 0x483   :  { %v4411_v46 = vpop.eup %4410  ;;  %v3594_v61 = vadd.f32 %v6351_v60, %v3291_v54  ;;  %v2501_v28 = vpack.c.bf16 %v2267_v41, %v2265_v36 }
 0x484   :  { %3914 = vst.msk [vmem:[%s7104_s7 + $0x210] sm:$0xff] %vm3847_vm1, %v4411_v46  ;;  %v1914_v15 = vpop.f32.mrf.mxu2 }
 0x485   :  { %4412 = vtanh.f32 %v3594_v61  ;;  %v1915_v5 = vadd.f32 %v1914_v15, %v5697_v62  ;;  %2923 = vmatmul.bf16.gmra.mxu3 %v2501_v28  ;;  %v7156_v15 = vld [vmem:[#allocation6_spill] sm:$0xff] }
 0x486   :  { %v1503_v42 = vpop.f32.mrf.mxu1 }
 0x487   :  { %v2272_v2 = vmax.f32 %v1915_v5, 0.0  ;;  %v1504_v3 = vadd.f32 %v1503_v42, %v5708_v22 }
 0x488   :  { %v2884_v16 = vpop.f32.mrf.mxu3  ;;  %v3298_v49 = vpop.f32.mrf.mxu0 }
 0x489   :  { %v3294_v53 = vadd.f32 %v3293_v43, %v2884_v16  ;;  %1542 = vmatmul.bf16.gmra.mxu1 %v5307_v23  ;;  %1956 = vmatmul.bf16.gmra.mxu2 %v5354_v30  ;;  %v2504_v55 = vpack.c.bf16 %v2272_v2, %v2270_v50  ;;  %v2269_v12 = vmax.f32 %v1504_v3, 0.0 }
 0x48b   :  { %v4413_v11 = vpop.eup %4412  ;;  %v3595_v38 = vadd.f32 %v6351_v60, %v3294_v53  ;;  %3337 = vmatmul.bf16.gmra.mxu0 %v2504_v55 }
 0x48c   :  { %3915 = vst.msk [vmem:[%s7104_s7 + $0x218] sm:$0xff] %vm3847_vm1, %v4413_v11  ;;  %v1917_v40 = vpop.f32.mrf.mxu2 }
 0x48d   :  { %4414 = vtanh.f32 %v3595_v38  ;;  %v1918_v0 = vadd.f32 %v1917_v40, %v5697_v62 }
 0x48e   :  { %v1505_v48 = vpop.f32.mrf.mxu1 }
 0x48f   :  { %v1506_v4 = vadd.f32 %v1505_v48, %v5708_v22  ;;  %v2274_v37 = vmax.f32 %v1918_v0, 0.0 }
 0x490   :  { %v2886_v23 = vpop.f32.mrf.mxu3  ;;  %v3300_v63 = vpop.f32.mrf.mxu0 }
 0x491   :  { %v2271_v20 = vmax.f32 %v1506_v4, 0.0  ;;  %v3296_v27 = vadd.f32 %v3295_v57, %v2886_v23 }
 0x493   :  { %v4415_v58 = vpop.eup %4414  ;;  %v3596_v6 = vadd.f32 %v6351_v60, %v3296_v27  ;;  %v2503_v34 = vpack.c.bf16 %v2271_v20, %v2269_v12 }
 0x494   :  { %3916 = vst.msk [vmem:[%s7104_s7 + $0x220] sm:$0xff] %vm3847_vm1, %v4415_v58  ;;  %v1919_v9 = vpop.f32.mrf.mxu2 }
 0x495   :  { %4416 = vtanh.f32 %v3596_v6  ;;  %v1920_v8 = vadd.f32 %v1919_v9, %v5697_v62  ;;  %2928 = vmatmul.bf16.gmra.mxu3 %v2503_v34 }
 0x496   :  { %v1508_v26 = vpop.f32.mrf.mxu1 }
 0x497   :  { %v2276_v39 = vmax.f32 %v1920_v8, 0.0  ;;  %v1509_v44 = vadd.f32 %v1508_v26, %v5708_v22  ;;  %v7157_v8 = vld [vmem:[#allocation8_spill] sm:$0xff] }
 0x498   :  { %v2889_v21 = vpop.f32.mrf.mxu3  ;;  %v3303_v13 = vpop.f32.mrf.mxu0 }
 0x499   :  { %v3299_v32 = vadd.f32 %v3298_v49, %v2889_v21  ;;  %1547 = vmatmul.bf16.gmra.mxu1 %v5354_v30  ;;  %1961 = vmatmul.bf16.gmra.mxu2 %v7155_v45  ;;  %v2506_v18 = vpack.c.bf16 %v2276_v39, %v2274_v37  ;;  %v2273_v35 = vmax.f32 %v1509_v44, 0.0 }
 0x49b   :  { %v4417_v33 = vpop.eup %4416  ;;  %v3597_v19 = vadd.f32 %v6351_v60, %v3299_v32  ;;  %3342 = vmatmul.bf16.gmra.mxu0 %v2506_v18 }
 0x49c   :  { %3917 = vst.msk [vmem:[%s7104_s7 + $0x228] sm:$0xff] %vm3847_vm1, %v4417_v33  ;;  %v1922_v14 = vpop.f32.mrf.mxu2 }
 0x49d   :  { %4418 = vtanh.f32 %v3597_v19  ;;  %v1923_v31 = vadd.f32 %v1922_v14, %v5697_v62 }
 0x49e   :  { %v1510_v43 = vpop.f32.mrf.mxu1 }
 0x49f   :  { %v1511_v1 = vadd.f32 %v1510_v43, %v5708_v22  ;;  %v2278_v54 = vmax.f32 %v1923_v31, 0.0 }
 0x4a0   :  { %v2891_v30 = vpop.f32.mrf.mxu3  ;;  %v3305_v17 = vpop.f32.mrf.mxu0 }
 0x4a1   :  { %v2275_v25 = vmax.f32 %v1511_v1, 0.0  ;;  %v3301_v56 = vadd.f32 %v3300_v63, %v2891_v30 }
 0x4a3   :  { %v4419_v47 = vpop.eup %4418  ;;  %v3598_v7 = vadd.f32 %v6351_v60, %v3301_v56  ;;  %v2505_v24 = vpack.c.bf16 %v2275_v25, %v2273_v35 }
 0x4a4   :  { %3918 = vst.msk [vmem:[%s7104_s7 + $0x230] sm:$0xff] %vm3847_vm1, %v4419_v47  ;;  %v1924_v57 = vpop.f32.mrf.mxu2 }
 0x4a5   :  { %4420 = vtanh.f32 %v3598_v7  ;;  %v1925_v36 = vadd.f32 %v1924_v57, %v5697_v62  ;;  %2933 = vmatmul.bf16.gmra.mxu3 %v2505_v24 }
 0x4a6   :  { %v1513_v41 = vpop.f32.mrf.mxu1 }
 0x4a7   :  { %v2280_v46 = vmax.f32 %v1925_v36, 0.0  ;;  %v1514_v16 = vadd.f32 %v1513_v41, %v5708_v22  ;;  %v7158_v36 = vld [vmem:[#allocation10_spill] sm:$0xff] }
 0x4a8   :  { %v2894_v52 = vpop.f32.mrf.mxu3  ;;  %v3308_v61 = vpop.f32.mrf.mxu0 }
 0x4a9   :  { %v3304_v28 = vadd.f32 %v3303_v13, %v2894_v52  ;;  %1552 = vmatmul.bf16.gmra.mxu1 %v7155_v45  ;;  %1966 = vmatmul.bf16.gmra.mxu2 %v7156_v15  ;;  %v2508_v5 = vpack.c.bf16 %v2280_v46, %v2278_v54  ;;  %v2277_v38 = vmax.f32 %v1514_v16, 0.0 }
 0x4ab   :  { %v4421_v42 = vpop.eup %4420  ;;  %v3599_v50 = vadd.f32 %v6351_v60, %v3304_v28  ;;  %3347 = vmatmul.bf16.gmra.mxu0 %v2508_v5 }
 0x4ac   :  { %3919 = vst.msk [vmem:[%s7104_s7 + $0x238] sm:$0xff] %vm3847_vm1, %v4421_v42  ;;  %v1927_v2 = vpop.f32.mrf.mxu2 }
 0x4ad   :  { %4422 = vtanh.f32 %v3599_v50  ;;  %v1928_v4 = vadd.f32 %v1927_v2, %v5697_v62 }
 0x4ae   :  { %v1515_v49 = vpop.f32.mrf.mxu1 }
 0x4af   :  { %v1516_v53 = vadd.f32 %v1515_v49, %v5708_v22  ;;  %v2282_v58 = vmax.f32 %v1928_v4, 0.0 }
 0x4b0   :  { %v2896_v55 = vpop.f32.mrf.mxu3  ;;  %v3310_v11 = vpop.f32.mrf.mxu0 }
 0x4b1   :  { %v2279_v40 = vmax.f32 %v1516_v53, 0.0  ;;  %v3306_v3 = vadd.f32 %v3305_v17, %v2896_v55 }
 0x4b3   :  { %v4423_v48 = vpop.eup %4422  ;;  %v3600_v23 = vadd.f32 %v6351_v60, %v3306_v3  ;;  %v2507_v63 = vpack.c.bf16 %v2279_v40, %v2277_v38 }
 0x4b4   :  { %3920 = vst.msk [vmem:[%s7104_s7 + $0x240] sm:$0xff] %vm3847_vm1, %v4423_v48  ;;  %v1929_v12 = vpop.f32.mrf.mxu2 }
 0x4b5   :  { %4424 = vtanh.f32 %v3600_v23  ;;  %v1930_v20 = vadd.f32 %v1929_v12, %v5697_v62  ;;  %2938 = vmatmul.bf16.gmra.mxu3 %v2507_v63 }
 0x4b6   :  { %v1518_v27 = vpop.f32.mrf.mxu1 }
 0x4b7   :  { %v2284_v0 = vmax.f32 %v1930_v20, 0.0  ;;  %v1519_v13 = vadd.f32 %v1518_v27, %v5708_v22  ;;  %v7159_v20 = vld [vmem:[#allocation14_spill] sm:$0xff] }
 0x4b8   :  { %v2899_v6 = vpop.f32.mrf.mxu3  ;;  %v3313_v34 = vpop.f32.mrf.mxu0 }
 0x4b9   :  { %v3309_v9 = vadd.f32 %v3308_v61, %v2899_v6  ;;  %1557 = vmatmul.bf16.gmra.mxu1 %v7156_v15  ;;  %1971 = vmatmul.bf16.gmra.mxu2 %v7157_v8  ;;  %v2510_v26 = vpack.c.bf16 %v2284_v0, %v2282_v58  ;;  %v2281_v19 = vmax.f32 %v1519_v13, 0.0 }
 0x4bb   :  { %v4425_v37 = vpop.eup %4424  ;;  %v3601_v39 = vadd.f32 %v6351_v60, %v3309_v9  ;;  %3352 = vmatmul.bf16.gmra.mxu0 %v2510_v26 }
 0x4bc   :  { %3921 = vst.msk [vmem:[%s7104_s7 + $0x248] sm:$0xff] %vm3847_vm1, %v4425_v37  ;;  %v1932_v21 = vpop.f32.mrf.mxu2 }
 0x4bd   :  { %4426 = vtanh.f32 %v3601_v39  ;;  %v1933_v1 = vadd.f32 %v1932_v21, %v5697_v62 }
 0x4be   :  { %v1520_v32 = vpop.f32.mrf.mxu1 }
 0x4bf   :  { %v1521_v45 = vadd.f32 %v1520_v32, %v5708_v22  ;;  %v2286_v47 = vmax.f32 %v1933_v1, 0.0 }
 0x4c0   :  { %v2901_v18 = vpop.f32.mrf.mxu3  ;;  %v3315_v33 = vpop.f32.mrf.mxu0 }
 0x4c1   :  { %v2283_v14 = vmax.f32 %v1521_v45, 0.0  ;;  %v3311_v44 = vadd.f32 %v3310_v11, %v2901_v18 }
 0x4c3   :  { %v4427_v43 = vpop.eup %4426  ;;  %v3602_v30 = vadd.f32 %v6351_v60, %v3311_v44  ;;  %v2509_v17 = vpack.c.bf16 %v2283_v14, %v2281_v19 }
 0x4c4   :  { %3922 = vst.msk [vmem:[%s7104_s7 + $0x250] sm:$0xff] %vm3847_vm1, %v4427_v43  ;;  %v1934_v35 = vpop.f32.mrf.mxu2 }
 0x4c5   :  { %4428 = vtanh.f32 %v3602_v30  ;;  %v1935_v25 = vadd.f32 %v1934_v35, %v5697_v62  ;;  %2943 = vmatmul.bf16.gmra.mxu3 %v2509_v17 }
 0x4c6   :  { %v1523_v56 = vpop.f32.mrf.mxu1 }
 0x4c7   :  { %v2288_v31 = vmax.f32 %v1935_v25, 0.0  ;;  %v1524_v61 = vadd.f32 %v1523_v56, %v5708_v22  ;;  %v7160_v25 = vld [vmem:[#allocation17_spill] sm:$0xff] }
 0x4c8   :  { %v2904_v7 = vpop.f32.mrf.mxu3  ;;  %v3318_v24 = vpop.f32.mrf.mxu0 }
 0x4c9   :  { %v3314_v57 = vadd.f32 %v3313_v34, %v2904_v7  ;;  %1562 = vmatmul.bf16.gmra.mxu1 %v7157_v8  ;;  %1976 = vmatmul.bf16.gmra.mxu2 %v7158_v36  ;;  %v2512_v41 = vpack.c.bf16 %v2288_v31, %v2286_v47  ;;  %v2285_v50 = vmax.f32 %v1524_v61, 0.0 }
 0x4cb   :  { %v4429_v54 = vpop.eup %4428  ;;  %v3603_v46 = vadd.f32 %v6351_v60, %v3314_v57  ;;  %3357 = vmatmul.bf16.gmra.mxu0 %v2512_v41 }
 0x4cc   :  { %3923 = vst.msk [vmem:[%s7104_s7 + $0x258] sm:$0xff] %vm3847_vm1, %v4429_v54  ;;  %v1937_v52 = vpop.f32.mrf.mxu2 }
 0x4cd   :  { %4430 = vtanh.f32 %v3603_v46  ;;  %v1938_v53 = vadd.f32 %v1937_v52, %v5697_v62 }
 0x4ce   :  { %v1525_v28 = vpop.f32.mrf.mxu1 }
 0x4cf   :  { %v1526_v15 = vadd.f32 %v1525_v28, %v5708_v22  ;;  %v2290_v48 = vmax.f32 %v1938_v53, 0.0 }
 0x4d0   :  { %v2906_v5 = vpop.f32.mrf.mxu3  ;;  %v3320_v42 = vpop.f32.mrf.mxu0 }
 0x4d1   :  { %v2287_v2 = vmax.f32 %v1526_v15, 0.0  ;;  %v3316_v16 = vadd.f32 %v3315_v33, %v2906_v5 }
 0x4d3   :  { %v4431_v49 = vpop.eup %4430  ;;  %v3604_v55 = vadd.f32 %v6351_v60, %v3316_v16  ;;  %v2511_v11 = vpack.c.bf16 %v2287_v2, %v2285_v50 }
 0x4d4   :  { %3924 = vst.msk [vmem:[%s7104_s7 + $0x260] sm:$0xff] %vm3847_vm1, %v4431_v49  ;;  %v1939_v38 = vpop.f32.mrf.mxu2 }
 0x4d5   :  { %4432 = vtanh.f32 %v3604_v55  ;;  %v1940_v40 = vadd.f32 %v1939_v38, %v5697_v62  ;;  %2948 = vmatmul.bf16.gmra.mxu3 %v2511_v11 }
 0x4d6   :  { %v1528_v3 = vpop.f32.mrf.mxu1 }
 0x4d7   :  { %v2292_v4 = vmax.f32 %v1940_v40, 0.0  ;;  %v1529_v34 = vadd.f32 %v1528_v3, %v5708_v22  ;;  %v7161_v40 = vld [vmem:[#allocation19_spill] sm:$0xff] }
 0x4d8   :  { %v2909_v23 = vpop.f32.mrf.mxu3  ;;  %v3323_v63 = vpop.f32.mrf.mxu0 }
 0x4d9   :  { %v3319_v12 = vadd.f32 %v3318_v24, %v2909_v23  ;;  %1567 = vmatmul.bf16.gmra.mxu1 %v7158_v36  ;;  %1981 = vmatmul.bf16.gmra.mxu2 %v7159_v20  ;;  %v2514_v27 = vpack.c.bf16 %v2292_v4, %v2290_v48  ;;  %v2289_v39 = vmax.f32 %v1529_v34, 0.0 }
 0x4db   :  { %v4433_v58 = vpop.eup %4432  ;;  %v3605_v0 = vadd.f32 %v6351_v60, %v3319_v12  ;;  %3362 = vmatmul.bf16.gmra.mxu0 %v2514_v27 }
 0x4dc   :  { %3925 = vst.msk [vmem:[%s7104_s7 + $0x268] sm:$0xff] %vm3847_vm1, %v4433_v58  ;;  %v1942_v6 = vpop.f32.mrf.mxu2 }
 0x4dd   :  { %4434 = vtanh.f32 %v3605_v0  ;;  %v1943_v45 = vadd.f32 %v1942_v6, %v5697_v62 }
 0x4de   :  { %v1530_v9 = vpop.f32.mrf.mxu1 }
 0x4df   :  { %v1531_v8 = vadd.f32 %v1530_v9, %v5708_v22  ;;  %v2294_v43 = vmax.f32 %v1943_v45, 0.0 }
 0x4e0   :  { %v2911_v26 = vpop.f32.mrf.mxu3  ;;  %v3325_v37 = vpop.f32.mrf.mxu0 }
 0x4e1   :  { %v2291_v21 = vmax.f32 %v1531_v8, 0.0  ;;  %v3321_v13 = vadd.f32 %v3320_v42, %v2911_v26 }
 0x4e3   :  { %v4435_v32 = vpop.eup %4434  ;;  %v3606_v18 = vadd.f32 %v6351_v60, %v3321_v13  ;;  %v2513_v33 = vpack.c.bf16 %v2291_v21, %v2289_v39 }
 0x4e4   :  { %3926 = vst.msk [vmem:[%s7104_s7 + $0x270] sm:$0xff] %vm3847_vm1, %v4435_v32  ;;  %v1944_v19 = vpop.f32.mrf.mxu2 }
 0x4e5   :  { %4436 = vtanh.f32 %v3606_v18  ;;  %v1945_v14 = vadd.f32 %v1944_v19, %v5697_v62  ;;  %2953 = vmatmul.bf16.gmra.mxu3 %v2513_v33 }
 0x4e6   :  { %v1533_v44 = vpop.f32.mrf.mxu1 }
 0x4e7   :  { %v2296_v1 = vmax.f32 %v1945_v14, 0.0  ;;  %v1534_v24 = vadd.f32 %v1533_v44, %v5708_v22  ;;  %v7162_v14 = vld [vmem:[#allocation22_spill] sm:$0xff] }
 0x4e8   :  { %v2914_v30 = vpop.f32.mrf.mxu3  ;;  %v3328_v17 = vpop.f32.mrf.mxu0 }
 0x4e9   :  { %v3324_v35 = vadd.f32 %v3323_v63, %v2914_v30  ;;  %1572 = vmatmul.bf16.gmra.mxu1 %v7159_v20  ;;  %1986 = vmatmul.bf16.gmra.mxu2 %v7160_v25  ;;  %v2516_v56 = vpack.c.bf16 %v2296_v1, %v2294_v43  ;;  %v2293_v46 = vmax.f32 %v1534_v24, 0.0 }
 0x4eb   :  { %v4437_v47 = vpop.eup %4436  ;;  %v3607_v31 = vadd.f32 %v6351_v60, %v3324_v35  ;;  %3367 = vmatmul.bf16.gmra.mxu0 %v2516_v56 }
 0x4ec   :  { %3927 = vst.msk [vmem:[%s7104_s7 + $0x278] sm:$0xff] %vm3847_vm1, %v4437_v47  ;;  %v1947_v7 = vpop.f32.mrf.mxu2 }
 0x4ed   :  { %4438 = vtanh.f32 %v3607_v31  ;;  %v1948_v15 = vadd.f32 %v1947_v7, %v5697_v62 }
 0x4ee   :  { %v1535_v57 = vpop.f32.mrf.mxu1 }
 0x4ef   :  { %v1536_v36 = vadd.f32 %v1535_v57, %v5708_v22  ;;  %v2298_v49 = vmax.f32 %v1948_v15, 0.0 }
 0x4f0   :  { %v2916_v41 = vpop.f32.mrf.mxu3  ;;  %v3330_v54 = vpop.f32.mrf.mxu0 }
 0x4f1   :  { %v2295_v52 = vmax.f32 %v1536_v36, 0.0  ;;  %v3326_v61 = vadd.f32 %v3325_v37, %v2916_v41 }
 0x4f3   :  { %v4439_v28 = vpop.eup %4438  ;;  %v3608_v5 = vadd.f32 %v6351_v60, %v3326_v61  ;;  %v2515_v42 = vpack.c.bf16 %v2295_v52, %v2293_v46 }
 0x4f4   :  { %3928 = vst.msk [vmem:[%s7104_s7 + $0x280] sm:$0xff] %vm3847_vm1, %v4439_v28  ;;  %v1949_v50 = vpop.f32.mrf.mxu2 }
 0x4f5   :  { %4440 = vtanh.f32 %v3608_v5  ;;  %v1950_v2 = vadd.f32 %v1949_v50, %v5697_v62  ;;  %2958 = vmatmul.bf16.gmra.mxu3 %v2515_v42 }
 0x4f6   :  { %v1538_v16 = vpop.f32.mrf.mxu1 }
 0x4f7   :  { %v2300_v53 = vmax.f32 %v1950_v2, 0.0  ;;  %v1539_v63 = vadd.f32 %v1538_v16, %v5708_v22  ;;  %v7163_v2 = vld [vmem:[#allocation24_spill] sm:$0xff] }
 0x4f8   :  { %v2919_v55 = vpop.f32.mrf.mxu3  ;;  %v3333_v11 = vpop.f32.mrf.mxu0 }
 0x4f9   :  { %v3329_v38 = vadd.f32 %v3328_v17, %v2919_v55  ;;  %1577 = vmatmul.bf16.gmra.mxu1 %v7160_v25  ;;  %1991 = vmatmul.bf16.gmra.mxu2 %v7161_v40  ;;  %v2518_v3 = vpack.c.bf16 %v2300_v53, %v2298_v49  ;;  %v2297_v0 = vmax.f32 %v1539_v63, 0.0 }
 0x4fb   :  { %v4441_v48 = vpop.eup %4440  ;;  %v3609_v4 = vadd.f32 %v6351_v60, %v3329_v38  ;;  %3372 = vmatmul.bf16.gmra.mxu0 %v2518_v3 }
 0x4fc   :  { %3929 = vst.msk [vmem:[%s7104_s7 + $0x288] sm:$0xff] %vm3847_vm1, %v4441_v48  ;;  %v1952_v23 = vpop.f32.mrf.mxu2 }
 0x4fd   :  { %4442 = vtanh.f32 %v3609_v4  ;;  %v1953_v8 = vadd.f32 %v1952_v23, %v5697_v62 }
 0x4fe   :  { %v1540_v12 = vpop.f32.mrf.mxu1 }
 0x4ff   :  { %v1541_v20 = vadd.f32 %v1540_v12, %v5708_v22  ;;  %v2302_v32 = vmax.f32 %v1953_v8, 0.0 }
 0x500   :  { %v2921_v27 = vpop.f32.mrf.mxu3  ;;  %v3335_v58 = vpop.f32.mrf.mxu0 }
 0x501   :  { %v2299_v6 = vmax.f32 %v1541_v20, 0.0  ;;  %v3331_v34 = vadd.f32 %v3330_v54, %v2921_v27 }
 0x503   :  { %v4443_v9 = vpop.eup %4442  ;;  %v3610_v26 = vadd.f32 %v6351_v60, %v3331_v34  ;;  %v2517_v37 = vpack.c.bf16 %v2299_v6, %v2297_v0 }
 0x504   :  { %3930 = vst.msk [vmem:[%s7104_s7 + $0x290] sm:$0xff] %vm3847_vm1, %v4443_v9  ;;  %v1954_v39 = vpop.f32.mrf.mxu2 }
 0x505   :  { %4444 = vtanh.f32 %v3610_v26  ;;  %v1955_v21 = vadd.f32 %v1954_v39, %v5697_v62  ;;  %2963 = vmatmul.bf16.gmra.mxu3 %v2517_v37 }
 0x506   :  { %v1543_v13 = vpop.f32.mrf.mxu1 }
 0x507   :  { %v2304_v45 = vmax.f32 %v1955_v21, 0.0  ;;  %v1544_v17 = vadd.f32 %v1543_v13, %v5708_v22  ;;  %v7164_v21 = vld [vmem:[#allocation2_spill] sm:$0xff] }
 0x508   :  { %v2924_v18 = vpop.f32.mrf.mxu3  ;;  %v3338_v33 = vpop.f32.mrf.mxu0 }
 0x509   :  { %v3334_v19 = vadd.f32 %v3333_v11, %v2924_v18  ;;  %1582 = vmatmul.bf16.gmra.mxu1 %v7161_v40  ;;  %1996 = vmatmul.bf16.gmra.mxu2 %v7162_v14  ;;  %v2520_v44 = vpack.c.bf16 %v2304_v45, %v2302_v32  ;;  %v2301_v31 = vmax.f32 %v1544_v17, 0.0 }
 0x50b   :  { %v4445_v43 = vpop.eup %4444  ;;  %v3611_v1 = vadd.f32 %v6351_v60, %v3334_v19  ;;  %3377 = vmatmul.bf16.gmra.mxu0 %v2520_v44 }
 0x50c   :  { %3931 = vst.msk [vmem:[%s7104_s7 + $0x298] sm:$0xff] %vm3847_vm1, %v4445_v43  ;;  %v1957_v30 = vpop.f32.mrf.mxu2 }
 0x50d   :  { %4446 = vtanh.f32 %v3611_v1  ;;  %v1958_v36 = vadd.f32 %v1957_v30, %v5697_v62 }
 0x50e   :  { %v1545_v35 = vpop.f32.mrf.mxu1 }
 0x50f   :  { %v1546_v25 = vadd.f32 %v1545_v35, %v5708_v22  ;;  %v2306_v28 = vmax.f32 %v1958_v36, 0.0 }
 0x510   :  { %v2926_v56 = vpop.f32.mrf.mxu3  ;;  %v3340_v47 = vpop.f32.mrf.mxu0 }
 0x511   :  { %v2303_v7 = vmax.f32 %v1546_v25, 0.0  ;;  %v3336_v24 = vadd.f32 %v3335_v58, %v2926_v56 }
 0x513   :  { %v4447_v57 = vpop.eup %4446  ;;  %v3612_v41 = vadd.f32 %v6351_v60, %v3336_v24  ;;  %v2519_v54 = vpack.c.bf16 %v2303_v7, %v2301_v31 }
 0x514   :  { %3932 = vst.msk [vmem:[%s7104_s7 + $0x2a0] sm:$0xff] %vm3847_vm1, %v4447_v57  ;;  %v1959_v46 = vpop.f32.mrf.mxu2 }
 0x515   :  { %4448 = vtanh.f32 %v3612_v41  ;;  %v1960_v52 = vadd.f32 %v1959_v46, %v5697_v62  ;;  %2968 = vmatmul.bf16.gmra.mxu3 %v2519_v54 }
 0x516   :  { %v1548_v61 = vpop.f32.mrf.mxu1 }
 0x517   :  { %v2308_v15 = vmax.f32 %v1960_v52, 0.0  ;;  %v1549_v11 = vadd.f32 %v1548_v61, %v5708_v22  ;;  %v7165_v52 = vld [vmem:[#allocation3_spill] sm:$0xff] }
 0x518   :  { %v2929_v5 = vpop.f32.mrf.mxu3  ;;  %v3343_v42 = vpop.f32.mrf.mxu0 }
 0x519   :  { %v3339_v50 = vadd.f32 %v3338_v33, %v2929_v5  ;;  %1587 = vmatmul.bf16.gmra.mxu1 %v7162_v14  ;;  %2001 = vmatmul.bf16.gmra.mxu2 %v7163_v2  ;;  %v2522_v16 = vpack.c.bf16 %v2308_v15, %v2306_v28  ;;  %v2305_v4 = vmax.f32 %v1549_v11, 0.0 }
 0x51b   :  { %v4449_v49 = vpop.eup %4448  ;;  %v3613_v53 = vadd.f32 %v6351_v60, %v3339_v50  ;;  %3382 = vmatmul.bf16.gmra.mxu0 %v2522_v16 }
 0x51c   :  { %3933 = vst.msk [vmem:[%s7104_s7 + $0x2a8] sm:$0xff] %vm3847_vm1, %v4449_v49  ;;  %v1962_v55 = vpop.f32.mrf.mxu2 }
 0x51d   :  { %4450 = vtanh.f32 %v3613_v53  ;;  %v1963_v20 = vadd.f32 %v1962_v55, %v5697_v62 }
 0x51e   :  { %v1550_v38 = vpop.f32.mrf.mxu1 }
 0x51f   :  { %v1551_v40 = vadd.f32 %v1550_v38, %v5708_v22  ;;  %v2310_v9 = vmax.f32 %v1963_v20, 0.0 }
 0x520   :  { %v2931_v3 = vpop.f32.mrf.mxu3  ;;  %v3345_v48 = vpop.f32.mrf.mxu0 }
 0x521   :  { %v2307_v23 = vmax.f32 %v1551_v40, 0.0  ;;  %v3341_v63 = vadd.f32 %v3340_v47, %v2931_v3 }
 0x523   :  { %v4451_v12 = vpop.eup %4450  ;;  %v3614_v27 = vadd.f32 %v6351_v60, %v3341_v63  ;;  %v2521_v58 = vpack.c.bf16 %v2307_v23, %v2305_v4 }
 0x524   :  { %3934 = vst.msk [vmem:[%s7104_s7 + $0x2b0] sm:$0xff] %vm3847_vm1, %v4451_v12  ;;  %v1964_v0 = vpop.f32.mrf.mxu2 }
 0x525   :  { %4452 = vtanh.f32 %v3614_v27  ;;  %v1965_v6 = vadd.f32 %v1964_v0, %v5697_v62  ;;  %2973 = vmatmul.bf16.gmra.mxu3 %v2521_v58 }
 0x526   :  { %v1553_v34 = vpop.f32.mrf.mxu1 }
 0x527   :  { %v2312_v8 = vmax.f32 %v1965_v6, 0.0  ;;  %v1554_v33 = vadd.f32 %v1553_v34, %v5708_v22  ;;  %v7166_v6 = vld [vmem:[#allocation5_spill] sm:$0xff] }
 0x528   :  { %v2934_v26 = vpop.f32.mrf.mxu3  ;;  %v3348_v37 = vpop.f32.mrf.mxu0 }
 0x529   :  { %v3344_v39 = vadd.f32 %v3343_v42, %v2934_v26  ;;  %1592 = vmatmul.bf16.gmra.mxu1 %v7163_v2  ;;  %2006 = vmatmul.bf16.gmra.mxu2 %v7164_v21  ;;  %v2524_v13 = vpack.c.bf16 %v2312_v8, %v2310_v9  ;;  %v2309_v1 = vmax.f32 %v1554_v33, 0.0 }
 0x52b   :  { %v4453_v32 = vpop.eup %4452  ;;  %v3615_v45 = vadd.f32 %v6351_v60, %v3344_v39  ;;  %3387 = vmatmul.bf16.gmra.mxu0 %v2524_v13 }
 0x52c   :  { %3935 = vst.msk [vmem:[%s7104_s7 + $0x2b8] sm:$0xff] %vm3847_vm1, %v4453_v32  ;;  %v1967_v18 = vpop.f32.mrf.mxu2 }
 0x52d   :  { %4454 = vtanh.f32 %v3615_v45  ;;  %v1968_v25 = vadd.f32 %v1967_v18, %v5697_v62 }
 0x52e   :  { %v1555_v19 = vpop.f32.mrf.mxu1 }
 0x52f   :  { %v1556_v14 = vadd.f32 %v1555_v19, %v5708_v22  ;;  %v2314_v57 = vmax.f32 %v1968_v25, 0.0 }
 0x530   :  { %v2936_v44 = vpop.f32.mrf.mxu3  ;;  %v3350_v43 = vpop.f32.mrf.mxu0 }
 0x531   :  { %v2311_v30 = vmax.f32 %v1556_v14, 0.0  ;;  %v3346_v17 = vadd.f32 %v3345_v48, %v2936_v44 }
 0x533   :  { %v4455_v35 = vpop.eup %4454  ;;  %v3616_v56 = vadd.f32 %v6351_v60, %v3346_v17  ;;  %v2523_v47 = vpack.c.bf16 %v2311_v30, %v2309_v1 }
 0x534   :  { %3936 = vst.msk [vmem:[%s7104_s7 + $0x2c0] sm:$0xff] %vm3847_vm1, %v4455_v35  ;;  %v1969_v31 = vpop.f32.mrf.mxu2 }
 0x535   :  { %4456 = vtanh.f32 %v3616_v56  ;;  %v1970_v7 = vadd.f32 %v1969_v31, %v5697_v62  ;;  %2978 = vmatmul.bf16.gmra.mxu3 %v2523_v47 }
 0x536   :  { %v1558_v24 = vpop.f32.mrf.mxu1 }
 0x537   :  { %v2316_v36 = vmax.f32 %v1970_v7, 0.0  ;;  %v1559_v42 = vadd.f32 %v1558_v24, %v5708_v22  ;;  %v7167_v7 = vld [vmem:[#allocation7_spill] sm:$0xff] }
 0x538   :  { %v2939_v41 = vpop.f32.mrf.mxu3  ;;  %v3353_v54 = vpop.f32.mrf.mxu0 }
 0x539   :  { %v3349_v46 = vadd.f32 %v3348_v37, %v2939_v41  ;;  %1597 = vmatmul.bf16.gmra.mxu1 %v7164_v21  ;;  %2011 = vmatmul.bf16.gmra.mxu2 %v7165_v52  ;;  %v2526_v61 = vpack.c.bf16 %v2316_v36, %v2314_v57  ;;  %v2313_v53 = vmax.f32 %v1559_v42, 0.0 }
 0x53b   :  { %v4457_v28 = vpop.eup %4456  ;;  %v3617_v15 = vadd.f32 %v6351_v60, %v3349_v46  ;;  %3392 = vmatmul.bf16.gmra.mxu0 %v2526_v61 }
 0x53c   :  { %3937 = vst.msk [vmem:[%s7104_s7 + $0x2c8] sm:$0xff] %vm3847_vm1, %v4457_v28  ;;  %v1972_v5 = vpop.f32.mrf.mxu2 }
 0x53d   :  { %4458 = vtanh.f32 %v3617_v15  ;;  %v1973_v40 = vadd.f32 %v1972_v5, %v5697_v62 }
 0x53e   :  { %v1560_v50 = vpop.f32.mrf.mxu1 }
 0x53f   :  { %v1561_v2 = vadd.f32 %v1560_v50, %v5708_v22  ;;  %v2318_v12 = vmax.f32 %v1973_v40, 0.0 }
 0x540   :  { %v2941_v16 = vpop.f32.mrf.mxu3  ;;  %v3355_v49 = vpop.f32.mrf.mxu0 }
 0x541   :  { %v2315_v55 = vmax.f32 %v1561_v2, 0.0  ;;  %v3351_v11 = vadd.f32 %v3350_v43, %v2941_v16  ;;  %v6612_v2 = vld [vmem:[%s7103_s6] ss:$0 sm:$0xff] }
 0x543   :  { %v4459_v38 = vpop.eup %4458  ;;  %v3618_v3 = vadd.f32 %v6351_v60, %v3351_v11  ;;  %v2525_v48 = vpack.c.bf16 %v2315_v55, %v2313_v53 }
 0x544   :  { %3938 = vst.msk [vmem:[%s7104_s7 + $0x2d0] sm:$0xff] %vm3847_vm1, %v4459_v38  ;;  %v1974_v4 = vpop.f32.mrf.mxu2 }
 0x545   :  { %4460 = vtanh.f32 %v3618_v3  ;;  %v1975_v23 = vadd.f32 %v1974_v4, %v5697_v62  ;;  %2983 = vmatmul.bf16.gmra.mxu3 %v2525_v48 }
 0x546   :  { %v1563_v63 = vpop.f32.mrf.mxu1 }
 0x547   :  { %v2320_v20 = vmax.f32 %v1975_v23, 0.0  ;;  %v1564_v37 = vadd.f32 %v1563_v63, %v5708_v22  ;;  %v7168_v23 = vld [vmem:[#allocation9_spill] sm:$0xff] }
 0x548   :  { %v2944_v27 = vpop.f32.mrf.mxu3  ;;  %v3358_v58 = vpop.f32.mrf.mxu0 }
 0x549   :  { %v3354_v0 = vadd.f32 %v3353_v54, %v2944_v27  ;;  %1602 = vmatmul.bf16.gmra.mxu1 %v7165_v52  ;;  %2016 = vmatmul.bf16.gmra.mxu2 %v7166_v6  ;;  %v2528_v34 = vpack.c.bf16 %v2320_v20, %v2318_v12  ;;  %v2317_v45 = vmax.f32 %v1564_v37, 0.0 }
 0x54b   :  { %v4461_v9 = vpop.eup %4460  ;;  %v3619_v8 = vadd.f32 %v6351_v60, %v3354_v0  ;;  %3397 = vmatmul.bf16.gmra.mxu0 %v2528_v34 }
 0x54c   :  { %3939 = vst.msk [vmem:[%s7104_s7 + $0x2d8] sm:$0xff] %vm3847_vm1, %v4461_v9  ;;  %v1977_v26 = vpop.f32.mrf.mxu2 }
 0x54d   :  { %4462 = vtanh.f32 %v3619_v8  ;;  %v1978_v14 = vadd.f32 %v1977_v26, %v5697_v62 }
 0x54e   :  { %v1565_v39 = vpop.f32.mrf.mxu1 }
 0x54f   :  { %v1566_v21 = vadd.f32 %v1565_v39, %v5708_v22  ;;  %v2322_v35 = vmax.f32 %v1978_v14, 0.0 }
 0x550   :  { %v2946_v13 = vpop.f32.mrf.mxu3  ;;  %v3360_v32 = vpop.f32.mrf.mxu0 }
 0x551   :  { %v2319_v18 = vmax.f32 %v1566_v21, 0.0  ;;  %v3356_v33 = vadd.f32 %v3355_v49, %v2946_v13 }
 0x553   :  { %v4463_v19 = vpop.eup %4462  ;;  %v3620_v44 = vadd.f32 %v6351_v60, %v3356_v33  ;;  %v2527_v43 = vpack.c.bf16 %v2319_v18, %v2317_v45 }
 0x554   :  { %3940 = vst.msk [vmem:[%s7104_s7 + $0x2e0] sm:$0xff] %vm3847_vm1, %v4463_v19  ;;  %v1979_v1 = vpop.f32.mrf.mxu2 }
 0x555   :  { %4464 = vtanh.f32 %v3620_v44  ;;  %v1980_v30 = vadd.f32 %v1979_v1, %v5697_v62  ;;  %2988 = vmatmul.bf16.gmra.mxu3 %v2527_v43 }
 0x556   :  { %v1568_v17 = vpop.f32.mrf.mxu1 }
 0x557   :  { %v2324_v25 = vmax.f32 %v1980_v30, 0.0  ;;  %v1569_v54 = vadd.f32 %v1568_v17, %v5708_v22  ;;  %v7169_v30 = vld [vmem:[#allocation11_spill] sm:$0xff] }
 0x558   :  { %v2949_v56 = vpop.f32.mrf.mxu3  ;;  %v3363_v47 = vpop.f32.mrf.mxu0 }
 0x559   :  { %v3359_v31 = vadd.f32 %v3358_v58, %v2949_v56  ;;  %1607 = vmatmul.bf16.gmra.mxu1 %v7166_v6  ;;  %2021 = vmatmul.bf16.gmra.mxu2 %v7167_v7  ;;  %v2530_v24 = vpack.c.bf16 %v2324_v25, %v2322_v35  ;;  %v2321_v15 = vmax.f32 %v1569_v54, 0.0 }
 0x55b   :  { %v4465_v57 = vpop.eup %4464  ;;  %v3621_v36 = vadd.f32 %v6351_v60, %v3359_v31  ;;  %3402 = vmatmul.bf16.gmra.mxu0 %v2530_v24  ;;  %v6647_v31 = vld [vmem:[%s7100_s2] ss:$0 sm:$0xff] }
 0x55c   :  { %3941 = vst.msk [vmem:[%s7104_s7 + $0x2e8] sm:$0xff] %vm3847_vm1, %v4465_v57  ;;  %v1982_v41 = vpop.f32.mrf.mxu2 }
 0x55d   :  { %4466 = vtanh.f32 %v3621_v36  ;;  %v1983_v60 = vadd.f32 %v1982_v41, %v5697_v62  ;;  %v7171_v36 = vld [vmem:[#allocation13_spill] sm:$0xff] }
 0x55e   :  { %v1570_v46 = vpop.f32.mrf.mxu1  ;;  %v880_v41 = vadd.f32 %v6647_v31, %v7171_v36 }
 0x55f   :  { %v1571_v52 = vadd.f32 %v1570_v46, %v5708_v22  ;;  %v2326_v38 = vmax.f32 %v1983_v60, 0.0 }
 0x560   :  { %v2951_v61 = vpop.f32.mrf.mxu3  ;;  %v3365_v28 = vpop.f32.mrf.mxu0 }
 0x561   :  { %v2323_v5 = vmax.f32 %v1571_v52, 0.0  ;;  %v3361_v42 = vadd.f32 %v3360_v32, %v2951_v61 }
 0x563   :  { %v4467_v50 = vpop.eup %4466  ;;  %v3622_v16 = vadd.f32 %v6612_v2, %v3361_v42  ;;  %v2529_v49 = vpack.c.bf16 %v2323_v5, %v2321_v15 }
 0x564   :  { %3942 = vst.msk [vmem:[%s7104_s7 + $0x2f0] sm:$0xff] %vm3847_vm1, %v4467_v50  ;;  %v1984_v53 = vpop.f32.mrf.mxu2  ;;  %v1074_v50 = vmax.f32 %v880_v41, 0.0 }
 0x565   :  { %4468 = vtanh.f32 %v3622_v16  ;;  %v1985_v55 = vadd.f32 %v1984_v53, %v5697_v62  ;;  %2993 = vmatmul.bf16.gmra.mxu3 %v2529_v49 }
 0x566   :  { %v1573_v11 = vpop.f32.mrf.mxu1 }
 0x567   :  { %v2328_v40 = vmax.f32 %v1985_v55, 0.0  ;;  %v1574_v58 = vadd.f32 %v1573_v11, %v5708_v22 }
 0x568   :  { %v2954_v3 = vpop.f32.mrf.mxu3  ;;  %v3368_v48 = vpop.f32.mrf.mxu0 }
 0x569   :  { %v3364_v4 = vadd.f32 %v3363_v47, %v2954_v3  ;;  %1612 = vmatmul.bf16.gmra.mxu1 %v7167_v7  ;;  %2026 = vmatmul.bf16.gmra.mxu2 %v7168_v23  ;;  %v2532_v63 = vpack.c.bf16 %v2328_v40, %v2326_v38  ;;  %v2325_v8 = vmax.f32 %v1574_v58, 0.0  ;;  %v7170_v7 = vld [vmem:[#allocation12_spill] sm:$0xff] }
 0x56a   :  { %v878_v24 = vadd.f32 %v6647_v31, %v7170_v7 }
 0x56b   :  { %v4469_v12 = vpop.eup %4468  ;;  %v3623_v20 = vadd.f32 %v6612_v2, %v3364_v4  ;;  %3407 = vmatmul.bf16.gmra.mxu0 %v2532_v63 }
 0x56c   :  { %3943 = vst.msk [vmem:[%s7104_s7 + $0x2f8] sm:$0xff] %vm3847_vm1, %v4469_v12  ;;  %v1987_v27 = vpop.f32.mrf.mxu2  ;;  %v1073_v5 = vmax.f32 %v878_v24, 0.0 }
 0x56d   :  { %4470 = vtanh.f32 %v3623_v20  ;;  %v1988_v21 = vadd.f32 %v1987_v27, %v5697_v62 }
 0x56e   :  { %v1575_v0 = vpop.f32.mrf.mxu1  ;;  %v1165_v3 = vpack.c.bf16 %v1074_v50, %v1073_v5 }
 0x56f   :  { %v1576_v6 = vadd.f32 %v1575_v0, %v5708_v22  ;;  %v2330_v19 = vmax.f32 %v1988_v21, 0.0  ;;  %v7172_v0 = vld [vmem:[#allocation15_spill] sm:$0xff] }
 0x570   :  { %v2956_v34 = vpop.f32.mrf.mxu3  ;;  %v3370_v9 = vpop.f32.mrf.mxu0 }
 0x571   :  { %v2327_v26 = vmax.f32 %v1576_v6, 0.0  ;;  %v3366_v37 = vadd.f32 %v3365_v28, %v2956_v34  ;;  %v883_v6 = vadd.f32 %v6647_v31, %v7172_v0 }
 0x573   :  { %v4471_v39 = vpop.eup %4470  ;;  %v3624_v13 = vadd.f32 %v6612_v2, %v3366_v37  ;;  %v2531_v32 = vpack.c.bf16 %v2327_v26, %v2325_v8 }
 0x574   :  { %3944 = vst.msk [vmem:[%s7104_s7 + $0x300] sm:$0xff] %vm3847_vm1, %v4471_v39  ;;  %v1989_v45 = vpop.f32.mrf.mxu2 }
 0x575   :  { %4472 = vtanh.f32 %v3624_v13  ;;  %v1990_v18 = vadd.f32 %v1989_v45, %v5697_v62  ;;  %2998 = vmatmul.bf16.gmra.mxu3 %v2531_v32  ;;  %v1075_v45 = vmax.f32 %v883_v6, 0.0 }
 0x576   :  { %v1578_v33 = vpop.f32.mrf.mxu1 }
 0x577   :  { %v2332_v14 = vmax.f32 %v1990_v18, 0.0  ;;  %v1579_v47 = vadd.f32 %v1578_v33, %v5708_v22 }
 0x578   :  { %v2959_v44 = vpop.f32.mrf.mxu3  ;;  %v3373_v43 = vpop.f32.mrf.mxu0 }
 0x579   :  { %v3369_v1 = vadd.f32 %v3368_v48, %v2959_v44  ;;  %1617 = vmatmul.bf16.gmra.mxu1 %v7168_v23  ;;  %2031 = vmatmul.bf16.gmra.mxu2 %v7169_v30  ;;  %v2534_v17 = vpack.c.bf16 %v2332_v14, %v2330_v19  ;;  %v2329_v61 = vmax.f32 %v1579_v47, 0.0 }
 0x57b   :  { %v4473_v35 = vpop.eup %4472  ;;  %v3625_v25 = vadd.f32 %v6612_v2, %v3369_v1  ;;  %3412 = vmatmul.bf16.gmra.mxu0 %v2534_v17 }
 0x57c   :  { %3945 = vst.msk [vmem:[%s7104_s7 + $0x308] sm:$0xff] %vm3847_vm1, %v4473_v35  ;;  %v1992_v56 = vpop.f32.mrf.mxu2 }
 0x57d   :  { %4474 = vtanh.f32 %v3625_v25  ;;  %v1993_v60 = vadd.f32 %v1992_v56, %v5697_v62 }
 0x57e   :  { %v1580_v57 = vpop.f32.mrf.mxu1 }
 0x57f   :  { %v1581_v54 = vadd.f32 %v1580_v57, %v5708_v22  ;;  %v2334_v38 = vmax.f32 %v1993_v60, 0.0 }
 0x580   :  { %v2961_v46 = vpop.f32.mrf.mxu3  ;;  %v3375_v52 = vpop.f32.mrf.mxu0 }
 0x581   :  { %v2331_v28 = vmax.f32 %v1581_v54, 0.0  ;;  %v3371_v15 = vadd.f32 %v3370_v9, %v2961_v46  ;;  %v7173_v9 = vld [vmem:[#allocation16_spill] sm:$0xff]  ;;  %v7174_v46 = vld [vmem:[#allocation18_spill] sm:$0xff] }
 0x582   :  { %v885_v8 = vadd.f32 %v6647_v31, %v7173_v9 }
 0x583   :  { %v4475_v42 = vpop.eup %4474  ;;  %v3626_v16 = vadd.f32 %v6612_v2, %v3371_v15  ;;  %v2533_v49 = vpack.c.bf16 %v2331_v28, %v2329_v61  ;;  %v7175_v28 = vld [vmem:[#allocation20_spill] sm:$0xff] }
 0x584   :  { %3946 = vst.msk [vmem:[%s7104_s7 + $0x310] sm:$0xff] %vm3847_vm1, %v4475_v42  ;;  %v1994_v53 = vpop.f32.mrf.mxu2  ;;  %v1076_v33 = vmax.f32 %v885_v8, 0.0  ;;  %v890_v15 = vadd.f32 %v6647_v31, %v7175_v28 }
 0x585   :  { %4476 = vtanh.f32 %v3626_v16  ;;  %v1995_v55 = vadd.f32 %v1994_v53, %v5697_v62  ;;  %3003 = vmatmul.bf16.gmra.mxu3 %v2533_v49 }
 0x586   :  { %v1583_v11 = vpop.f32.mrf.mxu1  ;;  %v1166_v25 = vpack.c.bf16 %v1076_v33, %v1075_v45 }
 0x587   :  { %v2336_v40 = vmax.f32 %v1995_v55, 0.0  ;;  %v1584_v58 = vadd.f32 %v1583_v11, %v5708_v22  ;;  %v1078_v11 = vmax.f32 %v890_v15, 0.0 }
 0x588   :  { %v2964_v48 = vpop.f32.mrf.mxu3  ;;  %v3378_v4 = vpop.f32.mrf.mxu0 }
 0x589   :  { %v3374_v23 = vadd.f32 %v3373_v43, %v2964_v48  ;;  %1622 = vmatmul.bf16.gmra.mxu1 %v7169_v30  ;;  %2036 = vmatmul.bf16.gmra.mxu2 %v1165_v3  ;;  %v2536_v63 = vpack.c.bf16 %v2336_v40, %v2334_v38  ;;  %v2333_v21 = vmax.f32 %v1584_v58, 0.0 }
 0x58b   :  { %v4477_v12 = vpop.eup %4476  ;;  %v3627_v20 = vadd.f32 %v6612_v2, %v3374_v23  ;;  %3417 = vmatmul.bf16.gmra.mxu0 %v2536_v63 }
 0x58c   :  { %3947 = vst.msk [vmem:[%s7104_s7 + $0x318] sm:$0xff] %vm3847_vm1, %v4477_v12  ;;  %v1997_v27 = vpop.f32.mrf.mxu2 }
 0x58d   :  { %4478 = vtanh.f32 %v3627_v20  ;;  %v1998_v19 = vadd.f32 %v1997_v27, %v5697_v62 }
 0x58e   :  { %v1585_v34 = vpop.f32.mrf.mxu1 }
 0x58f   :  { %v1586_v26 = vadd.f32 %v1585_v34, %v5708_v22  ;;  %v2338_v17 = vmax.f32 %v1998_v19, 0.0 }
 0x590   :  { %v2966_v37 = vpop.f32.mrf.mxu3  ;;  %v3380_v39 = vpop.f32.mrf.mxu0 }
 0x591   :  { %v2335_v13 = vmax.f32 %v1586_v26, 0.0  ;;  %v3376_v32 = vadd.f32 %v3375_v52, %v2966_v37  ;;  %v888_v52 = vadd.f32 %v6647_v31, %v7174_v46  ;;  %v7176_v37 = vld [vmem:[#allocation21_spill] sm:$0xff] }
 0x593   :  { %v4479_v18 = vpop.eup %4478  ;;  %v3628_v14 = vadd.f32 %v6612_v2, %v3376_v32  ;;  %v2535_v44 = vpack.c.bf16 %v2335_v13, %v2333_v21  ;;  %v1077_v53 = vmax.f32 %v888_v52, 0.0  ;;  %v7177_v13 = vld [vmem:[#allocation23_spill] sm:$0xff] }
 0x594   :  { %3948 = vst.msk [vmem:[%s7104_s7 + $0x320] sm:$0xff] %vm3847_vm1, %v4479_v18  ;;  %v1999_v43 = vpop.f32.mrf.mxu2  ;;  %v895_v32 = vadd.f32 %v6647_v31, %v7177_v13 }
 0x595   :  { %4480 = vtanh.f32 %v3628_v14  ;;  %v2000_v1 = vadd.f32 %v1999_v43, %v5697_v62  ;;  %3008 = vmatmul.bf16.gmra.mxu3 %v2535_v44  ;;  %v1167_v20 = vpack.c.bf16 %v1078_v11, %v1077_v53 }
 0x596   :  { %v1588_v30 = vpop.f32.mrf.mxu1 }
 0x597   :  { %v2340_v35 = vmax.f32 %v2000_v1, 0.0  ;;  %v1589_v54 = vadd.f32 %v1588_v30, %v5708_v22  ;;  %v1080_v30 = vmax.f32 %v895_v32, 0.0 }
 0x598   :  { %v2969_v56 = vpop.f32.mrf.mxu3  ;;  %v3383_v47 = vpop.f32.mrf.mxu0 }
 0x599   :  { %v3379_v7 = vadd.f32 %v3378_v4, %v2969_v56  ;;  %1627 = vmatmul.bf16.gmra.mxu1 %v1165_v3  ;;  %2041 = vmatmul.bf16.gmra.mxu2 %v1166_v25  ;;  %v2538_v24 = vpack.c.bf16 %v2340_v35, %v2338_v17  ;;  %v2337_v60 = vmax.f32 %v1589_v54, 0.0 }
 0x59b   :  { %v4481_v57 = vpop.eup %4480  ;;  %v3629_v36 = vadd.f32 %v6612_v2, %v3379_v7  ;;  %3422 = vmatmul.bf16.gmra.mxu0 %v2538_v24 }
 0x59c   :  { %3949 = vst.msk [vmem:[%s7104_s7 + $0x328] sm:$0xff] %vm3847_vm1, %v4481_v57  ;;  %v2002_v41 = vpop.f32.mrf.mxu2 }
 0x59d   :  { %4482 = vtanh.f32 %v3629_v36  ;;  %v2003_v38 = vadd.f32 %v2002_v41, %v5697_v62 }
 0x59e   :  { %v1590_v61 = vpop.f32.mrf.mxu1 }
 0x59f   :  { %v1591_v5 = vadd.f32 %v1590_v61, %v5708_v22  ;;  %v2342_v63 = vmax.f32 %v2003_v38, 0.0 }
 0x5a0   :  { %v2971_v42 = vpop.f32.mrf.mxu3  ;;  %v3385_v50 = vpop.f32.mrf.mxu0 }
 0x5a1   :  { %v2339_v16 = vmax.f32 %v1591_v5, 0.0  ;;  %v3381_v49 = vadd.f32 %v3380_v39, %v2971_v42  ;;  %v893_v39 = vadd.f32 %v6647_v31, %v7176_v37  ;;  %v7178_v42 = vld [vmem:[#allocation25_spill] sm:$0xff] }
 0x5a3   :  { %v4483_v55 = vpop.eup %4482  ;;  %v3630_v40 = vadd.f32 %v6612_v2, %v3381_v49  ;;  %v2537_v3 = vpack.c.bf16 %v2339_v16, %v2337_v60  ;;  %v1079_v43 = vmax.f32 %v893_v39, 0.0  ;;  %v7179_v16 = vld [vmem:[#allocation26_spill] sm:$0xff] }
 0x5a4   :  { %3950 = vst.msk [vmem:[%s7104_s7 + $0x330] sm:$0xff] %vm3847_vm1, %v4483_v55  ;;  %v2004_v48 = vpop.f32.mrf.mxu2  ;;  %v900_v49 = vadd.f32 %v6647_v31, %v7179_v16 }
 0x5a5   :  { %4484 = vtanh.f32 %v3630_v40  ;;  %v2005_v4 = vadd.f32 %v2004_v48, %v5697_v62  ;;  %3013 = vmatmul.bf16.gmra.mxu3 %v2537_v3  ;;  %v1168_v36 = vpack.c.bf16 %v1080_v30, %v1079_v43 }
 0x5a6   :  { %v1593_v23 = vpop.f32.mrf.mxu1 }
 0x5a7   :  { %v2344_v12 = vmax.f32 %v2005_v4, 0.0  ;;  %v1594_v26 = vadd.f32 %v1593_v23, %v5708_v22  ;;  %v1082_v23 = vmax.f32 %v900_v49, 0.0 }
 0x5a8   :  { %v2974_v27 = vpop.f32.mrf.mxu3  ;;  %v3388_v58 = vpop.f32.mrf.mxu0 }
 0x5a9   :  { %v3384_v0 = vadd.f32 %v3383_v47, %v2974_v27  ;;  %1632 = vmatmul.bf16.gmra.mxu1 %v1166_v25  ;;  %2046 = vmatmul.bf16.gmra.mxu2 %v1167_v20  ;;  %v2540_v6 = vpack.c.bf16 %v2344_v12, %v2342_v63  ;;  %v2341_v19 = vmax.f32 %v1594_v26, 0.0 }
 0x5ab   :  { %v4485_v34 = vpop.eup %4484  ;;  %v3631_v9 = vadd.f32 %v6612_v2, %v3384_v0  ;;  %3427 = vmatmul.bf16.gmra.mxu0 %v2540_v6 }
 0x5ac   :  { %3951 = vst.msk [vmem:[%s7104_s7 + $0x338] sm:$0xff] %vm3847_vm1, %v4485_v34  ;;  %v2007_v8 = vpop.f32.mrf.mxu2 }
 0x5ad   :  { %4486 = vtanh.f32 %v3631_v9  ;;  %v2008_v17 = vadd.f32 %v2007_v8, %v5697_v62 }
 0x5ae   :  { %v1595_v21 = vpop.f32.mrf.mxu1 }
 0x5af   :  { %v1596_v45 = vadd.f32 %v1595_v21, %v5708_v22  ;;  %v2346_v24 = vmax.f32 %v2008_v17, 0.0 }
 0x5b0   :  { %v2976_v18 = vpop.f32.mrf.mxu3  ;;  %v3390_v33 = vpop.f32.mrf.mxu0 }
 0x5b1   :  { %v2343_v14 = vmax.f32 %v1596_v45, 0.0  ;;  %v3386_v44 = vadd.f32 %v3385_v50, %v2976_v18  ;;  %v898_v50 = vadd.f32 %v6647_v31, %v7178_v42  ;;  %v7180_v18 = vld [vmem:[#allocation27_spill] sm:$0xff] }
 0x5b3   :  { %v4487_v1 = vpop.eup %4486  ;;  %v3632_v35 = vadd.f32 %v6612_v2, %v3386_v44  ;;  %v2539_v25 = vpack.c.bf16 %v2343_v14, %v2341_v19  ;;  %v1081_v48 = vmax.f32 %v898_v50, 0.0  ;;  %v7181_v14 = vld [vmem:[#allocation28_spill] sm:$0xff] }
 0x5b4   :  { %3952 = vst.msk [vmem:[%s7104_s7 + $0x340] sm:$0xff] %vm3847_vm1, %v4487_v1  ;;  %v2009_v56 = vpop.f32.mrf.mxu2  ;;  %v905_v44 = vadd.f32 %v6647_v31, %v7181_v14 }
 0x5b5   :  { %4488 = vtanh.f32 %v3632_v35  ;;  %v2010_v47 = vadd.f32 %v2009_v56, %v5697_v62  ;;  %3018 = vmatmul.bf16.gmra.mxu3 %v2539_v25  ;;  %v1169_v9 = vpack.c.bf16 %v1082_v23, %v1081_v48 }
 0x5b6   :  { %v1598_v7 = vpop.f32.mrf.mxu1 }
 0x5b7   :  { %v2348_v57 = vmax.f32 %v2010_v47, 0.0  ;;  %v1599_v5 = vadd.f32 %v1598_v7, %v5708_v22  ;;  %v1084_v7 = vmax.f32 %v905_v44, 0.0 }
 0x5b8   :  { %v2979_v41 = vpop.f32.mrf.mxu3  ;;  %v3393_v54 = vpop.f32.mrf.mxu0 }
 0x5b9   :  { %v3389_v46 = vadd.f32 %v3388_v58, %v2979_v41  ;;  %1637 = vmatmul.bf16.gmra.mxu1 %v1167_v20  ;;  %2051 = vmatmul.bf16.gmra.mxu2 %v1168_v36  ;;  %v2542_v52 = vpack.c.bf16 %v2348_v57, %v2346_v24  ;;  %v2345_v38 = vmax.f32 %v1599_v5, 0.0 }
 0x5bb   :  { %v4489_v61 = vpop.eup %4488  ;;  %v3633_v28 = vadd.f32 %v6612_v2, %v3389_v46  ;;  %3432 = vmatmul.bf16.gmra.mxu0 %v2542_v52 }
 0x5bc   :  { %3953 = vst.msk [vmem:[%s7104_s7 + $0x348] sm:$0xff] %vm3847_vm1, %v4489_v61  ;;  %v2012_v15 = vpop.f32.mrf.mxu2 }
 0x5bd   :  { %4490 = vtanh.f32 %v3633_v28  ;;  %v2013_v63 = vadd.f32 %v2012_v15, %v5697_v62 }
 0x5be   :  { %v1600_v60 = vpop.f32.mrf.mxu1 }
 0x5bf   :  { %v1601_v53 = vadd.f32 %v1600_v60, %v5708_v22  ;;  %v2350_v6 = vmax.f32 %v2013_v63, 0.0 }
 0x5c0   :  { %v2981_v55 = vpop.f32.mrf.mxu3  ;;  %v3395_v11 = vpop.f32.mrf.mxu0 }
 0x5c1   :  { %v2347_v40 = vmax.f32 %v1601_v53, 0.0  ;;  %v3391_v3 = vadd.f32 %v3390_v33, %v2981_v55  ;;  %v903_v33 = vadd.f32 %v6647_v31, %v7180_v18  ;;  %v7182_v55 = vld [vmem:[#allocation29_spill] sm:$0xff] }
 0x5c3   :  { %v4491_v4 = vpop.eup %4490  ;;  %v3634_v12 = vadd.f32 %v6612_v2, %v3391_v3  ;;  %v2541_v20 = vpack.c.bf16 %v2347_v40, %v2345_v38  ;;  %v1083_v56 = vmax.f32 %v903_v33, 0.0  ;;  %v7183_v40 = vld [vmem:[#allocation30_spill] sm:$0xff] }
 0x5c4   :  { %3954 = vst.msk [vmem:[%s7104_s7 + $0x350] sm:$0xff] %vm3847_vm1, %v4491_v4  ;;  %v2014_v27 = vpop.f32.mrf.mxu2  ;;  %v910_v3 = vadd.f32 %v6647_v31, %v7183_v40 }
 0x5c5   :  { %4492 = vtanh.f32 %v3634_v12  ;;  %v2015_v58 = vadd.f32 %v2014_v27, %v5697_v62  ;;  %3023 = vmatmul.bf16.gmra.mxu3 %v2541_v20  ;;  %v1170_v28 = vpack.c.bf16 %v1084_v7, %v1083_v56 }
 0x5c6   :  { %v1603_v0 = vpop.f32.mrf.mxu1 }
 0x5c7   :  { %v2352_v34 = vmax.f32 %v2015_v58, 0.0  ;;  %v1604_v45 = vadd.f32 %v1603_v0, %v5708_v22  ;;  %v1086_v0 = vmax.f32 %v910_v3, 0.0  ;;  %v7185_v3 = vld [vmem:[#allocation32_spill] sm:$0xff] }
 0x5c8   :  { %v2984_v8 = vpop.f32.mrf.mxu3  ;;  %v3398_v26 = vpop.f32.mrf.mxu0 }
 0x5c9   :  { %v3394_v37 = vadd.f32 %v3393_v54, %v2984_v8  ;;  %1642 = vmatmul.bf16.gmra.mxu1 %v1168_v36  ;;  %2056 = vmatmul.bf16.gmra.mxu2 %v1169_v9  ;;  %v2544_v39 = vpack.c.bf16 %v2352_v34, %v2350_v6  ;;  %v2349_v17 = vmax.f32 %v1604_v45, 0.0 }
 0x5cb   :  { %v4493_v21 = vpop.eup %4492  ;;  %v3635_v13 = vadd.f32 %v6612_v2, %v3394_v37  ;;  %3437 = vmatmul.bf16.gmra.mxu0 %v2544_v39 }
 0x5cc   :  { %3955 = vst.msk [vmem:[%s7104_s7 + $0x358] sm:$0xff] %vm3847_vm1, %v4493_v21  ;;  %v2017_v32 = vpop.f32.mrf.mxu2 }
 0x5cd   :  { %4494 = vtanh.f32 %v3635_v13  ;;  %v2018_v24 = vadd.f32 %v2017_v32, %v5697_v62 }
 0x5ce   :  { %v1605_v19 = vpop.f32.mrf.mxu1 }
 0x5cf   :  { %v1606_v43 = vadd.f32 %v1605_v19, %v5708_v22  ;;  %v2354_v52 = vmax.f32 %v2018_v24, 0.0 }
 0x5d0   :  { %v2986_v1 = vpop.f32.mrf.mxu3  ;;  %v3400_v30 = vpop.f32.mrf.mxu0 }
 0x5d1   :  { %v2351_v35 = vmax.f32 %v1606_v43, 0.0  ;;  %v3396_v25 = vadd.f32 %v3395_v11, %v2986_v1  ;;  %v908_v11 = vadd.f32 %v6647_v31, %v7182_v55  ;;  %v913_v1 = vadd.f32 %v6647_v31, %v5750_v51 }
 0x5d3   :  { %v4495_v47 = vpop.eup %4494  ;;  %v3636_v57 = vadd.f32 %v6612_v2, %v3396_v25  ;;  %v2543_v36 = vpack.c.bf16 %v2351_v35, %v2349_v17  ;;  %v1085_v27 = vmax.f32 %v908_v11, 0.0  ;;  %v7184_v17 = vld [vmem:[#allocation31_spill] sm:$0xff] }
 0x5d4   :  { %3956 = vst.msk [vmem:[%s7104_s7 + $0x360] sm:$0xff] %vm3847_vm1, %v4495_v47  ;;  %v2019_v41 = vpop.f32.mrf.mxu2  ;;  %v915_v35 = vadd.f32 %v6647_v31, %v7184_v17  ;;  %v7186_v17 = vld [vmem:[#allocation33_spill] sm:$0xff] }
 0x5d5   :  { %4496 = vtanh.f32 %v3636_v57  ;;  %v2020_v54 = vadd.f32 %v2019_v41, %v5697_v62  ;;  %3028 = vmatmul.bf16.gmra.mxu3 %v2543_v36  ;;  %v1171_v13 = vpack.c.bf16 %v1086_v0, %v1085_v27  ;;  %v1087_v36 = vmax.f32 %v913_v1, 0.0 }
 0x5d6   :  { %v1608_v46 = vpop.f32.mrf.mxu1 }
 0x5d7   :  { %v2356_v61 = vmax.f32 %v2020_v54, 0.0  ;;  %v1609_v53 = vadd.f32 %v1608_v46, %v5708_v22  ;;  %v1088_v54 = vmax.f32 %v915_v35, 0.0  ;;  %v923_v35 = vadd.f32 %v6647_v31, %v7186_v17 }
 0x5d8   :  { %v2989_v15 = vpop.f32.mrf.mxu3  ;;  %v3403_v5 = vpop.f32.mrf.mxu0 }
 0x5d9   :  { %v3399_v42 = vadd.f32 %v3398_v26, %v2989_v15  ;;  %1647 = vmatmul.bf16.gmra.mxu1 %v1169_v9  ;;  %2061 = vmatmul.bf16.gmra.mxu2 %v1170_v28  ;;  %v2546_v50 = vpack.c.bf16 %v2356_v61, %v2354_v52  ;;  %v2353_v63 = vmax.f32 %v1609_v53, 0.0 }
 0x5db   :  { %v4497_v60 = vpop.eup %4496  ;;  %v3637_v16 = vadd.f32 %v6612_v2, %v3399_v42  ;;  %3442 = vmatmul.bf16.gmra.mxu0 %v2546_v50  ;;  %v1172_v50 = vpack.c.bf16 %v1088_v54, %v1087_v36 }
 0x5dc   :  { %3957 = vst.msk [vmem:[%s7104_s7 + $0x368] sm:$0xff] %vm3847_vm1, %v4497_v60  ;;  %v2022_v49 = vpop.f32.mrf.mxu2 }
 0x5dd   :  { %4498 = vtanh.f32 %v3637_v16  ;;  %v2023_v6 = vadd.f32 %v2022_v49, %v5697_v62 }
 0x5de   :  { %v1610_v38 = vpop.f32.mrf.mxu1 }
 0x5df   :  { %v1611_v48 = vadd.f32 %v1610_v38, %v5708_v22  ;;  %v2358_v39 = vmax.f32 %v2023_v6, 0.0 }
 0x5e0   :  { %v2991_v4 = vpop.f32.mrf.mxu3  ;;  %v3405_v23 = vpop.f32.mrf.mxu0 }
 0x5e1   :  { %v2355_v12 = vmax.f32 %v1611_v48, 0.0  ;;  %v3401_v20 = vadd.f32 %v3400_v30, %v2991_v4  ;;  %v918_v48 = vadd.f32 %v6647_v31, %v7185_v3 }
 0x5e3   :  { %v4499_v58 = vpop.eup %4498  ;;  %v3638_v34 = vadd.f32 %v6612_v2, %v3401_v20  ;;  %v2545_v9 = vpack.c.bf16 %v2355_v12, %v2353_v63  ;;  %v1089_v6 = vmax.f32 %v918_v48, 0.0 }
 0x5e4   :  { %3958 = vst.msk [vmem:[%s7104_s7 + $0x370] sm:$0xff] %vm3847_vm1, %v4499_v58  ;;  %v2024_v8 = vpop.f32.mrf.mxu2 }
 0x5e5   :  { %4500 = vtanh.f32 %v3638_v34  ;;  %v2025_v26 = vadd.f32 %v2024_v8, %v5697_v62  ;;  %3033 = vmatmul.bf16.gmra.mxu3 %v2545_v9 }
 0x5e6   :  { %v1613_v37 = vpop.f32.mrf.mxu1 }
 0x5e7   :  { %v2360_v21 = vmax.f32 %v2025_v26, 0.0  ;;  %v1614_v43 = vadd.f32 %v1613_v37, %v5708_v22 }
 0x5e8   :  { %v2994_v32 = vpop.f32.mrf.mxu3  ;;  %v3408_v45 = vpop.f32.mrf.mxu0 }
 0x5e9   :  { %v3404_v18 = vadd.f32 %v3403_v5, %v2994_v32  ;;  %1652 = vmatmul.bf16.gmra.mxu1 %v1170_v28  ;;  %2066 = vmatmul.bf16.gmra.mxu2 %v1171_v13  ;;  %v2548_v33 = vpack.c.bf16 %v2360_v21, %v2358_v39  ;;  %v2357_v7 = vmax.f32 %v1614_v43, 0.0 }
 0x5eb   :  { %v4501_v19 = vpop.eup %4500  ;;  %v3639_v14 = vadd.f32 %v6612_v2, %v3404_v18  ;;  %3447 = vmatmul.bf16.gmra.mxu0 %v2548_v33 }
 0x5ec   :  { %3959 = vst.msk [vmem:[%s7104_s7 + $0x378] sm:$0xff] %vm3847_vm1, %v4501_v19  ;;  %v2027_v44 = vpop.f32.mrf.mxu2 }
 0x5ed   :  { %4502 = vtanh.f32 %v3639_v14  ;;  %v2028_v46 = vadd.f32 %v2027_v44, %v5697_v62 }
 0x5ee   :  { %v1615_v30 = vpop.f32.mrf.mxu1 }
 0x5ef   :  { %v1616_v25 = vadd.f32 %v1615_v30, %v5708_v22  ;;  %v2362_v5 = vmax.f32 %v2028_v46, 0.0  ;;  %v1091_v46 = vmax.f32 %v923_v35, 0.0 }
 0x5f0   :  { %v2996_v56 = vpop.f32.mrf.mxu3  ;;  %v3410_v47 = vpop.f32.mrf.mxu0 }
 0x5f1   :  { %v2359_v24 = vmax.f32 %v1616_v25, 0.0  ;;  %v3406_v57 = vadd.f32 %v3405_v23, %v2996_v56  ;;  %v920_v23 = vadd.f32 %v6647_v31, %v5777_v59  ;;  %v7187_v56 = vld [vmem:[#allocation34_spill] sm:$0xff] }
 0x5f3   :  { %v4503_v41 = vpop.eup %4502  ;;  %v3640_v52 = vadd.f32 %v6612_v2, %v3406_v57  ;;  %v2547_v61 = vpack.c.bf16 %v2359_v24, %v2357_v7  ;;  %v1090_v9 = vmax.f32 %v920_v23, 0.0  ;;  %v7188_v23 = vld [vmem:[#allocation35_spill] sm:$0xff] }
 0x5f4   :  { %3960 = vst.msk [vmem:[%s7104_s7 + $0x380] sm:$0xff] %vm3847_vm1, %v4503_v41  ;;  %v2029_v51 = vpop.f32.mrf.mxu2 }
 0x5f5   :  { %4504 = vtanh.f32 %v3640_v52  ;;  %v2030_v28 = vadd.f32 %v2029_v51, %v5697_v62  ;;  %3038 = vmatmul.bf16.gmra.mxu3 %v2547_v61 }
 0x5f6   :  { %v1618_v15 = vpop.f32.mrf.mxu1 }
 0x5f7   :  { %v2364_v42 = vmax.f32 %v2030_v28, 0.0  ;;  %v1619_v40 = vadd.f32 %v1618_v15, %v5708_v22 }
 0x5f8   :  { %v2999_v60 = vpop.f32.mrf.mxu3  ;;  %v3413_v16 = vpop.f32.mrf.mxu0 }
 0x5f9   :  { %v3409_v49 = vadd.f32 %v3408_v45, %v2999_v60  ;;  %1657 = vmatmul.bf16.gmra.mxu1 %v1171_v13  ;;  %2071 = vmatmul.bf16.gmra.mxu2 %v1172_v50  ;;  %v2550_v53 = vpack.c.bf16 %v2364_v42, %v2362_v5  ;;  %v2361_v27 = vmax.f32 %v1619_v40, 0.0  ;;  %v1173_v45 = vpack.c.bf16 %v1090_v9, %v1089_v6 }
 0x5fb   :  { %v4505_v55 = vpop.eup %4504  ;;  %v3641_v11 = vadd.f32 %v6612_v2, %v3409_v49  ;;  %3452 = vmatmul.bf16.gmra.mxu0 %v2550_v53 }
 0x5fc   :  { %3961 = vst.msk [vmem:[%s7104_s7 + $0x388] sm:$0xff] %vm3847_vm1, %v4505_v55  ;;  %v2032_v38 = vpop.f32.mrf.mxu2 }
 0x5fd   :  { %4506 = vtanh.f32 %v3641_v11  ;;  %v2033_v8 = vadd.f32 %v2032_v38, %v5697_v62 }
 0x5fe   :  { %v1620_v4 = vpop.f32.mrf.mxu1 }
 0x5ff   :  { %v1621_v63 = vadd.f32 %v1620_v4, %v5708_v22  ;;  %v2366_v13 = vmax.f32 %v2033_v8, 0.0 }
 0x600   :  { %v3001_v12 = vpop.f32.mrf.mxu3  ;;  %v3415_v20 = vpop.f32.mrf.mxu0 }
 0x601   :  { %v2363_v58 = vmax.f32 %v1621_v63, 0.0  ;;  %v3411_v0 = vadd.f32 %v3410_v47, %v3001_v12  ;;  %v925_v47 = vadd.f32 %v6647_v31, %v7187_v56  ;;  %v928_v63 = vadd.f32 %v6647_v31, %v7188_v23 }
 0x603   :  { %v4507_v34 = vpop.eup %4506  ;;  %v3642_v26 = vadd.f32 %v6612_v2, %v3411_v0  ;;  %v2549_v37 = vpack.c.bf16 %v2363_v58, %v2361_v27  ;;  %v1092_v61 = vmax.f32 %v925_v47, 0.0  ;;  %v933_v47 = vadd.f32 %v6647_v31, %v5822_v10 }
 0x604   :  { %3962 = vst.msk [vmem:[%s7104_s7 + $0x390] sm:$0xff] %vm3847_vm1, %v4507_v34  ;;  %v2034_v59 = vpop.f32.mrf.mxu2 }
 0x605   :  { %4508 = vtanh.f32 %v3642_v26  ;;  %v2035_v39 = vadd.f32 %v2034_v59, %v5697_v62  ;;  %3043 = vmatmul.bf16.gmra.mxu3 %v2549_v37  ;;  %v1174_v49 = vpack.c.bf16 %v1092_v61, %v1091_v46  ;;  %v1093_v26 = vmax.f32 %v928_v63, 0.0 }
 0x606   :  { %v1623_v21 = vpop.f32.mrf.mxu1  ;;  %v1095_v61 = vmax.f32 %v933_v47, 0.0 }
 0x607   :  { %v2368_v32 = vmax.f32 %v2035_v39, 0.0  ;;  %v1624_v30 = vadd.f32 %v1623_v21, %v5708_v22 }
 0x608   :  { %v3004_v18 = vpop.f32.mrf.mxu3  ;;  %v3418_v33 = vpop.f32.mrf.mxu0 }
 0x609   :  { %v3414_v19 = vadd.f32 %v3413_v16, %v3004_v18  ;;  %1662 = vmatmul.bf16.gmra.mxu1 %v1172_v50  ;;  %2076 = vmatmul.bf16.gmra.mxu2 %v1173_v45  ;;  %v2552_v14 = vpack.c.bf16 %v2368_v32, %v2366_v13  ;;  %v2365_v36 = vmax.f32 %v1624_v30, 0.0 }
 0x60b   :  { %v4509_v44 = vpop.eup %4508  ;;  %v3643_v43 = vadd.f32 %v6612_v2, %v3414_v19  ;;  %3457 = vmatmul.bf16.gmra.mxu0 %v2552_v14 }
 0x60c   :  { %3963 = vst.msk [vmem:[%s7104_s7 + $0x398] sm:$0xff] %vm3847_vm1, %v4509_v44  ;;  %v2037_v1 = vpop.f32.mrf.mxu2 }
 0x60d   :  { %4510 = vtanh.f32 %v3643_v43  ;;  %v2038_v51 = vadd.f32 %v2037_v1, %v5697_v62 }
 0x60e   :  { %v1625_v25 = vpop.f32.mrf.mxu1 }
 0x60f   :  { %v1626_v7 = vadd.f32 %v1625_v25, %v5708_v22  ;;  %v2370_v60 = vmax.f32 %v2038_v51, 0.0 }
 0x610   :  { %v3006_v24 = vpop.f32.mrf.mxu3  ;;  %v3420_v57 = vpop.f32.mrf.mxu0 }
 0x611   :  { %v2367_v41 = vmax.f32 %v1626_v7, 0.0  ;;  %v3416_v54 = vadd.f32 %v3415_v20, %v3006_v24  ;;  %v7189_v20 = vld [vmem:[#allocation36_spill] sm:$0xff]  ;;  %v935_v24 = vadd.f32 %v6647_v31, %v5830_v29 }
 0x612   :  { %v930_v27 = vadd.f32 %v6647_v31, %v7189_v20 }
 0x613   :  { %v4511_v52 = vpop.eup %4510  ;;  %v3644_v28 = vadd.f32 %v6612_v2, %v3416_v54  ;;  %v2551_v15 = vpack.c.bf16 %v2367_v41, %v2365_v36 }
 0x614   :  { %3964 = vst.msk [vmem:[%s7104_s7 + $0x3a0] sm:$0xff] %vm3847_vm1, %v4511_v52  ;;  %v2039_v5 = vpop.f32.mrf.mxu2  ;;  %v1094_v59 = vmax.f32 %v930_v27, 0.0 }
 0x615   :  { %4512 = vtanh.f32 %v3644_v28  ;;  %v2040_v42 = vadd.f32 %v2039_v5, %v5697_v62  ;;  %3048 = vmatmul.bf16.gmra.mxu3 %v2551_v15  ;;  %v1096_v28 = vmax.f32 %v935_v24, 0.0 }
 0x616   :  { %v1628_v50 = vpop.f32.mrf.mxu1  ;;  %v1175_v14 = vpack.c.bf16 %v1094_v59, %v1093_v26 }
 0x617   :  { %v2372_v16 = vmax.f32 %v2040_v42, 0.0  ;;  %v1629_v4 = vadd.f32 %v1628_v50, %v5708_v22 }
 0x618   :  { %v3009_v53 = vpop.f32.mrf.mxu3  ;;  %v3423_v55 = vpop.f32.mrf.mxu0 }
 0x619   :  { %v2554_v11 = vpack.c.bf16 %v2372_v16, %v2370_v60  ;;  %v3419_v38 = vadd.f32 %v3418_v33, %v3009_v53  ;;  %1667 = vmatmul.bf16.gmra.mxu1 %v1173_v45  ;;  %2081 = vmatmul.bf16.gmra.mxu2 %v1174_v49  ;;  %v2369_v34 = vmax.f32 %v1629_v4, 0.0  ;;  %v1176_v16 = vpack.c.bf16 %v1096_v28, %v1095_v61 }
 0x61b   :  { %v4513_v40 = vpop.eup %4512  ;;  %v3645_v3 = vadd.f32 %v6612_v2, %v3419_v38  ;;  %3462 = vmatmul.bf16.gmra.mxu0 %v2554_v11 }
 0x61c   :  { %3965 = vst.msk [vmem:[%s7104_s7 + $0x3a8] sm:$0xff] %vm3847_vm1, %v4513_v40  ;;  %v2042_v48 = vpop.f32.mrf.mxu2 }
 0x61d   :  { %4514 = vtanh.f32 %v3645_v3  ;;  %v2043_v39 = vadd.f32 %v2042_v48, %v5697_v62 }
 0x61e   :  { %v1630_v12 = vpop.f32.mrf.mxu1 }
 0x61f   :  { %v1631_v58 = vadd.f32 %v1630_v12, %v5708_v22  ;;  %v2374_v33 = vmax.f32 %v2043_v39, 0.0 }
 0x620   :  { %v3011_v0 = vpop.f32.mrf.mxu3  ;;  %v3425_v6 = vpop.f32.mrf.mxu0 }
 0x621   :  { %v2371_v9 = vmax.f32 %v1631_v58, 0.0  ;;  %v3421_v8 = vadd.f32 %v3420_v57, %v3011_v0 }
 0x623   :  { %v4515_v37 = vpop.eup %4514  ;;  %v2553_v21 = vpack.c.bf16 %v2371_v9, %v2369_v34  ;;  %v3646_v13 = vadd.f32 %v6612_v2, %v3421_v8 }
 0x624   :  { %3966 = vst.msk [vmem:[%s7104_s7 + $0x3b0] sm:$0xff] %vm3847_vm1, %v4515_v37  ;;  %v2044_v32 = vpop.f32.mrf.mxu2 }
 0x625   :  { %4516 = vtanh.f32 %v3646_v13  ;;  %v2045_v45 = vadd.f32 %v2044_v32, %v5697_v62  ;;  %3053 = vmatmul.bf16.gmra.mxu3 %v2553_v21 }
 0x626   :  { %v1633_v18 = vpop.f32.mrf.mxu1 }
 0x627   :  { %v2376_v19 = vmax.f32 %v2045_v45, 0.0  ;;  %v1634_v56 = vadd.f32 %v1633_v18, %v5708_v22 }
 0x628   :  { %v3014_v44 = vpop.f32.mrf.mxu3  ;;  %v3428_v43 = vpop.f32.mrf.mxu0 }
 0x629   :  { %v2556_v1 = vpack.c.bf16 %v2376_v19, %v2374_v33  ;;  %v3424_v30 = vadd.f32 %v3423_v55, %v3014_v44  ;;  %1672 = vmatmul.bf16.gmra.mxu1 %v1174_v49  ;;  %2086 = vmatmul.bf16.gmra.mxu2 %v1175_v14  ;;  %v2373_v54 = vmax.f32 %v1634_v56, 0.0 }
 0x62b   :  { %v4517_v17 = vpop.eup %4516  ;;  %v3647_v35 = vadd.f32 %v6612_v2, %v3424_v30  ;;  %3467 = vmatmul.bf16.gmra.mxu0 %v2556_v1 }
 0x62c   :  { %3967 = vst.msk [vmem:[%s7104_s7 + $0x3b8] sm:$0xff] %vm3847_vm1, %v4517_v17  ;;  %v2047_v25 = vpop.f32.mrf.mxu2 }
 0x62d   :  { %4518 = vtanh.f32 %v3647_v35  ;;  %v2048_v15 = vadd.f32 %v2047_v25, %v5697_v62 }
 0x62e   :  { %v1635_v7 = vpop.f32.mrf.mxu1 }
 0x62f   :  { %v1636_v57 = vadd.f32 %v1635_v7, %v5708_v22  ;;  %v2378_v50 = vmax.f32 %v2048_v15, 0.0 }
 0x630   :  { %v3016_v36 = vpop.f32.mrf.mxu3  ;;  %v3430_v41 = vpop.f32.mrf.mxu0 }
 0x631   :  { %v2375_v46 = vmax.f32 %v1636_v57, 0.0  ;;  %v3426_v52 = vadd.f32 %v3425_v6, %v3016_v36 }
 0x633   :  { %v4519_v51 = vpop.eup %4518  ;;  %v2555_v5 = vpack.c.bf16 %v2375_v46, %v2373_v54  ;;  %v3648_v42 = vadd.f32 %v6612_v2, %v3426_v52 }
 0x634   :  { %3968 = vst.msk [vmem:[%s7104_s7 + $0x3c0] sm:$0xff] %vm3847_vm1, %v4519_v51  ;;  %v2049_v10 = vpop.f32.mrf.mxu2 }
 0x635   :  { %4520 = vtanh.f32 %v3648_v42  ;;  %v2050_v29 = vadd.f32 %v2049_v10, %v5697_v62  ;;  %3058 = vmatmul.bf16.gmra.mxu3 %v2555_v5 }
 0x636   :  { %v1638_v31 = vpop.f32.mrf.mxu1 }
 0x637   :  { %v2380_v60 = vmax.f32 %v2050_v29, 0.0  ;;  %v1639_v48 = vadd.f32 %v1638_v31, %v5708_v22 }
 0x638   :  { %v3019_v49 = vpop.f32.mrf.mxu3  ;;  %v3433_v53 = vpop.f32.mrf.mxu0 }
 0x639   :  { %v2558_v55 = vpack.c.bf16 %v2380_v60, %v2378_v50  ;;  %v3429_v11 = vadd.f32 %v3428_v43, %v3019_v49  ;;  %1677 = vmatmul.bf16.gmra.mxu1 %v1175_v14  ;;  %2091 = vmatmul.bf16.gmra.mxu2 %v1176_v16  ;;  %v2377_v20 = vmax.f32 %v1639_v48, 0.0 }
 0x63b   :  { %v4521_v38 = vpop.eup %4520  ;;  %v3649_v40 = vadd.f32 %v6612_v2, %v3429_v11  ;;  %3472 = vmatmul.bf16.gmra.mxu0 %v2558_v55 }
 0x63c   :  { %3969 = vst.msk [vmem:[%s7104_s7 + $0x3c8] sm:$0xff] %vm3847_vm1, %v4521_v38  ;;  %v2052_v3 = vpop.f32.mrf.mxu2 }
 0x63d   :  { %4522 = vtanh.f32 %v3649_v40  ;;  %v2053_v6 = vadd.f32 %v2052_v3, %v5697_v62 }
 0x63e   :  { %v1640_v4 = vpop.f32.mrf.mxu1 }
 0x63f   :  { %v1641_v23 = vadd.f32 %v1640_v4, %v5708_v22  ;;  %v2382_v59 = vmax.f32 %v2053_v6, 0.0 }
 0x640   :  { %v3021_v63 = vpop.f32.mrf.mxu3  ;;  %v3435_v12 = vpop.f32.mrf.mxu0 }
 0x641   :  { %v2379_v27 = vmax.f32 %v1641_v23, 0.0  ;;  %v3431_v58 = vadd.f32 %v3430_v41, %v3021_v63 }
 0x643   :  { %v4523_v0 = vpop.eup %4522  ;;  %v2557_v34 = vpack.c.bf16 %v2379_v27, %v2377_v20  ;;  %v3650_v9 = vadd.f32 %v6612_v2, %v3431_v58  ;;  %v6877_v2 = vld [vmem:[%s7103_s6] ss:$0 sm:$0xff] }
 0x644   :  { %3970 = vst.msk [vmem:[%s7104_s7 + $0x3d0] sm:$0xff] %vm3847_vm1, %v4523_v0  ;;  %v2054_v8 = vpop.f32.mrf.mxu2 }
 0x645   :  { %4524 = vtanh.f32 %v3650_v9  ;;  %v2055_v26 = vadd.f32 %v2054_v8, %v5697_v62  ;;  %3063 = vmatmul.bf16.gmra.mxu3 %v2557_v34 }
 0x646   :  { %v1643_v37 = vpop.f32.mrf.mxu1 }
 0x647   :  { %v2384_v39 = vmax.f32 %v2055_v26, 0.0  ;;  %v1644_v14 = vadd.f32 %v1643_v37, %v5708_v22 }
 0x648   :  { %v3024_v21 = vpop.f32.mrf.mxu3  ;;  %v3438_v13 = vpop.f32.mrf.mxu0 }
 0x649   :  { %v2560_v32 = vpack.c.bf16 %v2384_v39, %v2382_v59  ;;  %v3434_v45 = vadd.f32 %v3433_v53, %v3024_v21  ;;  %1682 = vmatmul.bf16.gmra.mxu1 %v1176_v16  ;;  %v2381_v17 = vmax.f32 %v1644_v14, 0.0 }
 0x64b   :  { %v4525_v18 = vpop.eup %4524  ;;  %v3651_v33 = vadd.f32 %v6877_v2, %v3434_v45  ;;  %3477 = vmatmul.bf16.gmra.mxu0 %v2560_v32 }
 0x64c   :  { %3971 = vst.msk [vmem:[%s7104_s7 + $0x3d8] sm:$0xff] %vm3847_vm1, %v4525_v18  ;;  %v2057_v19 = vpop.f32.mrf.mxu2 }
 0x64d   :  { %4526 = vtanh.f32 %v3651_v33  ;;  %v2058_v47 = vadd.f32 %v2057_v19, %v5697_v62 }
 0x64e   :  { %v1645_v44 = vpop.f32.mrf.mxu1 }
 0x64f   :  { %v1646_v43 = vadd.f32 %v1645_v44, %v5708_v22  ;;  %v2386_v54 = vmax.f32 %v2058_v47, 0.0 }
 0x650   :  { %v3026_v1 = vpop.f32.mrf.mxu3  ;;  %v3440_v30 = vpop.f32.mrf.mxu0 }
 0x651   :  { %v2383_v35 = vmax.f32 %v1646_v43, 0.0  ;;  %v3436_v25 = vadd.f32 %v3435_v12, %v3026_v1 }
 0x653   :  { %v4527_v56 = vpop.eup %4526  ;;  %v2559_v7 = vpack.c.bf16 %v2383_v35, %v2381_v17  ;;  %v3652_v24 = vadd.f32 %v6877_v2, %v3436_v25 }
 0x654   :  { %3972 = vst.msk [vmem:[%s7104_s7 + $0x3e0] sm:$0xff] %vm3847_vm1, %v4527_v56  ;;  %v2059_v57 = vpop.f32.mrf.mxu2 }
 0x655   :  { %4528 = vtanh.f32 %v3652_v24  ;;  %v2060_v36 = vadd.f32 %v2059_v57, %v5697_v62  ;;  %3068 = vmatmul.bf16.gmra.mxu3 %v2559_v7 }
 0x656   :  { %v1648_v41 = vpop.f32.mrf.mxu1 }
 0x657   :  { %v2388_v46 = vmax.f32 %v2060_v36, 0.0  ;;  %v1649_v10 = vadd.f32 %v1648_v41, %v5708_v22 }
 0x658   :  { %v3029_v52 = vpop.f32.mrf.mxu3  ;;  %v3443_v61 = vpop.f32.mrf.mxu0 }
 0x659   :  { %v2562_v51 = vpack.c.bf16 %v2388_v46, %v2386_v54  ;;  %v3439_v28 = vadd.f32 %v3438_v13, %v3029_v52  ;;  %v2385_v16 = vmax.f32 %v1649_v10, 0.0 }
 0x65b   :  { %v4529_v15 = vpop.eup %4528  ;;  %v3653_v5 = vadd.f32 %v6877_v2, %v3439_v28  ;;  %3482 = vmatmul.bf16.gmra.mxu0 %v2562_v51 }
 0x65c   :  { %3973 = vst.msk [vmem:[%s7104_s7 + $0x3e8] sm:$0xff] %vm3847_vm1, %v4529_v15  ;;  %v2062_v42 = vpop.f32.mrf.mxu2 }
 0x65d   :  { %4530 = vtanh.f32 %v3653_v5  ;;  %v2063_v11 = vadd.f32 %v2062_v42, %v5697_v62 }
 0x65e   :  { %v1650_v29 = vpop.f32.mrf.mxu1 }
 0x65f   :  { %v1651_v31 = vadd.f32 %v1650_v29, %v5708_v22  ;;  %v2390_v23 = vmax.f32 %v2063_v11, 0.0 }
 0x660   :  { %v3031_v50 = vpop.f32.mrf.mxu3  ;;  %v3445_v60 = vpop.f32.mrf.mxu0 }
 0x661   :  { %v2387_v49 = vmax.f32 %v1651_v31, 0.0  ;;  %v3441_v53 = vadd.f32 %v3440_v30, %v3031_v50 }
 0x663   :  { %v4531_v55 = vpop.eup %4530  ;;  %v2561_v38 = vpack.c.bf16 %v2387_v49, %v2385_v16  ;;  %v3654_v40 = vadd.f32 %v6877_v2, %v3441_v53 }
 0x664   :  { %3974 = vst.msk [vmem:[%s7104_s7 + $0x3f0] sm:$0xff] %vm3847_vm1, %v4531_v55  ;;  %v2064_v3 = vpop.f32.mrf.mxu2 }
 0x665   :  { %4532 = vtanh.f32 %v3654_v40  ;;  %v2065_v48 = vadd.f32 %v2064_v3, %v5697_v62  ;;  %3073 = vmatmul.bf16.gmra.mxu3 %v2561_v38 }
 0x666   :  { %v1653_v4 = vpop.f32.mrf.mxu1 }
 0x667   :  { %v2392_v63 = vmax.f32 %v2065_v48, 0.0  ;;  %v1654_v9 = vadd.f32 %v1653_v4, %v5708_v22 }
 0x668   :  { %v3034_v12 = vpop.f32.mrf.mxu3  ;;  %v3448_v20 = vpop.f32.mrf.mxu0 }
 0x669   :  { %v2564_v27 = vpack.c.bf16 %v2392_v63, %v2390_v23  ;;  %v3444_v58 = vadd.f32 %v3443_v61, %v3034_v12  ;;  %v2389_v39 = vmax.f32 %v1654_v9, 0.0 }
 0x66b   :  { %v4533_v0 = vpop.eup %4532  ;;  %v3655_v6 = vadd.f32 %v6877_v2, %v3444_v58  ;;  %3487 = vmatmul.bf16.gmra.mxu0 %v2564_v27 }
 0x66c   :  { %3975 = vst.msk [vmem:[%s7104_s7 + $0x3f8] sm:$0xff] %vm3847_vm1, %v4533_v0  ;;  %v2067_v34 = vpop.f32.mrf.mxu2 }
 0x66d   :  { %4534 = vtanh.f32 %v3655_v6  ;;  %v2068_v45 = vadd.f32 %v2067_v34, %v5697_v62 }
 0x66e   :  { %v1655_v8 = vpop.f32.mrf.mxu1 }
 0x66f   :  { %v1656_v26 = vadd.f32 %v1655_v8, %v5708_v22  ;;  %v2394_v43 = vmax.f32 %v2068_v45, 0.0 }
 0x670   :  { %v3036_v37 = vpop.f32.mrf.mxu3  ;;  %v3450_v59 = vpop.f32.mrf.mxu0 }
 0x671   :  { %v2391_v21 = vmax.f32 %v1656_v26, 0.0  ;;  %v3446_v13 = vadd.f32 %v3445_v60, %v3036_v37 }
 0x673   :  { %v4535_v32 = vpop.eup %4534  ;;  %v2563_v18 = vpack.c.bf16 %v2391_v21, %v2389_v39  ;;  %v3656_v33 = vadd.f32 %v6877_v2, %v3446_v13 }
 0x674   :  { %3976 = vst.msk [vmem:[%s7104_s7 + $0x400] sm:$0xff] %vm3847_vm1, %v4535_v32  ;;  %v2069_v19 = vpop.f32.mrf.mxu2 }
 0x675   :  { %4536 = vtanh.f32 %v3656_v33  ;;  %v2070_v14 = vadd.f32 %v2069_v19, %v5697_v62  ;;  %3078 = vmatmul.bf16.gmra.mxu3 %v2563_v18 }
 0x676   :  { %v1658_v44 = vpop.f32.mrf.mxu1 }
 0x677   :  { %v2396_v1 = vmax.f32 %v2070_v14, 0.0  ;;  %v1659_v24 = vadd.f32 %v1658_v44, %v5708_v22 }
 0x678   :  { %v3039_v30 = vpop.f32.mrf.mxu3  ;;  %v3453_v17 = vpop.f32.mrf.mxu0 }
 0x679   :  { %v2566_v35 = vpack.c.bf16 %v2396_v1, %v2394_v43  ;;  %v3449_v25 = vadd.f32 %v3448_v20, %v3039_v30  ;;  %v2393_v46 = vmax.f32 %v1659_v24, 0.0 }
 0x67b   :  { %v4537_v56 = vpop.eup %4536  ;;  %v3657_v47 = vadd.f32 %v6877_v2, %v3449_v25  ;;  %3492 = vmatmul.bf16.gmra.mxu0 %v2566_v35 }
 0x67c   :  { %3977 = vst.msk [vmem:[%s7104_s7 + $0x408] sm:$0xff] %vm3847_vm1, %v4537_v56  ;;  %v2072_v7 = vpop.f32.mrf.mxu2 }
 0x67d   :  { %4538 = vtanh.f32 %v3657_v47  ;;  %v2073_v28 = vadd.f32 %v2072_v7, %v5697_v62 }
 0x67e   :  { %v1660_v57 = vpop.f32.mrf.mxu1 }
 0x67f   :  { %v1661_v36 = vadd.f32 %v1660_v57, %v5708_v22  ;;  %v2398_v31 = vmax.f32 %v2073_v28, 0.0 }
 0x680   :  { %v3041_v41 = vpop.f32.mrf.mxu3  ;;  %v3455_v54 = vpop.f32.mrf.mxu0 }
 0x681   :  { %v2395_v52 = vmax.f32 %v1661_v36, 0.0  ;;  %v3451_v61 = vadd.f32 %v3450_v59, %v3041_v41 }
 0x683   :  { %v4539_v51 = vpop.eup %4538  ;;  %v2565_v15 = vpack.c.bf16 %v2395_v52, %v2393_v46  ;;  %v3658_v5 = vadd.f32 %v6877_v2, %v3451_v61 }
 0x684   :  { %3978 = vst.msk [vmem:[%s7104_s7 + $0x410] sm:$0xff] %vm3847_vm1, %v4539_v51  ;;  %v2074_v42 = vpop.f32.mrf.mxu2 }
 0x685   :  { %4540 = vtanh.f32 %v3658_v5  ;;  %v2075_v10 = vadd.f32 %v2074_v42, %v5697_v62  ;;  %3083 = vmatmul.bf16.gmra.mxu3 %v2565_v15 }
 0x686   :  { %v1663_v29 = vpop.f32.mrf.mxu1 }
 0x687   :  { %v2400_v50 = vmax.f32 %v2075_v10, 0.0  ;;  %v1664_v40 = vadd.f32 %v1663_v29, %v5708_v22 }
 0x688   :  { %v3044_v60 = vpop.f32.mrf.mxu3  ;;  %v3458_v16 = vpop.f32.mrf.mxu0 }
 0x689   :  { %v2568_v49 = vpack.c.bf16 %v2400_v50, %v2398_v31  ;;  %v3454_v53 = vadd.f32 %v3453_v17, %v3044_v60  ;;  %v2397_v63 = vmax.f32 %v1664_v40, 0.0 }
 0x68b   :  { %v4541_v55 = vpop.eup %4540  ;;  %v3659_v11 = vadd.f32 %v6877_v2, %v3454_v53  ;;  %3497 = vmatmul.bf16.gmra.mxu0 %v2568_v49 }
 0x68c   :  { %3979 = vst.msk [vmem:[%s7104_s7 + $0x418] sm:$0xff] %vm3847_vm1, %v4541_v55  ;;  %v2077_v38 = vpop.f32.mrf.mxu2 }
 0x68d   :  { %4542 = vtanh.f32 %v3659_v11  ;;  %v2078_v58 = vadd.f32 %v2077_v38, %v5697_v62 }
 0x68e   :  { %v1665_v3 = vpop.f32.mrf.mxu1 }
 0x68f   :  { %v1666_v48 = vadd.f32 %v1665_v3, %v5708_v22  ;;  %v2402_v26 = vmax.f32 %v2078_v58, 0.0 }
 0x690   :  { %v3046_v4 = vpop.f32.mrf.mxu3  ;;  %v3460_v23 = vpop.f32.mrf.mxu0 }
 0x691   :  { %v2399_v12 = vmax.f32 %v1666_v48, 0.0  ;;  %v3456_v20 = vadd.f32 %v3455_v54, %v3046_v4 }
 0x693   :  { %v4543_v27 = vpop.eup %4542  ;;  %v2567_v0 = vpack.c.bf16 %v2399_v12, %v2397_v63  ;;  %v3660_v6 = vadd.f32 %v6877_v2, %v3456_v20 }
 0x694   :  { %3980 = vst.msk [vmem:[%s7104_s7 + $0x420] sm:$0xff] %vm3847_vm1, %v4543_v27  ;;  %v2079_v34 = vpop.f32.mrf.mxu2 }
 0x695   :  { %4544 = vtanh.f32 %v3660_v6  ;;  %v2080_v9 = vadd.f32 %v2079_v34, %v5697_v62  ;;  %3088 = vmatmul.bf16.gmra.mxu3 %v2567_v0 }
 0x696   :  { %v1668_v8 = vpop.f32.mrf.mxu1 }
 0x697   :  { %v2404_v37 = vmax.f32 %v2080_v9, 0.0  ;;  %v1669_v33 = vadd.f32 %v1668_v8, %v5708_v22 }
 0x698   :  { %v3049_v59 = vpop.f32.mrf.mxu3  ;;  %v3463_v39 = vpop.f32.mrf.mxu0 }
 0x699   :  { %v2570_v21 = vpack.c.bf16 %v2404_v37, %v2402_v26  ;;  %v3459_v13 = vadd.f32 %v3458_v16, %v3049_v59  ;;  %v2401_v1 = vmax.f32 %v1669_v33, 0.0 }
 0x69b   :  { %v4545_v32 = vpop.eup %4544  ;;  %v3661_v45 = vadd.f32 %v6877_v2, %v3459_v13  ;;  %3502 = vmatmul.bf16.gmra.mxu0 %v2570_v21 }
 0x69c   :  { %3981 = vst.msk [vmem:[%s7104_s7 + $0x428] sm:$0xff] %vm3847_vm1, %v4545_v32  ;;  %v2082_v18 = vpop.f32.mrf.mxu2 }
 0x69d   :  { %4546 = vtanh.f32 %v3661_v45  ;;  %v2083_v25 = vadd.f32 %v2082_v18, %v5697_v62 }
 0x69e   :  { %v1670_v19 = vpop.f32.mrf.mxu1 }
 0x69f   :  { %v1671_v14 = vadd.f32 %v1670_v19, %v5708_v22  ;;  %v2406_v36 = vmax.f32 %v2083_v25, 0.0 }
 0x6a0   :  { %v3051_v44 = vpop.f32.mrf.mxu3  ;;  %v3465_v43 = vpop.f32.mrf.mxu0 }
 0x6a1   :  { %v2403_v30 = vmax.f32 %v1671_v14, 0.0  ;;  %v3461_v17 = vadd.f32 %v3460_v23, %v3051_v44 }
 0x6a3   :  { %v4547_v35 = vpop.eup %4546  ;;  %v2569_v56 = vpack.c.bf16 %v2403_v30, %v2401_v1  ;;  %v3662_v47 = vadd.f32 %v6877_v2, %v3461_v17 }
 0x6a4   :  { %3982 = vst.msk [vmem:[%s7104_s7 + $0x430] sm:$0xff] %vm3847_vm1, %v4547_v35  ;;  %v2084_v7 = vpop.f32.mrf.mxu2 }
 0x6a5   :  { %4548 = vtanh.f32 %v3662_v47  ;;  %v2085_v24 = vadd.f32 %v2084_v7, %v5697_v62  ;;  %3093 = vmatmul.bf16.gmra.mxu3 %v2569_v56 }
 0x6a6   :  { %v1673_v57 = vpop.f32.mrf.mxu1 }
 0x6a7   :  { %v2408_v41 = vmax.f32 %v2085_v24, 0.0  ;;  %v1674_v5 = vadd.f32 %v1673_v57, %v5708_v22 }
 0x6a8   :  { %v3054_v54 = vpop.f32.mrf.mxu3  ;;  %v3468_v46 = vpop.f32.mrf.mxu0 }
 0x6a9   :  { %v2572_v52 = vpack.c.bf16 %v2408_v41, %v2406_v36  ;;  %v3464_v61 = vadd.f32 %v3463_v39, %v3054_v54  ;;  %v2405_v50 = vmax.f32 %v1674_v5, 0.0 }
 0x6ab   :  { %v4549_v51 = vpop.eup %4548  ;;  %v3663_v28 = vadd.f32 %v6877_v2, %v3464_v61  ;;  %3507 = vmatmul.bf16.gmra.mxu0 %v2572_v52 }
 0x6ac   :  { %3983 = vst.msk [vmem:[%s7104_s7 + $0x438] sm:$0xff] %vm3847_vm1, %v4549_v51  ;;  %v2087_v15 = vpop.f32.mrf.mxu2 }
 0x6ad   :  { %4550 = vtanh.f32 %v3663_v28  ;;  %v2088_v53 = vadd.f32 %v2087_v15, %v5697_v62 }
 0x6ae   :  { %v1675_v42 = vpop.f32.mrf.mxu1 }
 0x6af   :  { %v1676_v10 = vadd.f32 %v1675_v42, %v5708_v22  ;;  %v2410_v48 = vmax.f32 %v2088_v53, 0.0 }
 0x6b0   :  { %v3056_v29 = vpop.f32.mrf.mxu3  ;;  %v3470_v31 = vpop.f32.mrf.mxu0 }
 0x6b1   :  { %v2407_v60 = vmax.f32 %v1676_v10, 0.0  ;;  %v3466_v16 = vadd.f32 %v3465_v43, %v3056_v29 }
 0x6b3   :  { %v4551_v49 = vpop.eup %4550  ;;  %v2571_v55 = vpack.c.bf16 %v2407_v60, %v2405_v50  ;;  %v3664_v11 = vadd.f32 %v6877_v2, %v3466_v16 }
 0x6b4   :  { %3984 = vst.msk [vmem:[%s7104_s7 + $0x440] sm:$0xff] %vm3847_vm1, %v4551_v49  ;;  %v2089_v38 = vpop.f32.mrf.mxu2 }
 0x6b5   :  { %4552 = vtanh.f32 %v3664_v11  ;;  %v2090_v40 = vadd.f32 %v2089_v38, %v5697_v62  ;;  %3098 = vmatmul.bf16.gmra.mxu3 %v2571_v55 }
 0x6b6   :  { %v1678_v3 = vpop.f32.mrf.mxu1 }
 0x6b7   :  { %v2412_v4 = vmax.f32 %v2090_v40, 0.0  ;;  %v1679_v0 = vadd.f32 %v1678_v3, %v5708_v22 }
 0x6b8   :  { %v3059_v23 = vpop.f32.mrf.mxu3  ;;  %v3473_v63 = vpop.f32.mrf.mxu0 }
 0x6b9   :  { %v2574_v12 = vpack.c.bf16 %v2412_v4, %v2410_v48  ;;  %v3469_v20 = vadd.f32 %v3468_v46, %v3059_v23  ;;  %v2409_v26 = vmax.f32 %v1679_v0, 0.0 }
 0x6bb   :  { %v4553_v27 = vpop.eup %4552  ;;  %v3665_v58 = vadd.f32 %v6877_v2, %v3469_v20  ;;  %3512 = vmatmul.bf16.gmra.mxu0 %v2574_v12 }
 0x6bc   :  { %3985 = vst.msk [vmem:[%s7104_s7 + $0x448] sm:$0xff] %vm3847_vm1, %v4553_v27  ;;  %v2092_v44 = vpop.f32.mrf.mxu2 }
 0x6bd   :  { %4554 = vtanh.f32 %v3665_v58  ;;  %v2093_v51 = vadd.f32 %v2092_v44, %v5697_v62 }
 0x6be   :  { %v1680_v6 = vpop.f32.mrf.mxu1 }
 0x6bf   :  { %v1681_v34 = vadd.f32 %v1680_v6, %v5708_v22  ;;  %v2414_v42 = vmax.f32 %v2093_v51, 0.0 }
 0x6c0   :  { %v3061_v9 = vpop.f32.mrf.mxu3  ;;  %v3475_v8 = vpop.f32.mrf.mxu0 }
 0x6c1   :  { %v2411_v37 = vmax.f32 %v1681_v34, 0.0  ;;  %v3471_v59 = vadd.f32 %v3470_v31, %v3061_v9 }
 0x6c3   :  { %v4555_v39 = vpop.eup %4554  ;;  %v2573_v21 = vpack.c.bf16 %v2411_v37, %v2409_v26  ;;  %v3666_v13 = vadd.f32 %v6877_v2, %v3471_v59 }
 0x6c4   :  { %3986 = vst.msk [vmem:[%s7104_s7 + $0x450] sm:$0xff] %vm3847_vm1, %v4555_v39  ;;  %v2094_v36 = vpop.f32.mrf.mxu2 }
 0x6c5   :  { %4556 = vtanh.f32 %v3666_v13  ;;  %3103 = vmatmul.bf16.gmra.mxu3 %v2573_v21  ;;  %v2095_v52 = vadd.f32 %v2094_v36, %v5697_v62 }
 0x6c6   :  { %v1683_v32 = vpop.f32.mrf.mxu1 }
 0x6c7   :  { %v1684_v43 = vadd.f32 %v1683_v32, %v5708_v22  ;;  %v2416_v28 = vmax.f32 %v2095_v52, 0.0 }
 0x6c8   :  { %v3064_v45 = vpop.f32.mrf.mxu3  ;;  %v3478_v18 = vpop.f32.mrf.mxu0 }
 0x6c9   :  { %v3474_v33 = vadd.f32 %v3473_v63, %v3064_v45  ;;  %v2413_v25 = vmax.f32 %v1684_v43, 0.0  ;;  %v2576_v31 = vpack.c.bf16 %v2416_v28, %v2414_v42 }
 0x6cb   :  { %v4557_v19 = vpop.eup %4556  ;;  %v3667_v14 = vadd.f32 %v6877_v2, %v3474_v33 }
 0x6cc   :  { %3987 = vst.msk [vmem:[%s7104_s7 + $0x458] sm:$0xff] %vm3847_vm1, %v4557_v19 }
 0x6cd   :  { %4558 = vtanh.f32 %v3667_v14 }
 0x6ce   :  { %v1685_v1 = vpop.f32.mrf.mxu1 }
 0x6cf   :  { %v1686_v30 = vadd.f32 %v1685_v1, %v5708_v22 }
 0x6d0   :  { %v3066_v17 = vpop.f32.mrf.mxu3  ;;  %v3480_v35 = vpop.f32.mrf.mxu0 }
 0x6d1   :  { %v2415_v56 = vmax.f32 %v1686_v30, 0.0  ;;  %v3476_v47 = vadd.f32 %v3475_v8, %v3066_v17 }
 0x6d3   :  { %v4559_v7 = vpop.eup %4558  ;;  %v2575_v24 = vpack.c.bf16 %v2415_v56, %v2413_v25  ;;  %v3668_v57 = vadd.f32 %v6877_v2, %v3476_v47 }
 0x6d4   :  { %3988 = vst.msk [vmem:[%s7104_s7 + $0x460] sm:$0xff] %vm3847_vm1, %v4559_v7 }
 0x6d5   :  { %4560 = vtanh.f32 %v3668_v57  ;;  %3108 = vmatmul.bf16.gmra.mxu3 %v2575_v24 }
 0x6d8   :  { %v3069_v41 = vpop.f32.mrf.mxu3  ;;  %v3483_v54 = vpop.f32.mrf.mxu0 }
 0x6d9   :  { %v3479_v22 = vadd.f32 %v3478_v18, %v3069_v41 }
 0x6db   :  { %v4561_v46 = vpop.eup %4560  ;;  %v3669_v61 = vadd.f32 %v6877_v2, %v3479_v22 }
 0x6dc   :  { %3989 = vst.msk [vmem:[%s7104_s7 + $0x468] sm:$0xff] %vm3847_vm1, %v4561_v46 }
 0x6dd   :  { %4562 = vtanh.f32 %v3669_v61 }
 0x6e0   :  { %v3071_v15 = vpop.f32.mrf.mxu3  ;;  %v3485_v5 = vpop.f32.mrf.mxu0 }
 0x6e1   :  { %v3481_v10 = vadd.f32 %v3480_v35, %v3071_v15 }
 0x6e3   :  { %v4563_v29 = vpop.eup %4562  ;;  %v3670_v50 = vadd.f32 %v6877_v2, %v3481_v10 }
 0x6e4   :  { %3990 = vst.msk [vmem:[%s7104_s7 + $0x470] sm:$0xff] %vm3847_vm1, %v4563_v29 }
 0x6e5   :  { %4564 = vtanh.f32 %v3670_v50  ;;  %3517 = vmatmul.bf16.vlgmr.msra.gmra.mxu3 %v2576_v31 }
 0x6e8   :  { %v3074_v60 = vpop.f32.mrf.mxu3  ;;  %v3488_v16 = vpop.f32.mrf.mxu0 }
 0x6e9   :  { %v3484_v62 = vadd.f32 %v3483_v54, %v3074_v60 }
 0x6eb   :  { %v4565_v49 = vpop.eup %4564  ;;  %v3671_v53 = vadd.f32 %v6877_v2, %v3484_v62 }
 0x6ec   :  { %3991 = vst.msk [vmem:[%s7104_s7 + $0x478] sm:$0xff] %vm3847_vm1, %v4565_v49 }
 0x6ed   :  { %4566 = vtanh.f32 %v3671_v53 }
 0x6f0   :  { %v3076_v55 = vpop.f32.mrf.mxu3  ;;  %v3490_v11 = vpop.f32.mrf.mxu0 }
 0x6f1   :  { %v3486_v38 = vadd.f32 %v3485_v5, %v3076_v55 }
 0x6f3   :  { %v4567_v40 = vpop.eup %4566  ;;  %v3672_v3 = vadd.f32 %v6877_v2, %v3486_v38 }
 0x6f4   :  { %3992 = vst.msk [vmem:[%s7104_s7 + $0x480] sm:$0xff] %vm3847_vm1, %v4567_v40 }
 0x6f5   :  { %4568 = vtanh.f32 %v3672_v3 }
 0x6f8   :  { %v3079_v48 = vpop.f32.mrf.mxu3  ;;  %v3493_v4 = vpop.f32.mrf.mxu0 }
 0x6f9   :  { %v3489_v23 = vadd.f32 %v3488_v16, %v3079_v48 }
 0x6fb   :  { %v4569_v63 = vpop.eup %4568  ;;  %v3673_v12 = vadd.f32 %v6877_v2, %v3489_v23 }
 0x6fc   :  { %3993 = vst.msk [vmem:[%s7104_s7 + $0x488] sm:$0xff] %vm3847_vm1, %v4569_v63 }
 0x6fd   :  { %4570 = vtanh.f32 %v3673_v12 }
 0x700   :  { %v3081_v20 = vpop.f32.mrf.mxu3  ;;  %v3495_v27 = vpop.f32.mrf.mxu0 }
 0x701   :  { %v3491_v58 = vadd.f32 %v3490_v11, %v3081_v20 }
 0x703   :  { %v4571_v0 = vpop.eup %4570  ;;  %v3674_v6 = vadd.f32 %v6877_v2, %v3491_v58 }
 0x704   :  { %3994 = vst.msk [vmem:[%s7104_s7 + $0x490] sm:$0xff] %vm3847_vm1, %v4571_v0 }
 0x705   :  { %4572 = vtanh.f32 %v3674_v6 }
 0x708   :  { %v3084_v34 = vpop.f32.mrf.mxu3  ;;  %v3498_v8 = vpop.f32.mrf.mxu0 }
 0x709   :  { %v3494_v9 = vadd.f32 %v3493_v4, %v3084_v34 }
 0x70b   :  { %v4573_v26 = vpop.eup %4572  ;;  %v3675_v37 = vadd.f32 %v6877_v2, %v3494_v9 }
 0x70c   :  { %3995 = vst.msk [vmem:[%s7104_s7 + $0x498] sm:$0xff] %vm3847_vm1, %v4573_v26 }
 0x70d   :  { %4574 = vtanh.f32 %v3675_v37 }
 0x710   :  { %v3086_v59 = vpop.f32.mrf.mxu3  ;;  %v3500_v32 = vpop.f32.mrf.mxu0 }
 0x711   :  { %v3496_v39 = vadd.f32 %v3495_v27, %v3086_v59 }
 0x713   :  { %v4575_v21 = vpop.eup %4574  ;;  %v3676_v13 = vadd.f32 %v6877_v2, %v3496_v39 }
 0x714   :  { %3996 = vst.msk [vmem:[%s7104_s7 + $0x4a0] sm:$0xff] %vm3847_vm1, %v4575_v21 }
 0x715   :  { %4576 = vtanh.f32 %v3676_v13 }
 0x718   :  { %v3089_v45 = vpop.f32.mrf.mxu3  ;;  %v3503_v14 = vpop.f32.mrf.mxu0 }
 0x719   :  { %v3499_v18 = vadd.f32 %v3498_v8, %v3089_v45 }
 0x71b   :  { %v4577_v33 = vpop.eup %4576  ;;  %v3677_v19 = vadd.f32 %v6877_v2, %v3499_v18 }
 0x71c   :  { %3997 = vst.msk [vmem:[%s7104_s7 + $0x4a8] sm:$0xff] %vm3847_vm1, %v4577_v33 }
 0x71d   :  { %4578 = vtanh.f32 %v3677_v19 }
 0x720   :  { %v3091_v44 = vpop.f32.mrf.mxu3  ;;  %v3505_v17 = vpop.f32.mrf.mxu0 }
 0x721   :  { %v3501_v43 = vadd.f32 %v3500_v32, %v3091_v44 }
 0x723   :  { %v4579_v1 = vpop.eup %4578  ;;  %v3678_v30 = vadd.f32 %v6877_v2, %v3501_v43 }
 0x724   :  { %3998 = vst.msk [vmem:[%s7104_s7 + $0x4b0] sm:$0xff] %vm3847_vm1, %v4579_v1 }
 0x725   :  { %4580 = vtanh.f32 %v3678_v30 }
 0x728   :  { %v3094_v35 = vpop.f32.mrf.mxu3  ;;  %v3508_v57 = vpop.f32.mrf.mxu0 }
 0x729   :  { %v3504_v25 = vadd.f32 %v3503_v14, %v3094_v35 }
 0x72b   :  { %v4581_v56 = vpop.eup %4580  ;;  %v3679_v47 = vadd.f32 %v6877_v2, %v3504_v25 }
 0x72c   :  { %3999 = vst.msk [vmem:[%s7104_s7 + $0x4b8] sm:$0xff] %vm3847_vm1, %v4581_v56 }
 0x72d   :  { %4582 = vtanh.f32 %v3679_v47 }
 0x730   :  { %v3096_v7 = vpop.f32.mrf.mxu3  ;;  %v3510_v61 = vpop.f32.mrf.mxu0 }
 0x731   :  { %v3506_v24 = vadd.f32 %v3505_v17, %v3096_v7 }
 0x733   :  { %v4583_v36 = vpop.eup %4582  ;;  %v3680_v41 = vadd.f32 %v6877_v2, %v3506_v24 }
 0x734   :  { %4000 = vst.msk [vmem:[%s7104_s7 + $0x4c0] sm:$0xff] %vm3847_vm1, %v4583_v36 }
 0x735   :  { %4584 = vtanh.f32 %v3680_v41 }
 0x738   :  { %v3099_v54 = vpop.f32.mrf.mxu3  ;;  %v3513_v42 = vpop.f32.mrf.mxu0 }
 0x739   :  { %v3509_v22 = vadd.f32 %v3508_v57, %v3099_v54 }
 0x73b   :  { %v4585_v46 = vpop.eup %4584  ;;  %v3681_v52 = vadd.f32 %v6877_v2, %v3509_v22 }
 0x73c   :  { %4001 = vst.msk [vmem:[%s7104_s7 + $0x4c8] sm:$0xff] %vm3847_vm1, %v4585_v46 }
 0x73d   :  { %4586 = vtanh.f32 %v3681_v52 }
 0x740   :  { %v3101_v51 = vpop.f32.mrf.mxu3  ;;  %v3515_v60 = vpop.f32.mrf.mxu0 }
 0x741   :  { %v3511_v28 = vadd.f32 %v3510_v61, %v3101_v51 }
 0x743   :  { %v4587_v15 = vpop.eup %4586  ;;  %v3682_v5 = vadd.f32 %v6877_v2, %v3511_v28 }
 0x744   :  { %4002 = vst.msk [vmem:[%s7104_s7 + $0x4d0] sm:$0xff] %vm3847_vm1, %v4587_v15 }
 0x745   :  { %4588 = vtanh.f32 %v3682_v5 }
 0x748   :  { %v3104_v10 = vpop.f32.mrf.mxu3 }
 0x749   :  { %v3514_v29 = vadd.f32 %v3513_v42, %v3104_v10 }
 0x74b   :  { %v4589_v31 = vpop.eup %4588  ;;  %v3683_v50 = vadd.f32 %v6877_v2, %v3514_v29 }
 0x74c   :  { %4003 = vst.msk [vmem:[%s7104_s7 + $0x4d8] sm:$0xff] %vm3847_vm1, %v4589_v31 }
 0x74d   :  { %4590 = vtanh.f32 %v3683_v50 }
 0x750   :  { %v3106_v16 = vpop.f32.mrf.mxu3 }
 0x751   :  { %v3516_v62 = vadd.f32 %v3515_v60, %v3106_v16 }
 0x753   :  { %v4591_v49 = vpop.eup %4590  ;;  %v3684_v53 = vadd.f32 %v6877_v2, %v3516_v62 }
 0x754   :  { %4004 = vst.msk [vmem:[%s7104_s7 + $0x4e0] sm:$0xff] %vm3847_vm1, %v4591_v49 }
 0x755   :  { %4592 = vtanh.f32 %v3684_v53 }
 0x758   :  { %v3109_v55 = vpop.f32.mrf.mxu3 }
 0x75b   :  { %v4593_v11 = vpop.eup %4592 }
 0x75c   :  { %4005 = vst.msk [vmem:[%s7104_s7 + $0x4e8] sm:$0xff] %vm3847_vm1, %v4593_v11 }
 0x760   :  { %v3111_v38 = vpop.f32.mrf.mxu3 }
 0x768   :  { %v3518_v40 = vpop.f32.mrf.mxu3 }
 0x769   :  { %v3519_v3 = vadd.f32 %v3518_v40, %v3109_v55 }
 0x76b   :  { %v3685_v48 = vadd.f32 %v6877_v2, %v3519_v3 }
 0x76d   :  { %4594 = vtanh.f32 %v3685_v48 }
 0x770   :  { %v3520_v4 = vpop.f32.mrf.mxu3 }
 0x771   :  { %v3521_v23 = vadd.f32 %v3520_v4, %v3111_v38 }
 0x773   :  { %v4595_v63 = vpop.eup %4594  ;;  %v3686_v12 = vadd.f32 %v6877_v2, %v3521_v23 }
 0x774   :  { %4006 = vst.msk [vmem:[%s7104_s7 + $0x4f0] sm:$0xff] %vm3847_vm1, %v4595_v63 }
 0x775   :  { %4596 = vtanh.f32 %v3686_v12 }
 0x77b   :  { %v4597_v20 = vpop.eup %4596 }
 0x77c   :  { %4007 = vst.msk [vmem:[%s7104_s7 + $0x4f8] sm:$0xff] %vm3847_vm1, %v4597_v20 }

</bundles_post_ra>
